<compile_context>
chip_gen: v7x
topology: tpu7x:2x2x1
jax: 0.10.0
libtpu: 0.0.40
codegen_flags: <defaults>
</compile_context>

<pallas_src>
import math
import jax
import jax.numpy as jnp
from jax.experimental import pallas as pl
from jax.experimental.pallas import tpu as pltpu


# ----------------------------------------------------------------------------
# Fused Pallas kernel: packed QKV projection + mutual reconstruction distances.
#   inputs : fa (W*La, H) bf16, fb (Q*Lb, H) bf16, w (H, 3I) bf16 (fused to_qkv).
#   outputs: sq (Q, W) f32, qs (Q, W) f32
# ----------------------------------------------------------------------------
def _softmax_last(x):
    m = jnp.max(x, axis=-1, keepdims=True)
    e = jnp.exp(x - m)
    s = jnp.sum(e, axis=-1, keepdims=True)
    return e * pl.reciprocal(s, approx=True)


def _block_pool_matrix(n_rows, n_blocks, block_len):
    """(n_rows, n_blocks) f32: 1.0 where row r belongs to block c, else 0.  Built with
    iota + compares only (no int division) so it lowers cleanly on all TPU gens."""
    r = jax.lax.broadcasted_iota(jnp.int32, (n_rows, n_blocks), 0)
    c = jax.lax.broadcasted_iota(jnp.int32, (n_rows, n_blocks), 1)
    return ((r >= c * block_len) & (r < (c + 1) * block_len)).astype(jnp.float32)


def _make_fmrm_kernel(n_way, la, n_query, lb, inner):
    scale = 1.0 / math.sqrt(inner)
    wla, qlb = n_way * la, n_query * lb
    dn_nt = (((1,), (1,)), ((), ()))   # contract last dims:  a @ b.T  (no transpose op)
    dn_tn = (((0,), (0,)), ((), ()))   # contract first dims: a.T @ b  (no transpose op)

    def kernel(fa_ref, fb_ref, w_ref, sq_ref, qs_ref):
        w = w_ref[...]                                                   # (H, 3I) bf16

        # Packed QKV projection: ONE MXU matmul per branch, f32 accumulation.
        qkv_a = jnp.dot(fa_ref[...], w, preferred_element_type=jnp.float32)  # (W*La, 3I)
        qkv_b = jnp.dot(fb_ref[...], w, preferred_element_type=jnp.float32)  # (Q*Lb, 3I)

        # q/k/v as lane-views of the packed result; fold the score scale into q
        # (narrow I-lane multiply instead of the full score matrix).  q/k are cast
        # back to bf16 for the score matmuls; v stays f32 (feeds the distance).
        q_a = (qkv_a[:, :inner] * scale).astype(jnp.bfloat16)
        k_a = qkv_a[:, inner:2 * inner].astype(jnp.bfloat16)
        v_a = qkv_a[:, 2 * inner:]                                       # (W*La, I) f32
        q_b = (qkv_b[:, :inner] * scale).astype(jnp.bfloat16)
        k_b = qkv_b[:, inner:2 * inner].astype(jnp.bfloat16)
        v_b = qkv_b[:, 2 * inner:]                                       # (Q*Lb, I) f32

        # Constant block-ones pooling matrices (cheap iota+cmp, built once).
        pool_b = _block_pool_matrix(qlb, n_query, lb)                    # (Q*Lb, Q)
        pool_a = _block_pool_matrix(wla, n_way, la)                      # (W*La, W)

        # ---- direction 1: reconstruct features_b from each way's features_a ----
        # qs[q, w] = -|| v_b(q) - softmax(q_b k_a(w)^T)[dropout p=0] v_a(w) ||^2
        s_b = jax.lax.dot_general(q_b, k_a, dn_nt,
                                  preferred_element_type=jnp.float32)    # (Q*Lb, W*La)
        cols_b = []
        for wi in range(n_way):                      # static unroll (n_way is small)
            blk = slice(wi * la, (wi + 1) * la)
            p = _softmax_last(s_b[:, blk])                               # (Q*Lb, La)
            recon = jnp.dot(p, v_a[blk, :], preferred_element_type=jnp.float32)
            d = v_b - recon
            cols_b.append(jnp.sum(d * d, axis=1, keepdims=True))        # (Q*Lb, 1)
        row_sq_b = jnp.concatenate(cols_b, axis=1)                       # (Q*Lb, W)
        # ONE pooling matmul + ONE slab write.
        qs_ref[...] = -jax.lax.dot_general(pool_b, row_sq_b, dn_tn,
                                           preferred_element_type=jnp.float32)  # (Q, W)

        # ---- direction 2: reconstruct features_a from each query's features_b ----
        # sq[q, w] = -|| v_a(w) - softmax(q_a k_b(q)^T)[dropout p=0] v_b(q) ||^2
        s_a = jax.lax.dot_general(q_a, k_b, dn_nt,
                                  preferred_element_type=jnp.float32)    # (W*La, Q*Lb)
        cols_a = []
        for qi in range(n_query):                    # static unroll (n_query is small)
            blk = slice(qi * lb, (qi + 1) * lb)
            p = _softmax_last(s_a[:, blk])                               # (W*La, Lb)
            recon = jnp.dot(p, v_b[blk, :], preferred_element_type=jnp.float32)
            d = v_a - recon
            cols_a.append(jnp.sum(d * d, axis=1, keepdims=True))        # (W*La, 1)
        row_sq_a = jnp.concatenate(cols_a, axis=1)                       # (W*La, Q)
        sq_ref[...] = -jax.lax.dot_general(row_sq_a, pool_a, dn_tn,
                                           preferred_element_type=jnp.float32)  # (Q, W)

    return kernel


def fmrm_fused_distances(fa, fb, w_qkv):
    """fa: (n_way, La, H), fb: (n_query, Lb, H), w_qkv: (H, 3I) -> (sq, qs) each (Q, W)."""
    n_way, la, hidden = fa.shape
    n_query, lb, _ = fb.shape
    inner = w_qkv.shape[1] // 3

    kernel = _make_fmrm_kernel(n_way, la, n_query, lb, inner)
    # bf16 MXU operands (f32 accumulation inside the kernel); halves HBM->VMEM bytes.
    fa2 = fa.reshape(n_way * la, hidden).astype(jnp.bfloat16)
    fb2 = fb.reshape(n_query * lb, hidden).astype(jnp.bfloat16)
    w2 = w_qkv.astype(jnp.bfloat16)

    sq, qs = pl.pallas_call(
        kernel,
        out_shape=(
            jax.ShapeDtypeStruct((n_query, n_way), jnp.float32),
            jax.ShapeDtypeStruct((n_query, n_way), jnp.float32),
        ),
        in_specs=[
            pl.BlockSpec(memory_space=pltpu.MemorySpace.VMEM),
            pl.BlockSpec(memory_space=pltpu.MemorySpace.VMEM),
            pl.BlockSpec(memory_space=pltpu.MemorySpace.VMEM),
        ],
        out_specs=(
            pl.BlockSpec(memory_space=pltpu.MemorySpace.VMEM),
            pl.BlockSpec(memory_space=pltpu.MemorySpace.VMEM),
        ),
    )(fa2, fb2, w2)
    return sq, qs


# ----------------------------------------------------------------------------
# CFRM stand-in (plain JAX glue).
# TODO(synk): CFRM's source was not provided with FMRM; this is a deterministic
#             self-attention reconstruction stand-in with the declared
#             (hidden -> hidden) sizing that preserves the shape contract
#             re_a1.view(n_way, K, hidden, 5, 5).
# ----------------------------------------------------------------------------
def cfrm_forward(wc, features_a, phi):
    n_way, hidden, n_shot, h, w = features_a.shape
    x = features_a.transpose(0, 2, 3, 4, 1).reshape(n_way, n_shot * h * w, hidden)
    q = x @ wc
    k = x @ wc
    v = x @ wc
    attn = jax.nn.softmax((q @ jnp.swapaxes(k, -1, -2)) * (phi / math.sqrt(hidden)), axis=-1)
    out = attn @ v                                                  # (n_way, L, hidden)
    out = out.reshape(n_way * n_shot, h * w, hidden).transpose(0, 2, 1)
    return out.reshape(n_way * n_shot, hidden, h, w)                # (n_way*K, hidden, 5, 5)


# ----------------------------------------------------------------------------
# Token construction (mirrors the PyTorch view/permute sequence) — shared by the
# Pallas path and the pure-JAX reference.
# ----------------------------------------------------------------------------
def _build_tokens(params, features_a, features_b, phi):
    n_way, hidden = features_a.shape[0], features_a.shape[1]
    re_a1 = cfrm_forward(params["cfrm_w"], features_a, phi)
    K = re_a1.shape[0] // n_way
    re_a1 = re_a1.reshape(n_way, K, hidden, 5, 5).transpose(0, 2, 1, 3, 4)
    fa = jnp.concatenate([features_a, re_a1], axis=2)               # (n_way, hidden, S+K, 5, 5)
    fa = fa.reshape(n_way, hidden, -1).transpose(0, 2, 1)           # (n_way, l_a, hidden)
    fb = features_b.reshape(features_b.shape[0], hidden, -1).transpose(0, 2, 1)
    return fa, fb


# ----------------------------------------------------------------------------
# Full FMRM forward (Pallas-backed)
# ----------------------------------------------------------------------------
def fmrm_forward(params, features_a, features_b, phi):
    fa, fb = _build_tokens(params, features_a, features_b, phi)
    return fmrm_fused_distances(fa, fb, params["w_qkv"])


# ----------------------------------------------------------------------------
# Pure-JAX reference (mirrors the PyTorch math, full f32) for a correctness check.
# ----------------------------------------------------------------------------
def fmrm_reference(params, features_a, features_b, phi):
    fa, fb = _build_tokens(params, features_a, features_b, phi)
    I = params["w_qkv"].shape[1] // 3

    qkv_a = fa @ params["w_qkv"]
    qa, ka, va = qkv_a[..., :I], qkv_a[..., I:2 * I], qkv_a[..., 2 * I:]
    qkv_b = fb @ params["w_qkv"]
    qb, kb, vb = qkv_b[..., :I], qkv_b[..., I:2 * I], qkv_b[..., 2 * I:]

    scale = 1.0 / math.sqrt(I)
    s_b = jnp.einsum('qli,wmi->qwlm', qb, ka) * scale
    p_b = jax.nn.softmax(s_b, axis=-1)
    recon_b = jnp.einsum('qwlm,wmi->qwli', p_b, va)
    qs = -jnp.sum((vb[:, None] - recon_b) ** 2, axis=(-1, -2))

    s_a = jnp.einsum('wmi,qli->qwml', qa, kb) * scale
    p_a = jax.nn.softmax(s_a, axis=-1)
    recon_a = jnp.einsum('qwml,qli->qwmi', p_a, vb)
    sq = -jnp.sum((va[None] - recon_a) ** 2, axis=(-1, -2))
    return sq, qs


if __name__ == "__main__":
    # Small, FMRM-consistent shapes: hidden=32, inner=hidden//8=4, 5x5 patches (num_patch=25)
    n_way, n_shot, n_query, hidden = 2, 1, 3, 32
    inner = hidden // 8

    key = jax.random.PRNGKey(0)
    k1, k2, k3, k4 = jax.random.split(key, 4)
    features_a = jax.random.normal(k1, (n_way, hidden, n_shot, 5, 5), dtype=jnp.float32)
    features_b = jax.random.normal(k2, (n_query, hidden, 5, 5), dtype=jnp.float32)
    phi = 1.0

    params = {
        # to_qkv: nn.Linear(hidden, 3*inner, bias=False); stored as (hidden, 3*inner)
        "w_qkv": 0.1 * jax.random.normal(k3, (hidden, 3 * inner), dtype=jnp.float32),
        # CFRM stand-in projection (hidden -> hidden)
        "cfrm_w": 0.1 * jax.random.normal(k4, (hidden, hidden), dtype=jnp.float32),
    }

    sq_sim, qs_sim = fmrm_forward(params, features_a, features_b, phi)
    jax.block_until_ready((sq_sim, qs_sim))

    sq_ref, qs_ref = fmrm_reference(params, features_a, features_b, phi)
    err_sq = float(jnp.max(jnp.abs(sq_sim - sq_ref) / (jnp.abs(sq_ref) + 1e-3)))
    err_qs = float(jnp.max(jnp.abs(qs_sim - qs_ref) / (jnp.abs(qs_ref) + 1e-3)))
    assert sq_sim.shape == (n_query, n_way) and qs_sim.shape == (n_query, n_way)
    # Tolerance 3e-2: bf16 MXU operands (perf feedback) + approx reciprocal in the
    # softmax denominator; all accumulation / softmax / distance math stays f32.
    assert err_sq < 3e-2 and err_qs < 3e-2, (err_sq, err_qs)

    print("KERNEL_OK")
</pallas_src>

<mosaic_0001>
module attributes {stable_mosaic.version = 11 : i64} {
  func.func @kernel(%arg0: memref<100x32xbf16, #tpu.memory_space<vmem>>, %arg1: memref<75x32xbf16, #tpu.memory_space<vmem>>, %arg2: memref<32x12xbf16, #tpu.memory_space<vmem>>, %arg3: memref<3x2xf32, #tpu.memory_space<vmem>>, %arg4: memref<3x2xf32, #tpu.memory_space<vmem>>) attributes {dimension_semantics = [], scalar_prefetch = 0 : i64, scratch_operands = 0 : i64, tpu.core_type = #tpu.core_type<tc>} {
    %c0 = arith.constant 0 : index
    %c0_0 = arith.constant 0 : index
    %0 = vector.load %arg2[%c0, %c0_0] : memref<32x12xbf16, #tpu.memory_space<vmem>>, vector<32x12xbf16>
    %c0_1 = arith.constant 0 : index
    %c0_2 = arith.constant 0 : index
    %1 = vector.load %arg0[%c0_1, %c0_2] : memref<100x32xbf16, #tpu.memory_space<vmem>>, vector<100x32xbf16>
    %cst = arith.constant dense<0.000000e+00> : vector<100x12xf32>
    %2 = tpu.matmul %1, %0, %cst {dimension_numbers = #tpu.dot_dimension_numbers<[1], [0], [0], [1], [0, 0, 1, 1], [], []>} : vector<100x32xbf16>, vector<32x12xbf16>, vector<100x12xf32> -> vector<100x12xf32>
    %c0_3 = arith.constant 0 : index
    %c0_4 = arith.constant 0 : index
    %3 = vector.load %arg1[%c0_3, %c0_4] : memref<75x32xbf16, #tpu.memory_space<vmem>>, vector<75x32xbf16>
    %cst_5 = arith.constant dense<0.000000e+00> : vector<75x12xf32>
    %4 = tpu.matmul %3, %0, %cst_5 {dimension_numbers = #tpu.dot_dimension_numbers<[1], [0], [0], [1], [0, 0, 1, 1], [], []>} : vector<75x32xbf16>, vector<32x12xbf16>, vector<75x12xf32> -> vector<75x12xf32>
    %5 = vector.extract_strided_slice %2 {offsets = [0, 0], sizes = [100, 4], strides = [1, 1]} : vector<100x12xf32> to vector<100x4xf32>
    %cst_6 = arith.constant 5.000000e-01 : f32
    %6 = vector.broadcast %cst_6 : f32 to vector<100x4xf32>
    %7 = arith.mulf %5, %6 : vector<100x4xf32>
    %8 = arith.truncf %7 : vector<100x4xf32> to vector<100x4xbf16>
    %9 = vector.extract_strided_slice %2 {offsets = [0, 4], sizes = [100, 4], strides = [1, 1]} : vector<100x12xf32> to vector<100x4xf32>
    %10 = arith.truncf %9 : vector<100x4xf32> to vector<100x4xbf16>
    %11 = vector.extract_strided_slice %2 {offsets = [0, 8], sizes = [100, 4], strides = [1, 1]} : vector<100x12xf32> to vector<100x4xf32>
    %12 = vector.extract_strided_slice %4 {offsets = [0, 0], sizes = [75, 4], strides = [1, 1]} : vector<75x12xf32> to vector<75x4xf32>
    %cst_7 = arith.constant 5.000000e-01 : f32
    %13 = vector.broadcast %cst_7 : f32 to vector<75x4xf32>
    %14 = arith.mulf %12, %13 : vector<75x4xf32>
    %15 = arith.truncf %14 : vector<75x4xf32> to vector<75x4xbf16>
    %16 = vector.extract_strided_slice %4 {offsets = [0, 4], sizes = [75, 4], strides = [1, 1]} : vector<75x12xf32> to vector<75x4xf32>
    %17 = arith.truncf %16 : vector<75x4xf32> to vector<75x4xbf16>
    %18 = vector.extract_strided_slice %4 {offsets = [0, 8], sizes = [75, 4], strides = [1, 1]} : vector<75x12xf32> to vector<75x4xf32>
    %19 = tpu.iota {dimensions = array<i32: 0>} : vector<75x3xi32>
    %20 = tpu.iota {dimensions = array<i32: 1>} : vector<75x3xi32>
    %c25_i32 = arith.constant 25 : i32
    %21 = vector.broadcast %c25_i32 : i32 to vector<75x3xi32>
    %22 = arith.muli %20, %21 : vector<75x3xi32>
    %23 = arith.cmpi sge, %19, %22 : vector<75x3xi32>
    %c1_i32 = arith.constant 1 : i32
    %24 = vector.broadcast %c1_i32 : i32 to vector<75x3xi32>
    %25 = arith.addi %20, %24 : vector<75x3xi32>
    %c25_i32_8 = arith.constant 25 : i32
    %26 = vector.broadcast %c25_i32_8 : i32 to vector<75x3xi32>
    %27 = arith.muli %25, %26 : vector<75x3xi32>
    %28 = arith.cmpi slt, %19, %27 : vector<75x3xi32>
    %29 = arith.andi %23, %28 : vector<75x3xi1>
    %30 = arith.extui %29 : vector<75x3xi1> to vector<75x3xi32>
    %31 = arith.sitofp %30 : vector<75x3xi32> to vector<75x3xf32>
    %32 = tpu.iota {dimensions = array<i32: 0>} : vector<100x2xi32>
    %33 = tpu.iota {dimensions = array<i32: 1>} : vector<100x2xi32>
    %c50_i32 = arith.constant 50 : i32
    %34 = vector.broadcast %c50_i32 : i32 to vector<100x2xi32>
    %35 = arith.muli %33, %34 : vector<100x2xi32>
    %36 = arith.cmpi sge, %32, %35 : vector<100x2xi32>
    %c1_i32_9 = arith.constant 1 : i32
    %37 = vector.broadcast %c1_i32_9 : i32 to vector<100x2xi32>
    %38 = arith.addi %33, %37 : vector<100x2xi32>
    %c50_i32_10 = arith.constant 50 : i32
    %39 = vector.broadcast %c50_i32_10 : i32 to vector<100x2xi32>
    %40 = arith.muli %38, %39 : vector<100x2xi32>
    %41 = arith.cmpi slt, %32, %40 : vector<100x2xi32>
    %42 = arith.andi %36, %41 : vector<100x2xi1>
    %43 = arith.extui %42 : vector<100x2xi1> to vector<100x2xi32>
    %44 = arith.sitofp %43 : vector<100x2xi32> to vector<100x2xf32>
    %cst_11 = arith.constant dense<0.000000e+00> : vector<75x100xf32>
    %45 = tpu.matmul %15, %10, %cst_11 {dimension_numbers = #tpu.dot_dimension_numbers<[1], [1], [0], [0], [0, 0, 1, 0], [], []>} : vector<75x4xbf16>, vector<100x4xbf16>, vector<75x100xf32> -> vector<75x100xf32>
    %46 = vector.extract_strided_slice %45 {offsets = [0, 0], sizes = [75, 50], strides = [1, 1]} : vector<75x100xf32> to vector<75x50xf32>
    %cst_12 = arith.constant dense<0xFF800000> : vector<75xf32>
    %47 = vector.multi_reduction <maximumf>, %46, %cst_12 [1] : vector<75x50xf32> to vector<75xf32>
    %48 = vector.shape_cast %47 : vector<75xf32> to vector<75x1xf32>
    %49 = vector.broadcast %48 : vector<75x1xf32> to vector<75x50xf32>
    %50 = arith.subf %46, %49 : vector<75x50xf32>
    %51 = math.exp %50 : vector<75x50xf32>
    %cst_13 = arith.constant dense<0.000000e+00> : vector<75xf32>
    %52 = vector.multi_reduction <add>, %51, %cst_13 [1] : vector<75x50xf32> to vector<75xf32>
    %53 = vector.shape_cast %52 : vector<75xf32> to vector<75x1xf32>
    %54 = tpu.reciprocal %53 {approx = true} : vector<75x1xf32> -> vector<75x1xf32>
    %55 = vector.broadcast %54 : vector<75x1xf32> to vector<75x50xf32>
    %56 = arith.mulf %51, %55 : vector<75x50xf32>
    %57 = vector.extract_strided_slice %11 {offsets = [0, 0], sizes = [50, 4], strides = [1, 1]} : vector<100x4xf32> to vector<50x4xf32>
    %cst_14 = arith.constant dense<0.000000e+00> : vector<75x4xf32>
    %58 = tpu.matmul %56, %57, %cst_14 {dimension_numbers = #tpu.dot_dimension_numbers<[1], [0], [0], [1], [0, 0, 1, 1], [], []>} : vector<75x50xf32>, vector<50x4xf32>, vector<75x4xf32> -> vector<75x4xf32>
    %59 = arith.subf %18, %58 : vector<75x4xf32>
    %60 = arith.mulf %59, %59 : vector<75x4xf32>
    %cst_15 = arith.constant dense<0.000000e+00> : vector<75xf32>
    %61 = vector.multi_reduction <add>, %60, %cst_15 [1] : vector<75x4xf32> to vector<75xf32>
    %62 = vector.shape_cast %61 : vector<75xf32> to vector<75x1xf32>
    %63 = vector.extract_strided_slice %45 {offsets = [0, 50], sizes = [75, 50], strides = [1, 1]} : vector<75x100xf32> to vector<75x50xf32>
    %cst_16 = arith.constant dense<0xFF800000> : vector<75xf32>
    %64 = vector.multi_reduction <maximumf>, %63, %cst_16 [1] : vector<75x50xf32> to vector<75xf32>
    %65 = vector.shape_cast %64 : vector<75xf32> to vector<75x1xf32>
    %66 = vector.broadcast %65 : vector<75x1xf32> to vector<75x50xf32>
    %67 = arith.subf %63, %66 : vector<75x50xf32>
    %68 = math.exp %67 : vector<75x50xf32>
    %cst_17 = arith.constant dense<0.000000e+00> : vector<75xf32>
    %69 = vector.multi_reduction <add>, %68, %cst_17 [1] : vector<75x50xf32> to vector<75xf32>
    %70 = vector.shape_cast %69 : vector<75xf32> to vector<75x1xf32>
    %71 = tpu.reciprocal %70 {approx = true} : vector<75x1xf32> -> vector<75x1xf32>
    %72 = vector.broadcast %71 : vector<75x1xf32> to vector<75x50xf32>
    %73 = arith.mulf %68, %72 : vector<75x50xf32>
    %74 = vector.extract_strided_slice %11 {offsets = [50, 0], sizes = [50, 4], strides = [1, 1]} : vector<100x4xf32> to vector<50x4xf32>
    %cst_18 = arith.constant dense<0.000000e+00> : vector<75x4xf32>
    %75 = tpu.matmul %73, %74, %cst_18 {dimension_numbers = #tpu.dot_dimension_numbers<[1], [0], [0], [1], [0, 0, 1, 1], [], []>} : vector<75x50xf32>, vector<50x4xf32>, vector<75x4xf32> -> vector<75x4xf32>
    %76 = arith.subf %18, %75 : vector<75x4xf32>
    %77 = arith.mulf %76, %76 : vector<75x4xf32>
    %cst_19 = arith.constant dense<0.000000e+00> : vector<75xf32>
    %78 = vector.multi_reduction <add>, %77, %cst_19 [1] : vector<75x4xf32> to vector<75xf32>
    %79 = vector.shape_cast %78 : vector<75xf32> to vector<75x1xf32>
    %80 = tpu.concatenate %62, %79 in 1 : vector<75x1xf32>, vector<75x1xf32> -> vector<75x2xf32>
    %cst_20 = arith.constant dense<0.000000e+00> : vector<3x2xf32>
    %81 = tpu.matmul %31, %80, %cst_20 {dimension_numbers = #tpu.dot_dimension_numbers<[0], [0], [1], [1], [0, 1, 1, 1], [], []>} : vector<75x3xf32>, vector<75x2xf32>, vector<3x2xf32> -> vector<3x2xf32>
    %cst_21 = arith.constant 0.000000e+00 : f32
    %82 = vector.broadcast %cst_21 : f32 to vector<3x2xf32>
    %83 = arith.subf %82, %81 : vector<3x2xf32>
    %c0_22 = arith.constant 0 : index
    %c0_23 = arith.constant 0 : index
    %84 = vector.load %arg4[%c0_22, %c0_23] : memref<3x2xf32, #tpu.memory_space<vmem>>, vector<3x2xf32>
    tpu.vector_store %arg4[%c0_22, %c0_23], %83 {strides = array<i32>} : memref<3x2xf32, #tpu.memory_space<vmem>>, vector<3x2xf32>,
    %cst_24 = arith.constant dense<0.000000e+00> : vector<100x75xf32>
    %85 = tpu.matmul %8, %17, %cst_24 {dimension_numbers = #tpu.dot_dimension_numbers<[1], [1], [0], [0], [0, 0, 1, 0], [], []>} : vector<100x4xbf16>, vector<75x4xbf16>, vector<100x75xf32> -> vector<100x75xf32>
    %86 = vector.extract_strided_slice %85 {offsets = [0, 0], sizes = [100, 25], strides = [1, 1]} : vector<100x75xf32> to vector<100x25xf32>
    %cst_25 = arith.constant dense<0xFF800000> : vector<100xf32>
    %87 = vector.multi_reduction <maximumf>, %86, %cst_25 [1] : vector<100x25xf32> to vector<100xf32>
    %88 = vector.shape_cast %87 : vector<100xf32> to vector<100x1xf32>
    %89 = vector.broadcast %88 : vector<100x1xf32> to vector<100x25xf32>
    %90 = arith.subf %86, %89 : vector<100x25xf32>
    %91 = math.exp %90 : vector<100x25xf32>
    %cst_26 = arith.constant dense<0.000000e+00> : vector<100xf32>
    %92 = vector.multi_reduction <add>, %91, %cst_26 [1] : vector<100x25xf32> to vector<100xf32>
    %93 = vector.shape_cast %92 : vector<100xf32> to vector<100x1xf32>
    %94 = tpu.reciprocal %93 {approx = true} : vector<100x1xf32> -> vector<100x1xf32>
    %95 = vector.broadcast %94 : vector<100x1xf32> to vector<100x25xf32>
    %96 = arith.mulf %91, %95 : vector<100x25xf32>
    %97 = vector.extract_strided_slice %18 {offsets = [0, 0], sizes = [25, 4], strides = [1, 1]} : vector<75x4xf32> to vector<25x4xf32>
    %cst_27 = arith.constant dense<0.000000e+00> : vector<100x4xf32>
    %98 = tpu.matmul %96, %97, %cst_27 {dimension_numbers = #tpu.dot_dimension_numbers<[1], [0], [0], [1], [0, 0, 1, 1], [], []>} : vector<100x25xf32>, vector<25x4xf32>, vector<100x4xf32> -> vector<100x4xf32>
    %99 = arith.subf %11, %98 : vector<100x4xf32>
    %100 = arith.mulf %99, %99 : vector<100x4xf32>
    %cst_28 = arith.constant dense<0.000000e+00> : vector<100xf32>
    %101 = vector.multi_reduction <add>, %100, %cst_28 [1] : vector<100x4xf32> to vector<100xf32>
    %102 = vector.shape_cast %101 : vector<100xf32> to vector<100x1xf32>
    %103 = vector.extract_strided_slice %85 {offsets = [0, 25], sizes = [100, 25], strides = [1, 1]} : vector<100x75xf32> to vector<100x25xf32>
    %cst_29 = arith.constant dense<0xFF800000> : vector<100xf32>
    %104 = vector.multi_reduction <maximumf>, %103, %cst_29 [1] : vector<100x25xf32> to vector<100xf32>
    %105 = vector.shape_cast %104 : vector<100xf32> to vector<100x1xf32>
    %106 = vector.broadcast %105 : vector<100x1xf32> to vector<100x25xf32>
    %107 = arith.subf %103, %106 : vector<100x25xf32>
    %108 = math.exp %107 : vector<100x25xf32>
    %cst_30 = arith.constant dense<0.000000e+00> : vector<100xf32>
    %109 = vector.multi_reduction <add>, %108, %cst_30 [1] : vector<100x25xf32> to vector<100xf32>
    %110 = vector.shape_cast %109 : vector<100xf32> to vector<100x1xf32>
    %111 = tpu.reciprocal %110 {approx = true} : vector<100x1xf32> -> vector<100x1xf32>
    %112 = vector.broadcast %111 : vector<100x1xf32> to vector<100x25xf32>
    %113 = arith.mulf %108, %112 : vector<100x25xf32>
    %114 = vector.extract_strided_slice %18 {offsets = [25, 0], sizes = [25, 4], strides = [1, 1]} : vector<75x4xf32> to vector<25x4xf32>
    %cst_31 = arith.constant dense<0.000000e+00> : vector<100x4xf32>
    %115 = tpu.matmul %113, %114, %cst_31 {dimension_numbers = #tpu.dot_dimension_numbers<[1], [0], [0], [1], [0, 0, 1, 1], [], []>} : vector<100x25xf32>, vector<25x4xf32>, vector<100x4xf32> -> vector<100x4xf32>
    %116 = arith.subf %11, %115 : vector<100x4xf32>
    %117 = arith.mulf %116, %116 : vector<100x4xf32>
    %cst_32 = arith.constant dense<0.000000e+00> : vector<100xf32>
    %118 = vector.multi_reduction <add>, %117, %cst_32 [1] : vector<100x4xf32> to vector<100xf32>
    %119 = vector.shape_cast %118 : vector<100xf32> to vector<100x1xf32>
    %120 = vector.extract_strided_slice %85 {offsets = [0, 50], sizes = [100, 25], strides = [1, 1]} : vector<100x75xf32> to vector<100x25xf32>
    %cst_33 = arith.constant dense<0xFF800000> : vector<100xf32>
    %121 = vector.multi_reduction <maximumf>, %120, %cst_33 [1] : vector<100x25xf32> to vector<100xf32>
    %122 = vector.shape_cast %121 : vector<100xf32> to vector<100x1xf32>
    %123 = vector.broadcast %122 : vector<100x1xf32> to vector<100x25xf32>
    %124 = arith.subf %120, %123 : vector<100x25xf32>
    %125 = math.exp %124 : vector<100x25xf32>
    %cst_34 = arith.constant dense<0.000000e+00> : vector<100xf32>
    %126 = vector.multi_reduction <add>, %125, %cst_34 [1] : vector<100x25xf32> to vector<100xf32>
    %127 = vector.shape_cast %126 : vector<100xf32> to vector<100x1xf32>
    %128 = tpu.reciprocal %127 {approx = true} : vector<100x1xf32> -> vector<100x1xf32>
    %129 = vector.broadcast %128 : vector<100x1xf32> to vector<100x25xf32>
    %130 = arith.mulf %125, %129 : vector<100x25xf32>
    %131 = vector.extract_strided_slice %18 {offsets = [50, 0], sizes = [25, 4], strides = [1, 1]} : vector<75x4xf32> to vector<25x4xf32>
    %cst_35 = arith.constant dense<0.000000e+00> : vector<100x4xf32>
    %132 = tpu.matmul %130, %131, %cst_35 {dimension_numbers = #tpu.dot_dimension_numbers<[1], [0], [0], [1], [0, 0, 1, 1], [], []>} : vector<100x25xf32>, vector<25x4xf32>, vector<100x4xf32> -> vector<100x4xf32>
    %133 = arith.subf %11, %132 : vector<100x4xf32>
    %134 = arith.mulf %133, %133 : vector<100x4xf32>
    %cst_36 = arith.constant dense<0.000000e+00> : vector<100xf32>
    %135 = vector.multi_reduction <add>, %134, %cst_36 [1] : vector<100x4xf32> to vector<100xf32>
    %136 = vector.shape_cast %135 : vector<100xf32> to vector<100x1xf32>
    %137 = tpu.concatenate %102, %119, %136 in 1 : vector<100x1xf32>, vector<100x1xf32>, vector<100x1xf32> -> vector<100x3xf32>
    %cst_37 = arith.constant dense<0.000000e+00> : vector<3x2xf32>
    %138 = tpu.matmul %137, %44, %cst_37 {dimension_numbers = #tpu.dot_dimension_numbers<[0], [0], [1], [1], [0, 1, 1, 1], [], []>} : vector<100x3xf32>, vector<100x2xf32>, vector<3x2xf32> -> vector<3x2xf32>
    %cst_38 = arith.constant 0.000000e+00 : f32
    %139 = vector.broadcast %cst_38 : f32 to vector<3x2xf32>
    %140 = arith.subf %139, %138 : vector<3x2xf32>
    %c0_39 = arith.constant 0 : index
    %c0_40 = arith.constant 0 : index
    %141 = vector.load %arg3[%c0_39, %c0_40] : memref<3x2xf32, #tpu.memory_space<vmem>>, vector<3x2xf32>
    tpu.vector_store %arg3[%c0_39, %c0_40], %140 {strides = array<i32>} : memref<3x2xf32, #tpu.memory_space<vmem>>, vector<3x2xf32>,
    return
  }
}

</mosaic_0001>

<bundles_post_ra>
// kernel: tpu_custom_call.1
= control target key start
LH: loop header
LB: loop body
LE: loop exit
PB: predicated region body
PF: predicated region fallthrough
CT: control target
= control target key end

     0   :  { %v6855_v0 = vmov 0.0   ;;  %vm4684_vm0 = vmmov 0   ;;  %vm79_vm1 = vcmask 261120   ;;  %vm2537_vm2 = vcmask 1046528   ;;  %s4687_s16 = smov 78   ;;  %s4688_s17 = smov 103   ;;  %s6850_s2 = inlined_call_operand.vmem [shape: bf16[32,12], index: 2, kind: input, shape index: {}]   ;;  %s6851_s0 = inlined_call_operand.vmem [shape: bf16[100,32], index: 0, kind: input, shape index: {}]   ;;  %s6852_s1 = inlined_call_operand.vmem [shape: bf16[75,32], index: 1, kind: input, shape index: {}]   ;;  %s6853_s4 = inlined_call_operand.vmem [shape: f32[3,2], index: 4, kind: output, shape index: {1}]   ;;  %s6854_s3 = inlined_call_operand.vmem [shape: f32[3,2], index: 3, kind: output, shape index: {0}]  }
   0x1   :  { %3905 = vmatprep.subr.bf16.mxu0 %v6855_v0  ;;  %3937 = vmatprep.subr.bf16.mxu1 %v6855_v0  ;;  %v4433_v1 = vld [vmem:[%s6850_s2] sm:$0xff]   ;;  %v4434_v2 = vld [vmem:[%s6850_s2 + $0x8] sm:$0xff]   ;;  %v4439_v7 = vld [vmem:[%s6851_s0 + $0x10] sm:$0xff]   ;;  %vm1232_vm3 = vcmask 1045504   ;;  %vm516_vm4 = vcmask 31744   ;;  %vm795_vm5 = vcmask 1041408  }
   0x2   :  { %3909 = vmatprep.mubr.msk.bf16.mxu0 %vm4684_vm0, %v6855_v0  ;;  %3941 = vmatprep.mubr.msk.bf16.mxu1 %vm4684_vm0, %v6855_v0  ;;  %v4435_v3 = vld [vmem:[%s6851_s0] sm:$0xff]   ;;  %v4437_v5 = vld [vmem:[%s6851_s0 + $0x8] sm:$0xff]   ;;  %v4440_v8 = vld [vmem:[%s6852_s1 + $0x10] sm:$0xff]   ;;  %vm1044_vm6 = vcmask 818576   ;;  %vm626_vm7 = vcmask 408576   ;;  %vm1072_vm8 = vcmask 813456  }
   0x3   :  { %3906 = vmatpush3.bf16.msra.mxu0 %v4433_v1  ;;  %3938 = vmatpush3.bf16.msra.mxu1 %v4433_v1  ;;  %v4436_v4 = vld [vmem:[%s6852_s1] sm:$0xff]   ;;  %v4438_v6 = vld [vmem:[%s6852_s1 + $0x8] sm:$0xff]   ;;  %v4441_v9 = vld [vmem:[%s6851_s0 + $0x18] sm:$0xff]   ;;  %vm2298_vm9 = vcmask 408776   ;;  %vm654_vm10 = vcmask 403456   ;;  %vm1796_vm11 = vcmask 203776  }
   0x4   :  { %3907 = vmatprep.subr.bf16.mxu0 %v6855_v0  ;;  %3939 = vmatprep.subr.bf16.mxu1 %v6855_v0  ;;  %v4442_v10 = vld [vmem:[%s6852_s1 + $0x18] sm:$0xff]   ;;  %v4443_v11 = vld [vmem:[%s6851_s0 + $0x20] sm:$0xff]   ;;  %v4445_v13 = vld [vmem:[%s6851_s0 + $0x28] sm:$0xff]   ;;  %vm2883_vm12 = vcmask 613776   ;;  %vm2920_vm13 = vcmask 609680   ;;  %vm2335_vm14 = vcmask 404680  }
   0x5   :  { %v4444_v12 = vld [vmem:[%s6852_s1 + $0x20] sm:$0x3f]   ;;  %v4446_v14 = vld [vmem:[%s6851_s0 + $0x30] ss:$0 sps:$4 sm:$0x33]   ;;  %s4685_s0 = smov 120  }
   0x6   :  { %s4686_s1 = smov 124   ;;  %vm1833_vm15 = vcmask 199680   ;;  %s4689_s18 = smov 8  }
   0x7   :  { %3908 = vmatpush3.bf16.msra.mxu0 %v4434_v2  ;;  %3940 = vmatpush3.bf16.msra.mxu1 %v4434_v2 }
   0x8   :  { %3961 = vmatprep.subr.bf16.mxu0 %v6855_v0 }
   0xa   :  { %3910 = vmatmul.mubr.msk.bf16.vlgmr.msra.gmra.mrb[0].mxu0 %vm79_vm1, %v4435_v3  ;;  %3942 = vmatmul.mubr.msk.bf16.vlgmr.msra.gmra.mrb[0].mxu1 %vm79_vm1, %v4436_v4 }
   0xb   :  { %3913 = vmatprep.mubr.msk.bf16.mxu0 %vm4684_vm0, %v6855_v0  ;;  %3945 = vmatprep.mubr.msk.bf16.mxu1 %vm4684_vm0, %v6855_v0 }
  0x12   :  { %3914 = vmatmul.mubr.msk.bf16.gmra.mrb[4].mxu0 %vm79_vm1, %v4437_v5  ;;  %3946 = vmatmul.mubr.msk.bf16.gmra.mrb[4].mxu1 %vm79_vm1, %v4438_v6 }
  0x13   :  { %3917 = vmatprep.mubr.msk.bf16.mxu0 %vm4684_vm0, %v6855_v0  ;;  %3949 = vmatprep.mubr.msk.bf16.mxu1 %vm4684_vm0, %v6855_v0 }
  0x1a   :  { %3918 = vmatmul.mubr.msk.bf16.gmra.mrb[8].mxu0 %vm79_vm1, %v4439_v7  ;;  %3950 = vmatmul.mubr.msk.bf16.gmra.mrb[8].mxu1 %vm79_vm1, %v4440_v8 }
  0x1b   :  { %3921 = vmatprep.mubr.msk.bf16.mxu0 %vm4684_vm0, %v6855_v0  ;;  %3953 = vmatprep.mubr.msk.bf16.mxu1 %vm4684_vm0, %v6855_v0 }
  0x22   :  { %3922 = vmatmul.mubr.msk.bf16.gmra.mrb[12].mxu0 %vm79_vm1, %v4441_v9  ;;  %3954 = vmatmul.mubr.msk.bf16.gmra.mrb[12].mxu1 %vm79_vm1, %v4442_v10 }
  0x23   :  { %3925 = vmatprep.mubr.msk.bf16.mxu0 %vm4684_vm0, %v6855_v0  ;;  %3957 = vmatprep.mubr.msk.bf16.mxu1 %vm4684_vm0, %v6855_v0 }
  0x2a   :  { %3926 = vmatmul.mubr.msk.bf16.gmra.mrb[16].mxu0 %vm79_vm1, %v4443_v11  ;;  %3958 = vmatmul.mubr.msk.bf16.gmra.mrb[16].mxu1 %vm79_vm1, %v4444_v12 }
  0x2b   :  { %3929 = vmatprep.mubr.msk.bf16.mxu0 %vm4684_vm0, %v6855_v0 }
  0x32   :  { %3930 = vmatmul.mubr.msk.bf16.gmra.mrb[20].mxu0 %vm79_vm1, %v4445_v13 }
  0x33   :  { %3933 = vmatprep.mubr.msk.bf16.mxu0 %vm4684_vm0, %v6855_v0 }
  0x3a   :  { %3934 = vmatmul.mubr.msk.bf16.gmra.mrb[24].mxu0 %vm79_vm1, %v4446_v14  ;;  %vm1040_vm1 = vcmask 26624  }
  0x3b   :  { %3975 = vmatprep.mubr.msk.bf16.mxu0 %vm4684_vm0, %v6855_v0 }
  0xdd   :  { %v4803_v15 = vpop.f32.mrb[0].mxu0  ;;  %v4805_v16 = vpop.f32.mrb[0].mxu1 }
  0xde   :  { %6947 = vst [vmem:[#allocation2_spill] sm:$0xff] %v4803_v15  ;;  %6948 = vst [vmem:[#allocation3_spill] sm:$0xff] %v4805_v16  ;;  %v3911_v17 = vpop.f32.mrb[1].mxu0  ;;  %v4808_v18 = vmul.f32 0.5, %v4805_v16  ;;  %v3943_v19 = vpop.f32.mrb[1].mxu1  ;;  %v4811_v20 = vmul.f32 0.5, %v4803_v15 }
  0xdf   :  { %v4813_v21 = vpop.f32.mrb[2].mxu0  ;;  %v4815_v22 = vpop.f32.mrb[2].mxu1 }
  0xe0   :  { %6949 = vst [vmem:[#allocation4_spill] sm:$0xff] %v4813_v21  ;;  %6950 = vst [vmem:[#allocation5_spill] sm:$0xff] %v4815_v22  ;;  %v4818_v23 = vmul.f32 0.5, %v4813_v21  ;;  %v3912_v24 = vpop.f32.mrb[3].mxu0  ;;  %v4373_v25 = vpack.i.bf16 %v4813_v21, %v4803_v15  ;;  %v4823_v26 = vmul.f32 0.5, %v4815_v22  ;;  %v3944_v27 = vpop.f32.mrb[3].mxu1  ;;  %v354_v28 = vpack.c.bf16 %v4815_v22, %v4805_v16 }
  0xe1   :  { %v332_v29 = vpack.c.bf16 %v4813_v21, %v4803_v15 }
  0xe2   :  { %4374 = vrot.lane.b32.xlu0 %v4373_v25, %s4685_s0  ;;  %1662 = vrot.lane.b32.xlu1 %v354_v28, %s4686_s1 }
  0xe5   :  { %v4837_v33 = vpop.f32.mrb[4].mxu0  ;;  %v4839_v34 = vpop.f32.mrb[4].mxu1 }
  0xe6   :  { %6951 = vst [vmem:[#allocation6_spill] sm:$0xff] %v4837_v33  ;;  %6952 = vst [vmem:[#allocation7_spill] sm:$0xff] %v4839_v34  ;;  %502 = vrot.lane.b32.xlu0 %v332_v29, %s4686_s1  ;;  %v3915_v35 = vpop.f32.mrb[5].mxu0  ;;  %v3947_v36 = vpop.f32.mrb[5].mxu1  ;;  %v4845_v38 = vmul.f32 0.5, %v4839_v34  ;;  %v4859_v46 = vmul.f32 0.5, %v4837_v33 }
  0xe7   :  { %v4842_v37 = vpop.f32.mrb[6].mxu0  ;;  %v4847_v39 = vpop.f32.mrb[6].mxu1 }
  0xe8   :  { %6953 = vst [vmem:[#allocation8_spill] sm:$0xff] %v4842_v37  ;;  %6954 = vst [vmem:[#allocation9_spill] sm:$0xff] %v4847_v39  ;;  %v3916_v40 = vpop.f32.mrb[7].mxu0  ;;  %v4378_v41 = vpack.i.bf16 %v4842_v37, %v4837_v33  ;;  %v333_v42 = vpack.c.bf16 %v4842_v37, %v4837_v33  ;;  %v3948_v43 = vpop.f32.mrb[7].mxu1  ;;  %v355_v44 = vpack.c.bf16 %v4847_v39, %v4839_v34  ;;  %v4856_v45 = vmul.f32 0.5, %v4847_v39 }
  0xe9   :  { %v4862_v47 = vmul.f32 0.5, %v4842_v37  ;;  %v2538_v51 = vrot.slane %v4847_v39, 1 }
  0xea   :  { %4379 = vrot.lane.b32.xlu1 %v4378_v41, %s4685_s0  ;;  %504 = vrot.lane.b32.xlu0 %v333_v42, %s4686_s1 }
  0xed   :  { %v4873_v52 = vpop.f32.mrb[8].mxu0  ;;  %v4875_v53 = vpop.f32.mrb[8].mxu1 }
  0xee   :  { %6955 = vst [vmem:[#allocation10_spill] sm:$0xff] %v4873_v52  ;;  %6956 = vst [vmem:[#allocation11_spill] sm:$0xff] %v4875_v53  ;;  %v4878_v54 = vmul.f32 0.5, %v4875_v53  ;;  %v2539_v55 = vrot.slane %v4875_v53, 1  ;;  %v3919_v56 = vpop.f32.mrb[9].mxu0  ;;  %v3951_v57 = vpop.f32.mrb[9].mxu1  ;;  %1664 = vrot.lane.b32.xlu0 %v355_v44, %s4686_s1 }
  0xef   :  { %v4882_v58 = vpop.f32.mrb[10].mxu0  ;;  %v4884_v59 = vpop.f32.mrb[10].mxu1  ;;  %v4897_v4 = vmul.f32 0.5, %v4873_v52 }
  0xf0   :  { %6957 = vst [vmem:[#allocation12_spill] sm:$0xff] %v4882_v58  ;;  %6958 = vst [vmem:[#allocation13_spill] sm:$0xff] %v4884_v59  ;;  %v4887_v60 = vmul.f32 0.5, %v4884_v59  ;;  %v2541_v61 = vrot.slane %v4884_v59, 1  ;;  %v3920_v62 = vpop.f32.mrb[11].mxu0  ;;  %v4383_v63 = vpack.i.bf16 %v4882_v58, %v4873_v52  ;;  %v3952_v1 = vpop.f32.mrb[11].mxu1  ;;  %v334_v2 = vpack.c.bf16 %v4882_v58, %v4873_v52 }
  0xf1   :  { %v356_v3 = vpack.c.bf16 %v4884_v59, %v4875_v53  ;;  %v4900_v5 = vmul.f32 0.5, %v4882_v58  ;;  %v4903_v6 = vsel %vm2537_vm2, %v2538_v51, %v2539_v55 }
  0xf2   :  { %6959 = vst [vmem:[#allocation14_spill] sm:$0xff] %v4903_v6  ;;  %4384 = vrot.lane.b32.xlu1 %v4383_v63, %s4685_s0  ;;  %v4909_v8 = vsel %vm2537_vm2, %v2539_v55, %v2541_v61 }
  0xf3   :  { %6960 = vst [vmem:[#allocation15_spill] sm:$0xff] %v4909_v8 }
  0xf5   :  { %v4915_v11 = vpop.f32.mrb[12].mxu0  ;;  %v4917_v12 = vpop.f32.mrb[12].mxu1 }
  0xf6   :  { %6961 = vst [vmem:[#allocation16_spill] sm:$0xff] %v4915_v11  ;;  %6962 = vst [vmem:[#allocation17_spill] sm:$0xff] %v4917_v12  ;;  %v3122_v13 = vrot.slane %v4917_v12, 2  ;;  %506 = vrot.lane.b32.xlu1 %v334_v2, %s4686_s1  ;;  %v3923_v14 = vpop.f32.mrb[13].mxu0  ;;  %v3955_v17 = vpop.f32.mrb[13].mxu1  ;;  %v4922_v19 = vmul.f32 0.5, %v4917_v12 }
  0xf7   :  { %v4924_v24 = vpop.f32.mrb[14].mxu0  ;;  %v4926_v25 = vpop.f32.mrb[14].mxu1  ;;  %v1233_v27 = vrot.slane %v4915_v11, 2  ;;  %v4930_v28 = vmul.f32 0.5, %v4915_v11  ;;  %v2543_v29 = vrot.slane %v4917_v12, 1 }
  0xf8   :  { %6963 = vst [vmem:[#allocation18_spill] sm:$0xff] %v4924_v24  ;;  %6964 = vst [vmem:[#allocation19_spill] sm:$0xff] %v4926_v25  ;;  %v3924_v35 = vpop.f32.mrb[15].mxu0  ;;  %v4934_v36 = vmul.f32 0.5, %v4926_v25  ;;  %v3123_v40 = vrot.slane %v4926_v25, 2  ;;  %v3956_v41 = vpop.f32.mrb[15].mxu1  ;;  %v357_v42 = vpack.c.bf16 %v4926_v25, %v4917_v12  ;;  %v335_v43 = vpack.c.bf16 %v4924_v24, %v4915_v11 }
  0xf9   :  { %v1234_v44 = vrot.slane %v4924_v24, 2  ;;  %v4943_v51 = vmul.f32 0.5, %v4924_v24  ;;  %v2544_v55 = vsel %vm2537_vm2, %v2541_v61, %v2543_v29 }
  0xfa   :  { %1666 = vrot.lane.b32.xlu1 %v356_v3, %s4686_s1  ;;  %1668 = vrot.lane.b32.xlu0 %v357_v42, %s4686_s1  ;;  %v4951_v57 = vsel %vm1232_vm3, %v3122_v13, %v3123_v40  ;;  %v4953_v62 = vpack.i.bf16 %v2543_v29, %v2544_v55 }
  0xfb   :  { %6965 = vst [vmem:[#allocation20_spill] sm:$0xff] %v4951_v57  ;;  %v1235_v63 = vsel %vm1232_vm3, %v1233_v27, %v1234_v44 }
  0xfc   :  { %6966 = vst [vmem:[#allocation21_spill] sm:$0xff] %v4953_v62 }
  0xfd   :  { %v4958_v2 = vpop.f32.mrb[16].mxu0  ;;  %v4960_v61 = vpop.f32.mrb[16].mxu1 }
  0xfe   :  { %6967 = vst [vmem:[#allocation22_spill] sm:$0xff] %v4958_v2  ;;  %6968 = vst [vmem:[#allocation23_spill] sm:$0xff] %v4960_v61  ;;  %v4963_v3 = vmul.f32 0.5, %v4960_v61  ;;  %v3125_v14 = vrot.slane %v4960_v61, 2  ;;  %757 = vrot.lane.b32.xlu1 %v4915_v11, %s4685_s0  ;;  %v3927_v13 = vpop.f32.mrb[17].mxu0  ;;  %v3959_v17 = vpop.f32.mrb[17].mxu1 }
  0xff   :  { %v1236_v29 = vrot.slane %v4958_v2, 2  ;;  %v4969_v27 = vpop.f32.mrb[18].mxu0  ;;  %v4971_v35 = vpop.f32.mrb[18].mxu1  ;;  %v4974_v41 = vmul.f32 0.5, %v4958_v2 }
 0x100   :  { %6969 = vst [vmem:[#allocation24_spill] sm:$0xff] %v4969_v27  ;;  %6970 = vst [vmem:[#allocation25_spill] sm:$0xff] %v4971_v35  ;;  %v3928_v42 = vpop.f32.mrb[19].mxu0  ;;  %v336_v55 = vpack.c.bf16 %v4969_v27, %v4958_v2  ;;  %v4979_v10 = vmul.f32 0.5, %v4971_v35  ;;  %v3127_v48 = vrot.slane %v4971_v35, 2  ;;  %v3960_v13 = vpop.f32.mrb[19].mxu1  ;;  %v358_v1 = vpack.c.bf16 %v4971_v35, %v4960_v61 }
 0x101   :  { %v1237_v17 = vsel %vm1232_vm3, %v1234_v44, %v1236_v29  ;;  %v1238_v9 = vrot.slane %v4969_v27, 2  ;;  %v4987_v50 = vmul.f32 0.5, %v4969_v27  ;;  %v4994_v13 = vsel %vm1232_vm3, %v3123_v40, %v3125_v14 }
 0x102   :  { %v4388_v30 = vpack.i.bf16 %v1237_v17, %v1235_v63  ;;  %508 = vrot.lane.b32.xlu1 %v335_v43, %s4686_s1  ;;  %510 = vrot.lane.b32.xlu0 %v336_v55, %s4686_s1  ;;  %6971 = vst [vmem:[#allocation26_spill] sm:$0xff] %v4994_v13  ;;  %v3128_v44 = vsel %vm1232_vm3, %v3125_v14, %v3127_v48 }
 0x103   :  { %v1239_v63 = vsel %vm1232_vm3, %v1236_v29, %v1238_v9  ;;  %v5002_v56 = vpack.i.bf16 %v3127_v48, %v3128_v44 }
 0x105   :  { %6972 = vst [vmem:[#allocation27_spill] sm:$0xff] %v5002_v56  ;;  %v5004_v43 = vpop.f32.mrb[20].mxu0 }
 0x106   :  { %6973 = vst [vmem:[#allocation28_spill] sm:$0xff] %v5004_v43  ;;  %4389 = vrot.lane.b32.xlu1 %v4388_v30, %s4685_s0  ;;  %v3931_v55 = vpop.f32.mrb[21].mxu0  ;;  %v1240_v40 = vrot.slane %v5004_v43, 2  ;;  %v5009_v42 = vmul.f32 0.5, %v5004_v43 }
 0x107   :  { %v5011_v14 = vpop.f32.mrb[22].mxu0 }
 0x108   :  { %6974 = vst [vmem:[#allocation29_spill] sm:$0xff] %v5011_v14  ;;  %v3932_v29 = vpop.f32.mrb[23].mxu0  ;;  %v1241_v17 = vsel %vm1232_vm3, %v1238_v9, %v1240_v40  ;;  %v337_v31 = vpack.c.bf16 %v5011_v14, %v5004_v43  ;;  %v1242_v48 = vrot.slane %v5011_v14, 2  ;;  %v5018_v44 = vmul.f32 0.5, %v5011_v14 }
 0x109   :  { %v4393_v30 = vpack.i.bf16 %v1241_v17, %v1239_v63 }
 0x10a   :  { %1670 = vrot.lane.b32.xlu1 %v358_v1, %s4686_s1  ;;  %v1243_v55 = vsel %vm1232_vm3, %v1240_v40, %v1242_v48 }
 0x10d   :  { %v5024_v49 = vpop.f32.mrb[24].mxu0 }
 0x10e   :  { %6975 = vst [vmem:[#allocation30_spill] sm:$0xff] %v5024_v49  ;;  %4394 = vrot.lane.b32.xlu1 %v4393_v30, %s4685_s0  ;;  %v338_v9 = vpack.c.bf16 %v5024_v49, %v5024_v49  ;;  %v1244_v29 = vrot.slane %v5024_v49, 2  ;;  %v3935_v32 = vpop.f32.mrb[25].mxu0 }
 0x10f   :  { %v186_v0 = vpop.f32.mrb[26].mxu0 }
 0x110   :  { %514 = vrot.lane.b32.xlu0 %v338_v9, %s4686_s1  ;;  %v1245_v1 = vsel %vm1232_vm3, %v1242_v48, %v1244_v29  ;;  %v3936_v63 = vpop.f32.mrb[27].mxu0  ;;  %v6976_v48 = vmov 0.0  }
 0x111   :  { %v4398_v17 = vpack.i.bf16 %v1245_v1, %v1243_v55 }
 0x112   :  { %512 = vrot.lane.b32.xlu1 %v337_v31, %s4686_s1 }
 0x114   :  { %4399 = vrot.lane.b32.xlu0 %v4398_v17, %s4685_s0 }
 0x116   :  { %1258 = vrot.lane.b32.xlu1 %v1244_v29, %s4685_s0 }
 0x154   :  { %v4375_v40 = vpop.permute.xlu0 %4374  ;;  %v1663_v14 = vpop.permute.xlu1 %1662 }
 0x155   :  { %v4377_v30 = vunpack.i.h.bf16 %v4375_v40  ;;  %v4376_v7 = vunpack.i.l.bf16 %v4375_v40 }
 0x157   :  { %v4284_v43 = vpack.c.bf16 %v4377_v30, %v4376_v7 }
 0x158   :  { %v503_v32 = vpop.permute.xlu0 %502 }
 0x159   :  { %v533_v0 = vsel %vm516_vm4, %v503_v32, 0  ;;  %4285 = vmatprep.subr.bf16.mxu1 %v4284_v43 }
 0x15a   :  { %3962 = vmatpush3.bf16.xpose.msra.mxu0 %v533_v0  ;;  %4287 = vmatpush3.bf16.msra.mxu1 %v4284_v43 }
 0x15b   :  { %3963 = vmatprep.subr.bf16.mxu0 %v6976_v48 }
 0x15c   :  { %v4380_v55 = vpop.permute.xlu1 %4379  ;;  %v505_v1 = vpop.permute.xlu0 %504 }
 0x15d   :  { %v4382_v31 = vunpack.i.h.bf16 %v4380_v55  ;;  %v4381_v9 = vunpack.i.l.bf16 %v4380_v55  ;;  %v536_v29 = vsel %vm516_vm4, %v505_v1, 0 }
 0x15f   :  { %v4288_v63 = vpack.c.bf16 %v4382_v31, %v4381_v9 }
 0x160   :  { %v1665_v55 = vpop.permute.xlu0 %1664 }
 0x161   :  { %4289 = vmatprep.subr.bf16.mxu1 %v4288_v63 }
 0x162   :  { %3964 = vmatpush3.bf16.xpose.msra.mxu0 %v536_v29  ;;  %4291 = vmatpush3.bf16.msra.mxu1 %v4288_v63 }
 0x163   :  { %3965 = vmatprep.subr.bf16.mxu0 %v6976_v48 }
 0x164   :  { %v4385_v7 = vpop.permute.xlu1 %4384 }
 0x165   :  { %v4387_v17 = vunpack.i.h.bf16 %v4385_v7  ;;  %v4386_v40 = vunpack.i.l.bf16 %v4385_v7 }
 0x167   :  { %v4292_v30 = vpack.c.bf16 %v4387_v17, %v4386_v40 }
 0x168   :  { %v507_v32 = vpop.permute.xlu1 %506 }
 0x169   :  { %v539_v43 = vsel %vm516_vm4, %v507_v32, 0  ;;  %4293 = vmatprep.subr.bf16.mxu1 %v4292_v30 }
 0x16a   :  { %3966 = vmatpush3.bf16.xpose.msra.mxu0 %v539_v43  ;;  %4295 = vmatpush3.bf16.msra.mxu1 %v4292_v30 }
 0x16b   :  { %3967 = vmatprep.subr.bf16.mxu0 %v6976_v48 }
 0x16c   :  { %v1667_v0 = vpop.permute.xlu1 %1666  ;;  %v1669_v9 = vpop.permute.xlu0 %1668 }
 0x170   :  { %v758_v31 = vpop.permute.xlu1 %757 }
 0x171   :  { %4007 = vmatprep.subr.msk.mxu1 %vm795_vm5, %v758_v31 }
 0x172   :  { %4008 = vmatpush3.msk.msra.mxu1 %vm795_vm5, %v758_v31 }
 0x174   :  { %v509_v1 = vpop.permute.xlu1 %508  ;;  %v511_v40 = vpop.permute.xlu0 %510 }
 0x175   :  { %v542_v63 = vsel %vm516_vm4, %v509_v1, 0  ;;  %v545_v43 = vsel %vm516_vm4, %v511_v40, 0  ;;  %v6977_v40 = vpack.c.bf16 %v4823_v26, %v4808_v18  ;;  %v1700_v18 = vsel %vm516_vm4, %v1667_v0, 0 }
 0x176   :  { %3968 = vmatpush3.bf16.xpose.msra.mxu0 %v542_v63  ;;  %v6979_v26 = vpack.c.bf16 %v4887_v60, %v4878_v54  ;;  %v6981_v60 = vpack.c.bf16 %v4979_v10, %v4963_v3  ;;  %v6984_v10 = vpack.c.bf16 %v4900_v5, %v4897_v4 }
 0x177   :  { %3969 = vmatprep.subr.bf16.mxu0 %v6976_v48 }
 0x178   :  { %v4390_v29 = vpop.permute.xlu1 %4389 }
 0x179   :  { %v4392_v7 = vunpack.i.h.bf16 %v4390_v29  ;;  %v4391_v17 = vunpack.i.l.bf16 %v4390_v29 }
 0x17b   :  { %v5045_v30 = vpack.c.bf16 %v4392_v7, %v4391_v17  ;;  %v1694_v17 = vsel %vm516_vm4, %v1663_v14, 0 }
 0x17c   :  { %v1671_v32 = vpop.permute.xlu1 %1670 }
 0x17d   :  { %4297 = vmatprep.subr.bf16.mxu1 %v5045_v30  ;;  %v1706_v54 = vsel %vm516_vm4, %v1671_v32, 0 }
 0x17e   :  { %3970 = vmatpush3.bf16.xpose.msra.mxu0 %v545_v43  ;;  %v1697_v43 = vsel %vm516_vm4, %v1665_v55, 0 }
 0x17f   :  { %3971 = vmatprep.subr.bf16.mxu0 %v6976_v48 }
 0x180   :  { %v5050_v31 = vpop.permute.xlu1 %4394 }
 0x182   :  { %v515_v29 = vpop.permute.xlu0 %514 }
 0x183   :  { %v551_v7 = vsel %vm516_vm4, %v515_v29, 0 }
 0x184   :  { %v513_v1 = vpop.permute.xlu1 %512 }
 0x185   :  { %v548_v63 = vsel %vm516_vm4, %v513_v1, 0  ;;  %v6978_v1 = vpack.c.bf16 %v4856_v45, %v4845_v38  ;;  %v1703_v38 = vsel %vm516_vm4, %v1669_v9, 0  ;;  %v6980_v45 = vpack.c.bf16 %v4934_v36, %v4922_v19 }
 0x186   :  { %3972 = vmatpush3.bf16.xpose.msra.mxu0 %v548_v63  ;;  %v6982_v19 = vpack.c.bf16 %v4818_v23, %v4811_v20  ;;  %v6983_v36 = vpack.c.bf16 %v4862_v47, %v4859_v46  ;;  %v6985_v20 = vpack.c.bf16 %v4943_v51, %v4930_v28  ;;  %v6986_v23 = vpack.c.bf16 %v4987_v50, %v4974_v41 }
 0x187   :  { %3973 = vmatprep.subr.bf16.mxu0 %v6976_v48  ;;  %v6987_v46 = vpack.c.bf16 %v5018_v44, %v5009_v42  ;;  %v324_v47 = vmul.f32 0.5, %v5024_v49 }
 0x189   :  { %v331_v4 = vpack.c.bf16 %v324_v47, %v324_v47 }
 0x18e   :  { %3974 = vmatpush3.bf16.xpose.msra.mxu0 %v551_v7 }
 0x18f   :  { %4076 = vmatprep.subr.bf16.mxu0 %v6976_v48 }
 0x195   :  { %3976 = vmatmul.mubr.msk.bf16.vlgmr.msra.gmra.mrb[28].mxu0 %vm516_vm4, %v6977_v40 }
 0x196   :  { %4077 = vmatpush3.bf16.xpose.msra.mxu0 %v1694_v17  ;;  %3979 = vmatprep.mubr.msk.bf16.mxu0 %vm4684_vm0, %v6976_v48 }
 0x197   :  { %4078 = vmatprep.subr.bf16.mxu0 %v6976_v48 }
 0x19d   :  { %3980 = vmatmul.mubr.msk.bf16.gmra.mrb[32].mxu0 %vm516_vm4, %v6978_v1 }
 0x19e   :  { %4079 = vmatpush3.bf16.xpose.msra.mxu0 %v1697_v43  ;;  %3983 = vmatprep.mubr.msk.bf16.mxu0 %vm4684_vm0, %v6976_v48 }
 0x19f   :  { %4080 = vmatprep.subr.bf16.mxu0 %v6976_v48 }
 0x1a5   :  { %3984 = vmatmul.mubr.msk.bf16.gmra.mrb[36].mxu0 %vm516_vm4, %v6979_v26 }
 0x1a6   :  { %4081 = vmatpush3.bf16.xpose.msra.mxu0 %v1700_v18  ;;  %3987 = vmatprep.mubr.msk.bf16.mxu0 %vm4684_vm0, %v6976_v48 }
 0x1a7   :  { %4082 = vmatprep.subr.bf16.mxu0 %v6976_v48 }
 0x1ad   :  { %3988 = vmatmul.mubr.msk.bf16.gmra.mrb[40].mxu0 %vm516_vm4, %v6980_v45 }
 0x1ae   :  { %4083 = vmatpush3.bf16.xpose.msra.mxu0 %v1703_v38  ;;  %3991 = vmatprep.mubr.msk.bf16.mxu0 %vm4684_vm0, %v6976_v48 }
 0x1af   :  { %4084 = vmatprep.subr.bf16.mxu0 %v6976_v48 }
 0x1b5   :  { %3992 = vmatmul.mubr.msk.bf16.gmra.mrb[44].mxu0 %vm516_vm4, %v6981_v60 }
 0x1b6   :  { %4085 = vmatpush3.bf16.xpose.msra.mxu0 %v1706_v54  ;;  %4086 = vmatprep.mubr.msk.bf16.mxu0 %vm4684_vm0, %v6976_v48 }
 0x1bd   :  { %4087 = vmatmul.mubr.msk.bf16.vlgmr.msra.gmra.mrb[48].mxu0 %vm516_vm4, %v6982_v19 }
 0x1be   :  { %4090 = vmatprep.mubr.msk.bf16.mxu0 %vm4684_vm0, %v6976_v48 }
 0x1c5   :  { %4091 = vmatmul.mubr.msk.bf16.gmra.mrb[52].mxu0 %vm516_vm4, %v6983_v36 }
 0x1c6   :  { %4094 = vmatprep.mubr.msk.bf16.mxu0 %vm4684_vm0, %v6976_v48 }
 0x1cd   :  { %4095 = vmatmul.mubr.msk.bf16.gmra.mrb[56].mxu0 %vm516_vm4, %v6984_v10 }
 0x1ce   :  { %4098 = vmatprep.mubr.msk.bf16.mxu0 %vm4684_vm0, %v6976_v48 }
 0x1d5   :  { %4099 = vmatmul.mubr.msk.bf16.gmra.mrb[60].mxu0 %vm516_vm4, %v6985_v20 }
 0x1d6   :  { %4102 = vmatprep.mubr.msk.bf16.mxu0 %vm4684_vm0, %v6976_v48 }
 0x1dd   :  { %4103 = vmatmul.mubr.msk.bf16.gmra.mrb[64].mxu0 %vm516_vm4, %v6986_v23 }
 0x1de   :  { %4106 = vmatprep.mubr.msk.bf16.mxu0 %vm4684_vm0, %v6976_v48 }
 0x1e5   :  { %4107 = vmatmul.mubr.msk.bf16.gmra.mrb[68].mxu0 %vm516_vm4, %v6987_v46 }
 0x1e6   :  { %4110 = vmatprep.mubr.msk.bf16.mxu0 %vm4684_vm0, %v6976_v48 }
 0x1ed   :  { %4111 = vmatmul.mubr.msk.bf16.gmra.mrb[72].mxu0 %vm516_vm4, %v331_v4 }
 0x1ee   :  { %4216 = vmatprep.mubr.msk.f32.mxu0 %vm4684_vm0, %v6976_v48 }
 0x268   :  { %v5135_v50 = vpop.f32.mrb[28].mxu0 }
 0x269   :  { %v3977_v5 = vpop.f32.mrb[29].mxu0  ;;  %v1045_v28 = vsel %vm1044_vm6, %v5135_v50, -inf  ;;  %v627_v51 = vsel %vm626_vm7, %v5135_v50, -inf }
 0x26a   :  { %1046 = vmax.xlane.f32.xlu1 %v1045_v28  ;;  %628 = vmax.xlane.f32.xlu0 %v627_v51  ;;  %v5141_v3 = vpop.f32.mrb[30].mxu0 }
 0x26b   :  { %v3978_v41 = vpop.f32.mrb[31].mxu0  ;;  %v1048_v42 = vsel %vm1044_vm6, %v5141_v3, -inf  ;;  %v630_v14 = vsel %vm626_vm7, %v5141_v3, -inf }
 0x26e   :  { %1049 = vmax.xlane.f32.xlu0 %v1048_v42  ;;  %631 = vmax.xlane.f32.xlu1 %v630_v14 }
 0x270   :  { %v5147_v44 = vpop.f32.mrb[32].mxu0 }
 0x271   :  { %v3981_v0 = vpop.f32.mrb[33].mxu0  ;;  %v1051_v55 = vsel %vm1044_vm6, %v5147_v44, -inf  ;;  %v633_v9 = vsel %vm626_vm7, %v5147_v44, -inf }
 0x272   :  { %1052 = vmax.xlane.f32.xlu0 %v1051_v55  ;;  %634 = vmax.xlane.f32.xlu1 %v633_v9  ;;  %v5153_v32 = vpop.f32.mrb[34].mxu0 }
 0x273   :  { %v3982_v63 = vpop.f32.mrb[35].mxu0  ;;  %v1054_v29 = vsel %vm1044_vm6, %v5153_v32, -inf  ;;  %v636_v7 = vsel %vm626_vm7, %v5153_v32, -inf }
 0x276   :  { %1055 = vmax.xlane.f32.xlu1 %v1054_v29  ;;  %637 = vmax.xlane.f32.xlu0 %v636_v7 }
 0x278   :  { %v5159_v17 = vpop.f32.mrb[36].mxu0 }
 0x279   :  { %v3985_v40 = vpop.f32.mrb[37].mxu0  ;;  %v1057_v43 = vsel %vm1044_vm6, %v5159_v17, -inf  ;;  %v639_v1 = vsel %vm626_vm7, %v5159_v17, -inf }
 0x27a   :  { %1058 = vmax.xlane.f32.xlu0 %v1057_v43  ;;  %640 = vmax.xlane.f32.xlu1 %v639_v1  ;;  %v5165_v18 = vpop.f32.mrb[38].mxu0 }
 0x27b   :  { %v3986_v26 = vpop.f32.mrb[39].mxu0  ;;  %v1060_v38 = vsel %vm1044_vm6, %v5165_v18, -inf  ;;  %v642_v60 = vsel %vm626_vm7, %v5165_v18, -inf }
 0x27e   :  { %1061 = vmax.xlane.f32.xlu1 %v1060_v38 }
 0x280   :  { %v5169_v45 = vpop.f32.mrb[40].mxu0 }
 0x281   :  { %v3989_v54 = vpop.f32.mrb[41].mxu0  ;;  %v1063_v19 = vsel %vm1044_vm6, %v5169_v45, -inf  ;;  %v645_v20 = vsel %vm626_vm7, %v5169_v45, -inf }
 0x282   :  { %643 = vmax.xlane.f32.xlu1 %v642_v60  ;;  %1064 = vmax.xlane.f32.xlu0 %v1063_v19  ;;  %v5175_v36 = vpop.f32.mrb[42].mxu0 }
 0x283   :  { %v3990_v10 = vpop.f32.mrb[43].mxu0  ;;  %v648_v23 = vsel %vm626_vm7, %v5175_v36, -inf  ;;  %v1066_v4 = vsel %vm1044_vm6, %v5175_v36, -inf }
 0x286   :  { %646 = vmax.xlane.f32.xlu1 %v645_v20  ;;  %649 = vmax.xlane.f32.xlu0 %v648_v23 }
 0x288   :  { %v5181_v46 = vpop.f32.mrb[44].mxu0 }
 0x289   :  { %v3993_v47 = vpop.f32.mrb[45].mxu0  ;;  %v1069_v5 = vsel %vm1044_vm6, %v5181_v46, -inf  ;;  %v651_v41 = vsel %vm626_vm7, %v5181_v46, -inf }
 0x28a   :  { %1067 = vmax.xlane.f32.xlu1 %v1066_v4  ;;  %1070 = vmax.xlane.f32.xlu0 %v1069_v5  ;;  %v5187_v28 = vpop.f32.mrb[46].mxu0 }
 0x28b   :  { %v3994_v51 = vpop.f32.mrb[47].mxu0  ;;  %v1073_v0 = vsel %vm1072_vm8, %v5187_v28, -inf  ;;  %v655_v29 = vsel %vm654_vm10, %v5187_v28, -inf }
 0x28e   :  { %652 = vmax.xlane.f32.xlu1 %v651_v41 }
 0x290   :  { %v5191_v42 = vpop.f32.mrb[48].mxu0 }
 0x291   :  { %v4088_v14 = vpop.f32.mrb[49].mxu0  ;;  %v2299_v55 = vsel %vm2298_vm9, %v5191_v42, -inf  ;;  %v1797_v7 = vsel %vm1796_vm11, %v5191_v42, -inf  ;;  %v2884_v1 = vsel %vm2883_vm12, %v5191_v42, -inf }
 0x292   :  { %1074 = vmax.xlane.f32.xlu1 %v1073_v0  ;;  %2300 = vmax.xlane.f32.xlu0 %v2299_v55  ;;  %v5196_v9 = vpop.f32.mrb[50].mxu0 }
 0x293   :  { %v4089_v63 = vpop.f32.mrb[51].mxu0  ;;  %v2302_v26 = vsel %vm2298_vm9, %v5196_v9, -inf  ;;  %v2887_v60 = vsel %vm2883_vm12, %v5196_v9, -inf  ;;  %v1800_v19 = vsel %vm1796_vm11, %v5196_v9, -inf }
 0x296   :  { %656 = vmax.xlane.f32.xlu1 %v655_v29  ;;  %1798 = vmax.xlane.f32.xlu0 %v1797_v7 }
 0x298   :  { %v5202_v40 = vpop.f32.mrb[52].mxu0 }
 0x299   :  { %v4092_v43 = vpop.f32.mrb[53].mxu0  ;;  %v2890_v23 = vsel %vm2883_vm12, %v5202_v40, -inf  ;;  %v2305_v47 = vsel %vm2298_vm9, %v5202_v40, -inf  ;;  %v1803_v51 = vsel %vm1796_vm11, %v5202_v40, -inf }
 0x29a   :  { %2885 = vmax.xlane.f32.xlu1 %v2884_v1  ;;  %2303 = vmax.xlane.f32.xlu0 %v2302_v26  ;;  %v5208_v38 = vpop.f32.mrb[54].mxu0 }
 0x29b   :  { %v4093_v54 = vpop.f32.mrb[55].mxu0  ;;  %v2893_v41 = vsel %vm2883_vm12, %v5208_v38, -inf  ;;  %v2308_v55 = vsel %vm2298_vm9, %v5208_v38, -inf  ;;  %v1806_v63 = vsel %vm1796_vm11, %v5208_v38, -inf }
 0x29e   :  { %2888 = vmax.xlane.f32.xlu0 %v2887_v60  ;;  %1801 = vmax.xlane.f32.xlu1 %v1800_v19 }
 0x2a0   :  { %v5214_v10 = vpop.f32.mrb[56].mxu0 }
 0x2a1   :  { %v4096_v20 = vpop.f32.mrb[57].mxu0  ;;  %v2896_v43 = vsel %vm2883_vm12, %v5214_v10, -inf  ;;  %v2311_v1 = vsel %vm2298_vm9, %v5214_v10, -inf  ;;  %v1809_v60 = vsel %vm1796_vm11, %v5214_v10, -inf }
 0x2a2   :  { %2891 = vmax.xlane.f32.xlu1 %v2890_v23  ;;  %2306 = vmax.xlane.f32.xlu0 %v2305_v47  ;;  %v5220_v4 = vpop.f32.mrb[58].mxu0 }
 0x2a3   :  { %v4097_v5 = vpop.f32.mrb[59].mxu0  ;;  %v2899_v19 = vsel %vm2883_vm12, %v5220_v4, -inf  ;;  %v2314_v47 = vsel %vm2298_vm9, %v5220_v4, -inf }
 0x2a4   :  { %v1812_v5 = vsel %vm1796_vm11, %v5220_v4, -inf }
 0x2a6   :  { %1804 = vmax.xlane.f32.xlu0 %v1803_v51  ;;  %2894 = vmax.xlane.f32.xlu1 %v2893_v41 }
 0x2a8   :  { %v5226_v14 = vpop.f32.mrb[60].mxu0 }
 0x2a9   :  { %v4100_v0 = vpop.f32.mrb[61].mxu0 }
 0x2aa   :  { %2309 = vmax.xlane.f32.xlu0 %v2308_v55  ;;  %1807 = vmax.xlane.f32.xlu1 %v1806_v63  ;;  %v5232_v29 = vpop.f32.mrb[62].mxu0  ;;  %v2902_v0 = vsel %vm2883_vm12, %v5226_v14, -inf  ;;  %v2317_v55 = vsel %vm2298_vm9, %v5226_v14, -inf }
 0x2ab   :  { %v4101_v7 = vpop.f32.mrb[63].mxu0 }
 0x2ae   :  { %2897 = vmax.xlane.f32.xlu1 %v2896_v43  ;;  %2312 = vmax.xlane.f32.xlu0 %v2311_v1 }
 0x2b0   :  { %v5238_v26 = vpop.f32.mrb[64].mxu0 }
 0x2b1   :  { %v4104_v54 = vpop.f32.mrb[65].mxu0 }
 0x2b2   :  { %1810 = vmax.xlane.f32.xlu0 %v1809_v60  ;;  %2900 = vmax.xlane.f32.xlu1 %v2899_v19  ;;  %v5244_v20 = vpop.f32.mrb[66].mxu0  ;;  %v1815_v54 = vsel %vm1796_vm11, %v5226_v14, -inf  ;;  %v2905_v60 = vsel %vm2883_vm12, %v5232_v29, -inf }
 0x2b3   :  { %v4105_v23 = vpop.f32.mrb[67].mxu0 }
 0x2b6   :  { %2315 = vmax.xlane.f32.xlu0 %v2314_v47  ;;  %1813 = vmax.xlane.f32.xlu1 %v1812_v5  ;;  %v2320_v47 = vsel %vm2298_vm9, %v5232_v29, -inf  ;;  %v1818_v5 = vsel %vm1796_vm11, %v5232_v29, -inf }
 0x2b8   :  { %v5250_v51 = vpop.f32.mrb[68].mxu0 }
 0x2b9   :  { %v4108_v41 = vpop.f32.mrb[69].mxu0  ;;  %v2329_v63 = vsel %vm2298_vm9, %v5250_v51, -inf }
 0x2ba   :  { %2903 = vmax.xlane.f32.xlu1 %v2902_v0  ;;  %2318 = vmax.xlane.f32.xlu0 %v2317_v55  ;;  %v5258_v7 = vpop.f32.mrb[70].mxu0  ;;  %v2908_v55 = vsel %vm2883_vm12, %v5238_v26, -inf }
 0x2bb   :  { %v4109_v43 = vpop.f32.mrb[71].mxu0  ;;  %v2332_v1 = vsel %vm2298_vm9, %v5258_v7, -inf }
 0x2bc   :  { %v2323_v43 = vsel %vm2298_vm9, %v5238_v26, -inf }
 0x2be   :  { %1816 = vmax.xlane.f32.xlu0 %v1815_v54  ;;  %2906 = vmax.xlane.f32.xlu1 %v2905_v60  ;;  %v1821_v54 = vsel %vm1796_vm11, %v5238_v26, -inf  ;;  %v1824_v60 = vsel %vm1796_vm11, %v5244_v20, -inf }
 0x2c0   :  { %v5266_v19 = vpop.f32.mrb[72].mxu0 }
 0x2c1   :  { %v4112_v23 = vpop.f32.mrb[73].mxu0 }
 0x2c2   :  { %2321 = vmax.xlane.f32.xlu0 %v2320_v47  ;;  %1819 = vmax.xlane.f32.xlu1 %v1818_v5  ;;  %v1793_v41 = vpop.f32.mrb[74].mxu0  ;;  %v2326_v23 = vsel %vm2298_vm9, %v5244_v20, -inf  ;;  %v2914_v47 = vsel %vm2883_vm12, %v5250_v51, -inf  ;;  %v2911_v5 = vsel %vm2883_vm12, %v5244_v20, -inf }
 0x2c3   :  { %v4113_v0 = vpop.f32.mrb[75].mxu0  ;;  %v2917_v41 = vsel %vm2883_vm12, %v5258_v7, -inf }
 0x2c4   :  { %v2921_v0 = vsel %vm2920_vm13, %v5266_v19, -inf }
 0x2c6   :  { %2909 = vmax.xlane.f32.xlu1 %v2908_v55  ;;  %2324 = vmax.xlane.f32.xlu0 %v2323_v43  ;;  %v1827_v55 = vsel %vm1796_vm11, %v5250_v51, -inf  ;;  %v2336_v43 = vsel %vm2335_vm14, %v5266_v19, -inf }
 0x2ca   :  { %1822 = vmax.xlane.f32.xlu0 %v1821_v54  ;;  %1825 = vmax.xlane.f32.xlu1 %v1824_v60  ;;  %v5292_v54 = vpop.permute.xlu0 %4399  ;;  %v5294_v60 = vpop.permute.xlu1 %1258 }
 0x2ce   :  { %2327 = vmax.xlane.f32.xlu0 %v2326_v23  ;;  %2915 = vmax.xlane.f32.xlu1 %v2914_v47 }
 0x2d2   :  { %2912 = vmax.xlane.f32.xlu0 %v2911_v5  ;;  %2918 = vmax.xlane.f32.xlu1 %v2917_v41 }
 0x2d6   :  { %2330 = vmax.xlane.f32.xlu0 %v2329_v63  ;;  %2922 = vmax.xlane.f32.xlu1 %v2921_v0 }
 0x2da   :  { %1828 = vmax.xlane.f32.xlu0 %v1827_v55 }
 0x2de   :  { %2333 = vmax.xlane.f32.xlu0 %v2332_v1 }
 0x2e2   :  { %2337 = vmax.xlane.f32.xlu0 %v2336_v43 }
 0x2f7   :  { %v1047_v23 = vpop.xlane.xlu1 %1046  ;;  %v629_v47 = vpop.xlane.xlu0 %628 }
 0x2f8   :  { %v1076_v5 = vsub.f32 %v5135_v50, %v1047_v23 }
 0x2fa   :  { %v1086_v41 = vmul.f32 1.442695, %v1076_v5 }
 0x2fb   :  { %v1050_v63 = vpop.xlane.xlu0 %1049  ;;  %v632_v5 = vpop.xlane.xlu1 %631 }
 0x2fc   :  { %4447 = vpow2.f32 %v1086_v41  ;;  %v1077_v0 = vsub.f32 %v5141_v3, %v1050_v63  ;;  %v659_v41 = vsub.f32 %v5141_v3, %v632_v5 }
 0x2fe   :  { %v1088_v49 = vmul.f32 1.442695, %v1077_v0  ;;  %v670_v63 = vmul.f32 1.442695, %v659_v41 }
 0x2ff   :  { %v1053_v55 = vpop.xlane.xlu0 %1052 }
 0x300   :  { %4449 = vpow2.f32 %v1088_v49  ;;  %v1078_v1 = vsub.f32 %v5147_v44, %v1053_v55  ;;  %v658_v49 = vsub.f32 %v5135_v50, %v629_v47  ;;  %v635_v55 = vpop.xlane.xlu1 %634 }
 0x302   :  { %v1090_v27 = vmul.f32 1.442695, %v1078_v1  ;;  %v660_v1 = vsub.f32 %v5147_v44, %v635_v55 }
 0x303   :  { %v638_v0 = vpop.xlane.xlu0 %637 }
 0x304   :  { %4451 = vpow2.f32 %v1090_v27  ;;  %v668_v27 = vmul.f32 1.442695, %v658_v49  ;;  %v672_v11 = vmul.f32 1.442695, %v660_v1  ;;  %v1056_v52 = vpop.xlane.xlu1 %1055 }
 0x305   :  { %v1079_v44 = vsub.f32 %v5153_v32, %v1056_v52 }
 0x306   :  { %v5299_v43 = vpop.eup %4447  ;;  %4453 = vpow2.f32 %v668_v27 }
 0x307   :  { %6988 = vst [vmem:[#allocation31_spill] sm:$0xff] %v5299_v43  ;;  %1116 = vrot.lane.b32.xlu0 %v5299_v43, %s4687_s16  ;;  %4455 = vpow2.f32 %v670_v63  ;;  %v1059_v24 = vpop.xlane.xlu0 %1058 }
 0x308   :  { %4457 = vpow2.f32 %v672_v11  ;;  %v641_v3 = vpop.xlane.xlu1 %640  ;;  %v1092_v11 = vmul.f32 1.442695, %v1079_v44  ;;  %v1080_v55 = vsub.f32 %v5159_v17, %v1059_v24 }
 0x309   :  { %v662_v6 = vsub.f32 %v5159_v17, %v641_v3 }
 0x30a   :  { %v5303_v2 = vpop.eup %4449  ;;  %4459 = vpow2.f32 %v1092_v11 }
 0x30b   :  { %6989 = vst [vmem:[#allocation32_spill] sm:$0xff] %v5303_v2  ;;  %1118 = vrot.lane.b32.xlu1 %v5303_v2, %s4687_s16  ;;  %v676_v35 = vmul.f32 1.442695, %v662_v6 }
 0x30c   :  { %v1062_v27 = vpop.xlane.xlu1 %1061 }
 0x30e   :  { %v5307_v23 = vpop.eup %4451 }
 0x30f   :  { %6990 = vst [vmem:[#allocation33_spill] sm:$0xff] %v5307_v23  ;;  %1120 = vrot.lane.b32.xlu1 %v5307_v23, %s4687_s16  ;;  %v1065_v37 = vpop.xlane.xlu0 %1064 }
 0x310   :  { %v5314_v58 = vpop.eup %4453  ;;  %v5334_v33 = vpop.xlane.xlu1 %643  ;;  %v1082_v17 = vsub.f32 %v5169_v45, %v1065_v37 }
 0x311   :  { %v688_v50 = vsel %vm626_vm7, %v5314_v58, 0.0  ;;  %v5318_v47 = vpop.eup %4455 }
 0x312   :  { %v691_v5 = vsel %vm626_vm7, %v5318_v47, 0.0  ;;  %v5325_v41 = vpop.eup %4457  ;;  %v1098_v48 = vmul.f32 1.442695, %v1082_v17 }
 0x313   :  { %v5320_v49 = vpop.xlane.xlu0 %649  ;;  %v694_v1 = vsel %vm626_vm7, %v5325_v41, 0.0 }
 0x314   :  { %v647_v21 = vpop.xlane.xlu1 %646  ;;  %v5338_v15 = vpop.eup %4459 }
 0x315   :  { %6992 = vst [vmem:[#allocation35_spill] sm:$0xff] %v5338_v15  ;;  %v664_v17 = vsub.f32 %v5169_v45, %v647_v21 }
 0x317   :  { %v5327_v63 = vpop.xlane.xlu0 %1070 }
 0x318   :  { %v5342_v44 = vpop.xlane.xlu1 %1067 }
 0x326   :  { %689 = vadd.xlane.f32.xlu0 %v688_v50  ;;  %v5332_v50 = vpop.xlane.xlu0 %2300 }
 0x32a   :  { %692 = vadd.xlane.f32.xlu0 %v691_v5  ;;  %v1094_v5 = vmul.f32 1.442695, %v1080_v55  ;;  %v5336_v52 = vpop.xlane.xlu0 %1798  ;;  %v653_v55 = vpop.xlane.xlu1 %652 }
 0x32b   :  { %6991 = vst [vmem:[#allocation34_spill] sm:$0xff] %v5336_v52  ;;  %v666_v23 = vsub.f32 %v5181_v46, %v653_v55 }
 0x32c   :  { %4461 = vpow2.f32 %v1094_v5 }
 0x32e   :  { %v5340_v56 = vpop.xlane.xlu0 %2303  ;;  %v5355_v62 = vpop.xlane.xlu1 %1074 }
 0x332   :  { %v5350_v11 = vpop.xlane.xlu0 %2888  ;;  %v5360_v8 = vpop.xlane.xlu1 %656 }
 0x333   :  { %695 = vadd.xlane.f32.xlu1 %v694_v1  ;;  %v661_v1 = vsub.f32 %v5153_v32, %v638_v0 }
 0x335   :  { %v674_v57 = vmul.f32 1.442695, %v661_v1 }
 0x336   :  { %v5346_v24 = vpop.eup %4461  ;;  %v5353_v5 = vpop.xlane.xlu0 %2306 }
 0x337   :  { %6993 = vst [vmem:[#allocation36_spill] sm:$0xff] %v5346_v24  ;;  %4463 = vpow2.f32 %v674_v57  ;;  %v5364_v25 = vpop.xlane.xlu1 %2885 }
 0x338   :  { %4465 = vpow2.f32 %v676_v35  ;;  %v1081_v35 = vsub.f32 %v5165_v18, %v1062_v27 }
 0x339   :  { %4467 = vpow2.f32 %v1098_v48 }
 0x33a   :  { %v5357_v13 = vpop.xlane.xlu0 %1804 }
 0x33b   :  { %6994 = vst [vmem:[#allocation37_spill] sm:$0xff] %v5357_v13  ;;  %v5370_v0 = vpop.xlane.xlu1 %1801 }
 0x33c   :  { %6995 = vst [vmem:[#allocation38_spill] sm:$0xff] %v5370_v0 }
 0x33e   :  { %v5362_v12 = vpop.xlane.xlu0 %2309 }
 0x33f   :  { %v5379_v1 = vpop.xlane.xlu1 %2891 }
 0x340   :  { %1122 = vrot.lane.b32.xlu0 %v5338_v15, %s4687_s16  ;;  %v1096_v15 = vmul.f32 1.442695, %v1081_v35 }
 0x341   :  { %v5366_v59 = vpop.eup %4463 }
 0x342   :  { %v5368_v32 = vpop.xlane.xlu0 %2312  ;;  %v697_v57 = vsel %vm626_vm7, %v5366_v59, 0.0  ;;  %v5377_v6 = vpop.eup %4465  ;;  %4469 = vpow2.f32 %v1096_v15 }
 0x343   :  { %v700_v61 = vsel %vm626_vm7, %v5377_v6, 0.0  ;;  %v5392_v34 = vpop.eup %4467 }
 0x344   :  { %1124 = vrot.lane.b32.xlu1 %v5346_v24, %s4687_s16  ;;  %6998 = vst [vmem:[#allocation41_spill] sm:$0xff] %v5392_v34  ;;  %v680_v24 = vmul.f32 1.442695, %v664_v17 }
 0x346   :  { %v5375_v3 = vpop.xlane.xlu0 %1810  ;;  %4471 = vpow2.f32 %v680_v24 }
 0x347   :  { %6996 = vst [vmem:[#allocation39_spill] sm:$0xff] %v5375_v3  ;;  %v663_v3 = vsub.f32 %v5165_v18, %v5334_v33 }
 0x349   :  { %v678_v52 = vmul.f32 1.442695, %v663_v3 }
 0x34a   :  { %v5384_v53 = vpop.xlane.xlu0 %2315 }
 0x34e   :  { %v5388_v37 = vpop.xlane.xlu0 %2318 }
 0x352   :  { %v5394_v39 = vpop.xlane.xlu0 %1816 }
 0x353   :  { %6999 = vst [vmem:[#allocation42_spill] sm:$0xff] %v5394_v39 }
 0x356   :  { %v5404_v48 = vpop.xlane.xlu0 %2321 }
 0x35a   :  { %v5409_v35 = vpop.xlane.xlu0 %2324 }
 0x35e   :  { %v5416_v13 = vpop.xlane.xlu0 %1822 }
 0x35f   :  { %698 = vadd.xlane.f32.xlu0 %v697_v57  ;;  %v5386_v57 = vpop.xlane.xlu1 %2894  ;;  %7002 = vst [vmem:[#allocation45_spill] sm:$0xff] %v5416_v13  ;;  %v1085_v13 = vsub.f32 %v5187_v28, %v5355_v62 }
 0x362   :  { %v5420_v39 = vpop.xlane.xlu0 %2327 }
 0x363   :  { %v5390_v2 = vpop.xlane.xlu1 %1807 }
 0x364   :  { %6997 = vst [vmem:[#allocation40_spill] sm:$0xff] %v5390_v2 }
 0x366   :  { %v5426_v55 = vpop.xlane.xlu0 %2912 }
 0x367   :  { %v5398_v27 = vpop.xlane.xlu1 %2897 }
 0x368   :  { %701 = vadd.xlane.f32.xlu1 %v700_v61  ;;  %v5400_v61 = vpop.eup %4469 }
 0x369   :  { %7000 = vst [vmem:[#allocation43_spill] sm:$0xff] %v5400_v61  ;;  %v5424_v45 = vpop.eup %4471 }
 0x36a   :  { %v5438_v3 = vpop.xlane.xlu0 %2330 }
 0x36b   :  { %v5406_v15 = vpop.xlane.xlu1 %2900 }
 0x36e   :  { %v5448_v16 = vpop.xlane.xlu0 %1828 }
 0x36f   :  { %v5412_v43 = vpop.xlane.xlu1 %1813  ;;  %7005 = vst [vmem:[#allocation48_spill] sm:$0xff] %v5448_v16 }
 0x370   :  { %7001 = vst [vmem:[#allocation44_spill] sm:$0xff] %v5412_v43 }
 0x372   :  { %v5452_v22 = vpop.xlane.xlu0 %2333 }
 0x373   :  { %7007 = vst [vmem:[#allocation50_spill] sm:$0xff] %v5452_v22 }
 0x375   :  { %1128 = vrot.lane.b32.xlu0 %v5392_v34, %s4687_s16  ;;  %v684_v34 = vmul.f32 1.442695, %v666_v23  ;;  %v706_v23 = vsel %vm626_vm7, %v5424_v45, 0.0 }
 0x376   :  { %v5456_v2 = vpop.xlane.xlu0 %2337 }
 0x377   :  { %4473 = vpow2.f32 %v684_v34  ;;  %7009 = vst [vmem:[#allocation52_spill] sm:$0xff] %v5456_v2 }
 0x378   :  { %4475 = vpow2.f32 %v678_v52  ;;  %v1083_v52 = vsub.f32 %v5175_v36, %v5342_v44 }
 0x379   :  { %1126 = vrot.lane.b32.xlu1 %v5400_v61, %s4687_s16  ;;  %v5418_v61 = vpop.xlane.xlu1 %2903 }
 0x37d   :  { %v5422_v21 = vpop.xlane.xlu1 %2906 }
 0x381   :  { %v5430_v24 = vpop.eup %4473  ;;  %v5432_v33 = vpop.xlane.xlu1 %1819 }
 0x382   :  { %7003 = vst [vmem:[#allocation46_spill] sm:$0xff] %v5430_v24  ;;  %7004 = vst [vmem:[#allocation47_spill] sm:$0xff] %v5432_v33  ;;  %v712_v34 = vsel %vm626_vm7, %v5430_v24, 0.0  ;;  %v5436_v18 = vpop.eup %4475  ;;  %v1104_v33 = vmul.f32 1.442695, %v1085_v13  ;;  %v5468_v13 = vpop.permute.xlu0 %1116 }
 0x383   :  { %v703_v43 = vsel %vm626_vm7, %v5436_v18, 0.0 }
 0x385   :  { %v5442_v17 = vpop.xlane.xlu1 %2909 }
 0x394   :  { %707 = vadd.xlane.f32.xlu0 %v706_v23  ;;  %v1100_v23 = vmul.f32 1.442695, %v1083_v52 }
 0x396   :  { %4477 = vpow2.f32 %v1100_v23  ;;  %v667_v23 = vsub.f32 %v5187_v28, %v5360_v8 }
 0x397   :  { %4479 = vpow2.f32 %v1104_v33 }
 0x398   :  { %713 = vadd.xlane.f32.xlu0 %v712_v34  ;;  %v5450_v34 = vpop.xlane.xlu1 %1825  ;;  %v686_v16 = vmul.f32 1.442695, %v667_v23  ;;  %v2341_v23 = vsub.f32 %v5202_v40, %v5353_v5  ;;  %v2928_v5 = vsub.f32 %v5214_v10, %v5398_v27 }
 0x399   :  { %7006 = vst [vmem:[#allocation49_spill] sm:$0xff] %v5450_v34 }
 0x39c   :  { %v5454_v44 = vpop.xlane.xlu1 %2915 }
 0x39d   :  { %704 = vadd.xlane.f32.xlu1 %v703_v43  ;;  %7008 = vst [vmem:[#allocation51_spill] sm:$0xff] %v5454_v44 }
 0x3a0   :  { %v5458_v0 = vpop.eup %4477  ;;  %v5460_v62 = vpop.xlane.xlu1 %2918 }
 0x3a1   :  { %7010 = vst [vmem:[#allocation53_spill] sm:$0xff] %v5458_v0  ;;  %v5462_v24 = vpop.eup %4479 }
 0x3a2   :  { %7011 = vst [vmem:[#allocation54_spill] sm:$0xff] %v5462_v24 }
 0x3a4   :  { %v5470_v43 = vpop.xlane.xlu1 %2922 }
 0x3a5   :  { %7012 = vst [vmem:[#allocation55_spill] sm:$0xff] %v5470_v43 }
 0x3a8   :  { %v5472_v52 = vpop.permute.xlu1 %1118 }
 0x3a9   :  { %7013 = vst [vmem:[#allocation56_spill] sm:$0xff] %v5472_v52  ;;  %v4396_v52 = vunpack.i.l.bf16 %v5050_v31 }
 0x3ac   :  { %v5478_v2 = vpop.permute.xlu1 %1120 }
 0x3ae   :  { %1130 = vrot.lane.b32.xlu1 %v5458_v0, %s4687_s16  ;;  %1134 = vrot.lane.b32.xlu0 %v5462_v24, %s4687_s16  ;;  %v665_v0 = vsub.f32 %v5175_v36, %v5320_v49  ;;  %v4402_v36 = vunpack.i.h.bf16 %v5292_v54  ;;  %v4401_v49 = vunpack.i.l.bf16 %v5292_v54  ;;  %v2339_v54 = vsub.f32 %v5191_v42, %v5332_v50 }
 0x3af   :  { %v2340_v50 = vsub.f32 %v5196_v9, %v5340_v56  ;;  %v2927_v56 = vsub.f32 %v5208_v38, %v5386_v57  ;;  %v2344_v57 = vsub.f32 %v5220_v4, %v5384_v53 }
 0x3b0   :  { %v682_v43 = vmul.f32 1.442695, %v665_v0 }
 0x3b3   :  { %v690_v33 = vpop.xlane.xlu0 %689 }
 0x3b4   :  { %4481 = vrcp.f32 %v690_v33  ;;  %v4397_v33 = vunpack.i.h.bf16 %v5050_v31  ;;  %v4304_v31 = vpack.c.bf16 %v4402_v36, %v4401_v49 }
 0x3b7   :  { %v693_v34 = vpop.xlane.xlu0 %692 }
 0x3b8   :  { %4483 = vrcp.f32 %v693_v34 }
 0x3b9   :  { %4485 = vpow2.f32 %v686_v16  ;;  %v4300_v16 = vpack.c.bf16 %v4397_v33, %v4396_v52  ;;  %v2926_v33 = vsub.f32 %v5202_v40, %v5379_v1  ;;  %v2943_v1 = vmul.f32 1.442695, %v2927_v56 }
 0x3be   :  { %v4482_v24 = vpop.eup %4481 }
 0x3bf   :  { %v728_v22 = vmul.f32 %v4482_v24, %v5314_v58 }
 0x3c0   :  { %v696_v44 = vpop.xlane.xlu1 %695 }
 0x3c1   :  { %4487 = vrcp.f32 %v696_v44  ;;  %4009 = vmatprep.mubr.msk.f32.mxu1 %vm626_vm7, %v728_v22  ;;  %v2924_v44 = vsub.f32 %v5191_v42, %v5364_v25  ;;  %v2356_v25 = vmul.f32 1.442695, %v2341_v23 }
 0x3c2   :  { %v4484_v8 = vpop.eup %4483  ;;  %4489 = vpow2.f32 %v682_v43  ;;  %v2352_v43 = vmul.f32 1.442695, %v2339_v54 }
 0x3c3   :  { %v729_v28 = vmul.f32 %v4484_v8, %v5318_v47  ;;  %v5489_v58 = vpop.eup %4485  ;;  %v2941_v8 = vmul.f32 1.442695, %v2926_v33 }
 0x3c4   :  { %v715_v22 = vsel %vm654_vm10, %v5489_v58, 0.0 }
 0x3c5   :  { %4010 = vmatmul.mubr.msk.f32.vlgmr.msra.gmra.mrb[20].mxu1 %vm626_vm7, %v729_v28 }
 0x3c6   :  { %4299 = vmatpush3.bf16.msra.mxu1 %v5045_v30  ;;  %v1084_v30 = vsub.f32 %v5181_v46, %v5327_v63  ;;  %v2925_v46 = vsub.f32 %v5196_v9, %v5350_v11  ;;  %v2937_v63 = vmul.f32 1.442695, %v2924_v44  ;;  %v2342_v11 = vsub.f32 %v5208_v38, %v5362_v12  ;;  %v5563_v44 = vpop.permute.xlu1 %1124 }
 0x3c7   :  { %4301 = vmatprep.subr.bf16.mxu1 %v4300_v16  ;;  %v2945_v12 = vmul.f32 1.442695, %v2928_v5  ;;  %v2346_v5 = vsub.f32 %v5232_v29, %v5404_v48 }
 0x3c8   :  { %v2939_v52 = vmul.f32 1.442695, %v2925_v46  ;;  %v2358_v28 = vmul.f32 1.442695, %v2342_v11  ;;  %v2929_v11 = vsub.f32 %v5220_v4, %v5406_v15  ;;  %v2931_v15 = vsub.f32 %v5232_v29, %v5422_v21 }
 0x3c9   :  { %v2348_v21 = vsub.f32 %v5244_v20, %v5420_v39 }
 0x3ca   :  { %4303 = vmatpush3.bf16.msra.mxu1 %v4300_v16  ;;  %v2343_v16 = vsub.f32 %v5214_v10, %v5368_v32  ;;  %v2362_v32 = vmul.f32 1.442695, %v2344_v57  ;;  %v2947_v56 = vmul.f32 1.442695, %v2929_v11  ;;  %v2951_v57 = vmul.f32 1.442695, %v2931_v15 }
 0x3cb   :  { %v4488_v0 = vpop.eup %4487  ;;  %4305 = vmatprep.subr.bf16.mxu1 %v4304_v31 }
 0x3cc   :  { %v730_v47 = vmul.f32 %v4488_v0, %v5325_v41  ;;  %v5494_v24 = vpop.eup %4489  ;;  %v1102_v41 = vmul.f32 1.442695, %v1084_v30  ;;  %v2360_v0 = vmul.f32 1.442695, %v2343_v16  ;;  %v2366_v16 = vmul.f32 1.442695, %v2346_v5 }
 0x3cd   :  { %716 = vadd.xlane.f32.xlu0 %v715_v22  ;;  %v709_v34 = vsel %vm626_vm7, %v5494_v24, 0.0  ;;  %v5543_v22 = vpop.permute.xlu0 %1122 }
 0x3ce   :  { %4307 = vmatpush3.bf16.msra.mxu1 %v4304_v31  ;;  %4012 = vmatprep.mubr.msk.f32.mxu1 %vm626_vm7, %v730_v47  ;;  %4491 = vpow2.f32 %v1102_v41 }
 0x3cf   :  { %4036 = vmatprep.subr.msk.mxu1 %vm795_vm5, %v5294_v60  ;;  %4493 = vpow2.f32 %v2352_v43 }
 0x3d0   :  { %4495 = vpow2.f32 %v2937_v63 }
 0x3d1   :  { %4497 = vpow2.f32 %v2939_v52 }
 0x3d2   :  { %4037 = vmatpush3.msk.msra.mxu1 %vm795_vm5, %v5294_v60  ;;  %710 = vadd.xlane.f32.xlu1 %v709_v34  ;;  %v2354_v60 = vmul.f32 1.442695, %v2340_v50 }
 0x3d4   :  { %4499 = vpow2.f32 %v2354_v60 }
 0x3d5   :  { %4501 = vpow2.f32 %v2356_v25  ;;  %v1834_v25 = vsel %vm1833_vm15, %v5266_v19, -inf }
 0x3d6   :  { %4503 = vpow2.f32 %v2941_v8  ;;  %v2930_v8 = vsub.f32 %v5226_v14, %v5418_v61  ;;  %v2347_v61 = vsub.f32 %v5238_v26, %v5409_v35 }
 0x3d7   :  { %4505 = vpow2.f32 %v2358_v28 }
 0x3d8   :  { %v5523_v36 = vpop.eup %4491  ;;  %4507 = vpow2.f32 %v2943_v1  ;;  %v2949_v28 = vmul.f32 1.442695, %v2930_v8 }
 0x3d9   :  { %v5525_v49 = vpop.eup %4493  ;;  %4509 = vpow2.f32 %v2945_v12 }
 0x3da   :  { %v5535_v27 = vpop.eup %4495  ;;  %4511 = vpow2.f32 %v2360_v0  ;;  %v2368_v0 = vmul.f32 1.442695, %v2347_v61 }
 0x3db   :  { %v5537_v31 = vpop.eup %4497  ;;  %4513 = vpow2.f32 %v2362_v32 }
 0x3de   :  { %v5545_v47 = vpop.eup %4499 }
 0x3df   :  { %v5547_v30 = vpop.eup %4501 }
 0x3e0   :  { %v5553_v54 = vpop.eup %4503 }
 0x3e1   :  { %v5555_v34 = vpop.eup %4505 }
 0x3e2   :  { %v5561_v41 = vpop.eup %4507 }
 0x3e3   :  { %1132 = vrot.lane.b32.xlu1 %v5523_v36, %s4687_s16  ;;  %2391 = vrot.lane.b32.xlu0 %v5525_v49, %s4688_s17  ;;  %v5565_v43 = vpop.eup %4509 }
 0x3e4   :  { %v5571_v46 = vpop.eup %4511 }
 0x3e5   :  { %v5573_v50 = vpop.eup %4513 }
 0x3e6   :  { %7014 = vst [vmem:[#allocation57_spill] sm:$0xff] %v5573_v50 }
 0x3e7   :  { %2976 = vrot.lane.b32.xlu1 %v5535_v27, %s4687_s16  ;;  %2978 = vrot.lane.b32.xlu0 %v5537_v31, %s4687_s16 }
 0x3eb   :  { %2393 = vrot.lane.b32.xlu1 %v5545_v47, %s4688_s17  ;;  %2395 = vrot.lane.b32.xlu0 %v5547_v30, %s4688_s17 }
 0x3ec   :  { %v699_v53 = vpop.xlane.xlu0 %698 }
 0x3ed   :  { %4515 = vrcp.f32 %v699_v53 }
 0x3ef   :  { %2980 = vrot.lane.b32.xlu1 %v5553_v54, %s4687_s16  ;;  %2397 = vrot.lane.b32.xlu0 %v5555_v34, %s4688_s17 }
 0x3f0   :  { %v5599_v12 = vpop.permute.xlu0 %1128 }
 0x3f3   :  { %2984 = vrot.lane.b32.xlu1 %v5565_v43, %s4687_s16  ;;  %2982 = vrot.lane.b32.xlu0 %v5561_v41, %s4687_s16 }
 0x3f5   :  { %v702_v63 = vpop.xlane.xlu1 %701 }
 0x3f6   :  { %4517 = vrcp.f32 %v702_v63 }
 0x3f7   :  { %v4516_v52 = vpop.eup %4515  ;;  %2401 = vrot.lane.b32.xlu1 %v5573_v50, %s4688_s17  ;;  %2399 = vrot.lane.b32.xlu0 %v5571_v46, %s4688_s17  ;;  %4519 = vpow2.f32 %v2947_v56 }
 0x3f8   :  { %v731_v23 = vmul.f32 %v4516_v52, %v5366_v59  ;;  %v1830_v59 = vsel %vm1796_vm11, %v5258_v7, -inf  ;;  %4521 = vpow2.f32 %v2949_v28 }
 0x3f9   :  { %v1127_v48 = vpop.permute.xlu1 %1126 }
 0x3fa   :  { %4013 = vmatmul.mubr.msk.f32.gmra.mrb[22].mxu1 %vm626_vm7, %v731_v23  ;;  %v2933_v23 = vsub.f32 %v5244_v20, %v5426_v55 }
 0x400   :  { %v4518_v60 = vpop.eup %4517 }
 0x401   :  { %v732_v33 = vmul.f32 %v4518_v60, %v5377_v6  ;;  %v2345_v6 = vsub.f32 %v5226_v14, %v5388_v37  ;;  %v2932_v37 = vsub.f32 %v5238_v26, %v5442_v17  ;;  %v5605_v63 = vpop.eup %4519  ;;  %v2370_v17 = vmul.f32 1.442695, %v2348_v21 }
 0x402   :  { %v5607_v52 = vpop.eup %4521 }
 0x403   :  { %4015 = vmatprep.mubr.msk.f32.mxu1 %vm626_vm7, %v732_v33  ;;  %v2364_v1 = vmul.f32 1.442695, %v2345_v6  ;;  %v2953_v53 = vmul.f32 1.442695, %v2932_v37  ;;  %7015 = vst [vmem:[#allocation58_spill] sm:$0xff] %v5607_v52 }
 0x404   :  { %v2955_v33 = vmul.f32 1.442695, %v2933_v23 }
 0x405   :  { %4523 = vpow2.f32 %v2364_v1 }
 0x406   :  { %4525 = vpow2.f32 %v2366_v16  ;;  %v2935_v16 = vsub.f32 %v5258_v7, %v5460_v62 }
 0x407   :  { %4527 = vpow2.f32 %v2951_v57 }
 0x408   :  { %4529 = vpow2.f32 %v2368_v0  ;;  %v2959_v61 = vmul.f32 1.442695, %v2935_v16 }
 0x40f   :  { %v5615_v60 = vpop.eup %4523 }
 0x410   :  { %v5617_v39 = vpop.eup %4525 }
 0x411   :  { %7016 = vst [vmem:[#allocation59_spill] sm:$0xff] %v5617_v39  ;;  %v5625_v11 = vpop.eup %4527 }
 0x412   :  { %7017 = vst [vmem:[#allocation60_spill] sm:$0xff] %v5625_v11  ;;  %v5627_v8 = vpop.eup %4529 }
 0x413   :  { %7018 = vst [vmem:[#allocation61_spill] sm:$0xff] %v5627_v8 }
 0x416   :  { %1835 = vmax.xlane.f32.xlu0 %v1834_v25  ;;  %v2349_v25 = vsub.f32 %v5250_v51, %v5438_v3 }
 0x418   :  { %v2372_v56 = vmul.f32 1.442695, %v2349_v25  ;;  %v7025_v25 = vld [vmem:[#allocation46_spill] sm:$0xff] }
 0x41b   :  { %1831 = vmax.xlane.f32.xlu1 %v1830_v59 }
 0x421   :  { %v708_v32 = vpop.xlane.xlu0 %707 }
 0x422   :  { %4531 = vrcp.f32 %v708_v32 }
 0x425   :  { %v714_v15 = vpop.xlane.xlu0 %713 }
 0x429   :  { %v1135_v57 = vpop.permute.xlu0 %1134 }
 0x42a   :  { %v705_v35 = vpop.xlane.xlu1 %704 }
 0x42b   :  { %4533 = vrcp.f32 %v705_v35  ;;  %v7024_v35 = vld [vmem:[#allocation56_spill] sm:$0xff] }
 0x42c   :  { %2988 = vrot.lane.b32.xlu1 %v5607_v52, %s4687_s16  ;;  %2986 = vrot.lane.b32.xlu0 %v5605_v63, %s4687_s16  ;;  %4535 = vpow2.f32 %v2953_v53  ;;  %v4532_v55 = vpop.eup %4531  ;;  %v1146_v53 = vsel %vm626_vm7, %v5468_v13, 0.0  ;;  %v1152_v13 = vsel %vm626_vm7, %v5478_v2, 0.0 }
 0x42d   :  { %4537 = vpow2.f32 %v2370_v17  ;;  %v734_v3 = vmul.f32 %v4532_v55, %v5424_v45  ;;  %v1161_v45 = vsel %vm626_vm7, %v1127_v48, 0.0  ;;  %v1149_v17 = vsel %vm626_vm7, %v7024_v35, 0.0  ;;  %v7031_v35 = vld [vmem:[#allocation38_spill] sm:$0xff] }
 0x42e   :  { %4539 = vpow2.f32 %v2955_v33  ;;  %v1131_v37 = vpop.permute.xlu1 %1130 }
 0x42f   :  { %4541 = vpow2.f32 %v2372_v56  ;;  %v1155_v56 = vsel %vm626_vm7, %v5543_v22, 0.0  ;;  %v1167_v2 = vsel %vm626_vm7, %v1131_v37, 0.0  ;;  %v7030_v37 = vld [vmem:[#allocation50_spill] sm:$0xff] }
 0x430   :  { %2405 = vrot.lane.b32.xlu1 %v5617_v39, %s4688_s17  ;;  %2403 = vrot.lane.b32.xlu0 %v5615_v60, %s4688_s17  ;;  %4543 = vpow2.f32 %v2959_v61 }
 0x431   :  { %4545 = vrcp.f32 %v714_v15 }
 0x434   :  { %2990 = vrot.lane.b32.xlu1 %v5625_v11, %s4687_s16  ;;  %2407 = vrot.lane.b32.xlu0 %v5627_v8, %s4688_s17 }
 0x435   :  { %v4534_v59 = vpop.eup %4533 }
 0x436   :  { %v733_v6 = vmul.f32 %v4534_v59, %v5436_v18  ;;  %v5634_v28 = vpop.eup %4535 }
 0x437   :  { %7019 = vst [vmem:[#allocation62_spill] sm:$0xff] %v5634_v28  ;;  %v5641_v5 = vpop.eup %4537 }
 0x438   :  { %2992 = vrot.lane.b32.xlu1 %v5634_v28, %s4687_s16  ;;  %4016 = vmatmul.mubr.msk.f32.gmra.mrb[24].mxu1 %vm626_vm7, %v733_v6  ;;  %7020 = vst [vmem:[#allocation63_spill] sm:$0xff] %v5641_v5  ;;  %v5645_v1 = vpop.eup %4539 }
 0x439   :  { %4018 = vmatprep.mubr.msk.f32.mxu1 %vm626_vm7, %v734_v3  ;;  %7021 = vst [vmem:[#allocation64_spill] sm:$0xff] %v5645_v1  ;;  %v5649_v18 = vpop.eup %4541  ;;  %v1158_v3 = vsel %vm626_vm7, %v5563_v44, 0.0 }
 0x43a   :  { %7022 = vst [vmem:[#allocation65_spill] sm:$0xff] %v5649_v18  ;;  %v5658_v21 = vpop.eup %4543 }
 0x43b   :  { %7023 = vst [vmem:[#allocation66_spill] sm:$0xff] %v5658_v21  ;;  %v4546_v48 = vpop.eup %4545 }
 0x43c   :  { %2409 = vrot.lane.b32.xlu1 %v5641_v5, %s4688_s17  ;;  %v736_v55 = vmul.f32 %v4546_v48, %v7025_v25 }
 0x440   :  { %2994 = vrot.lane.b32.xlu1 %v5645_v1, %s4687_s16  ;;  %v7083_v1 = vld [vmem:[#allocation11_spill] sm:$0xff] }
 0x444   :  { %2411 = vrot.lane.b32.xlu1 %v5649_v18, %s4688_s17 }
 0x453   :  { %1162 = vadd.xlane.f32.xlu0 %v1161_v45 }
 0x45a   :  { %v717_v0 = vpop.xlane.xlu0 %716 }
 0x45f   :  { %v711_v32 = vpop.xlane.xlu1 %710 }
 0x460   :  { %4547 = vrcp.f32 %v711_v32  ;;  %v2350_v32 = vsub.f32 %v5258_v7, %v7030_v37 }
 0x461   :  { %4549 = vrcp.f32 %v717_v0 }
 0x462   :  { %v2374_v48 = vmul.f32 1.442695, %v2350_v32 }
 0x468   :  { %1147 = vadd.xlane.f32.xlu1 %v1146_v53  ;;  %v1164_v53 = vsel %vm626_vm7, %v5599_v12, 0.0 }
 0x469   :  { %2998 = vrot.lane.b32.xlu0 %v5658_v21, %s4687_s16 }
 0x46a   :  { %v4548_v62 = vpop.eup %4547 }
 0x46b   :  { %v735_v23 = vmul.f32 %v4548_v62, %v5494_v24  ;;  %v4550_v33 = vpop.eup %4549  ;;  %v7026_v24 = vld [vmem:[#allocation51_spill] sm:$0xff]  ;;  %v5697_v62 = vpop.permute.xlu0 %2391 }
 0x46c   :  { %1150 = vadd.xlane.f32.xlu1 %v1149_v17  ;;  %v737_v59 = vmul.f32 %v4550_v33, %v5489_v58  ;;  %v2934_v6 = vsub.f32 %v5250_v51, %v7026_v24  ;;  %v7028_v58 = vld [vmem:[#allocation55_spill] sm:$0xff]  ;;  %v1838_v17 = vsub.f32 %v5196_v9, %v7031_v35  ;;  %v7033_v24 = vld [vmem:[#allocation40_spill] sm:$0xff] }
 0x46d   :  { %4019 = vmatmul.mubr.msk.f32.gmra.mrb[26].mxu1 %vm626_vm7, %v735_v23  ;;  %v2936_v22 = vsub.f32 %v5266_v19, %v7028_v58  ;;  %v1133_v23 = vpop.permute.xlu1 %1132  ;;  %v1840_v9 = vsub.f32 %v5208_v38, %v7033_v24 }
 0x46e   :  { %4021 = vmatprep.mubr.msk.f32.mxu1 %vm626_vm7, %v736_v55  ;;  %v2957_v45 = vmul.f32 1.442695, %v2934_v6  ;;  %v1852_v25 = vmul.f32 1.442695, %v1838_v17  ;;  %v1173_v55 = vsel %vm654_vm10, %v1135_v57, 0.0 }
 0x46f   :  { %v2961_v16 = vmul.f32 1.442695, %v2936_v22  ;;  %v2979_v33 = vpop.permute.xlu0 %2978  ;;  %v1856_v57 = vmul.f32 1.442695, %v1840_v9 }
 0x470   :  { %1153 = vadd.xlane.f32.xlu1 %v1152_v13  ;;  %4551 = vpow2.f32 %v2957_v45  ;;  %v3018_v6 = vsel %vm1796_vm11, %v2979_v33, 0.0 }
 0x471   :  { %4022 = vmatmul.mubr.msk.f32.gmra.mrb[28].mxu1 %vm626_vm7, %v737_v59  ;;  %4553 = vpow2.f32 %v2961_v16  ;;  %v2977_v59 = vpop.permute.xlu1 %2976 }
 0x472   :  { %4555 = vpow2.f32 %v2374_v48 }
 0x473   :  { %4557 = vpow2.f32 %v1852_v25  ;;  %v2396_v12 = vpop.permute.xlu0 %2395  ;;  %v7036_v25 = vld [vmem:[#allocation52_spill] sm:$0xff] }
 0x474   :  { %1156 = vadd.xlane.f32.xlu1 %v1155_v56  ;;  %v3015_v56 = vsel %vm1796_vm11, %v2977_v59, 0.0  ;;  %v2436_v45 = vsel %vm1796_vm11, %v2396_v12, 0.0  ;;  %4559 = vpow2.f32 %v1856_v57  ;;  %v1170_v12 = vsel %vm626_vm7, %v1133_v23, 0.0  ;;  %v7038_v57 = vld [vmem:[#allocation3_spill] sm:$0xff] }
 0x478   :  { %1159 = vadd.xlane.f32.xlu1 %v1158_v3  ;;  %v5710_v3 = vpop.permute.xlu0 %2397 }
 0x47a   :  { %v5679_v15 = vpop.eup %4551 }
 0x47b   :  { %7027 = vst [vmem:[#allocation56_spill] sm:$0xff] %v5679_v15  ;;  %v5689_v44 = vpop.eup %4553 }
 0x47c   :  { %7029 = vst [vmem:[#allocation46_spill] sm:$0xff] %v5689_v44  ;;  %v5702_v13 = vpop.eup %4555  ;;  %v2983_v58 = vpop.permute.xlu0 %2982 }
 0x47d   :  { %7032 = vst [vmem:[#allocation51_spill] sm:$0xff] %v5702_v13  ;;  %v3024_v37 = vsel %vm1796_vm11, %v2983_v58, 0.0 }
 0x480   :  { %v2400_v32 = vpop.permute.xlu0 %2399 }
 0x481   :  { %v2442_v48 = vsel %vm1796_vm11, %v2400_v32, 0.0  ;;  %v7041_v32 = vld [vmem:[#allocation42_spill] sm:$0xff] }
 0x488   :  { %1168 = vadd.xlane.f32.xlu0 %v1167_v2  ;;  %v5713_v2 = vpop.eup %4557 }
 0x489   :  { %2996 = vrot.lane.b32.xlu1 %v5679_v15, %s4687_s16  ;;  %7034 = vst [vmem:[#allocation55_spill] sm:$0xff] %v5713_v2  ;;  %v1879_v22 = vsel %vm1796_vm11, %v5713_v2, 0.0  ;;  %v5723_v35 = vpop.eup %4559 }
 0x48a   :  { %7035 = vst [vmem:[#allocation50_spill] sm:$0xff] %v5723_v35  ;;  %v1885_v17 = vsel %vm1796_vm11, %v5723_v35, 0.0 }
 0x498   :  { %v5685_v61 = vpop.f32.mrb[20].mxu1 }
 0x499   :  { %v5687_v0 = vpop.f32.mrb[21].mxu1 }
 0x49e   :  { %3000 = vrot.lane.b32.xlu0 %v5689_v44, %s4687_s16 }
 0x4ad   :  { %1165 = vadd.xlane.f32.xlu1 %v1164_v53  ;;  %v2394_v53 = vpop.permute.xlu1 %2393 }
 0x4b1   :  { %v2981_v33 = vpop.permute.xlu1 %2980 }
 0x4b5   :  { %v5729_v59 = vpop.permute.xlu1 %2984 }
 0x4b9   :  { %v5732_v24 = vpop.permute.xlu1 %2401 }
 0x4bd   :  { %1174 = vadd.xlane.f32.xlu0 %v1173_v55  ;;  %v2351_v55 = vsub.f32 %v5266_v19, %v7036_v25  ;;  %v5734_v9 = vpop.xlane.xlu1 %1831 }
 0x4be   :  { %2413 = vrot.lane.b32.xlu1 %v5702_v13, %s4688_s17 }
 0x4c1   :  { %3016 = vadd.xlane.f32.xlu0 %v3015_v56  ;;  %v2376_v56 = vmul.f32 1.442695, %v2351_v55  ;;  %v5740_v58 = vpop.permute.xlu1 %2988  ;;  %v5750_v55 = vpop.xlane.xlu0 %1835 }
 0x4c3   :  { %4561 = vpow2.f32 %v2376_v56  ;;  %v7042_v56 = vld [vmem:[#allocation34_spill] sm:$0xff] }
 0x4c5   :  { %3019 = vadd.xlane.f32.xlu0 %v3018_v6  ;;  %v7037_v6 = vld [vmem:[#allocation5_spill] sm:$0xff]  ;;  %v2406_v23 = vpop.permute.xlu1 %2405  ;;  %v2987_v35 = vpop.permute.xlu0 %2986 }
 0x4c6   :  { %v2451_v21 = vsel %vm1796_vm11, %v2406_v23, 0.0 }
 0x4c9   :  { %2437 = vadd.xlane.f32.xlu0 %v2436_v45  ;;  %v7039_v45 = vpack.i.bf16 %v7037_v6, %v7038_v57 }
 0x4cd   :  { %v5717_v16 = vpop.f32.mrb[22].mxu1  ;;  %1880 = vadd.xlane.f32.xlu0 %v1879_v22  ;;  %v5742_v22 = vpop.eup %4561 }
 0x4ce   :  { %v5719_v38 = vpop.f32.mrb[23].mxu1  ;;  %7040 = vst [vmem:[#allocation38_spill] sm:$0xff] %v5742_v22 }
 0x4d1   :  { %3025 = vadd.xlane.f32.xlu0 %v3024_v37  ;;  %v5746_v37 = vpop.permute.xlu1 %2990 }
 0x4d5   :  { %2443 = vadd.xlane.f32.xlu0 %v2442_v48  ;;  %v1843_v48 = vsub.f32 %v5226_v14, %v7041_v32  ;;  %v3030_v14 = vsel %vm1796_vm11, %v2987_v35, 0.0 }
 0x4d7   :  { %v1862_v25 = vmul.f32 1.442695, %v1843_v48 }
 0x4d9   :  { %1886 = vadd.xlane.f32.xlu0 %v1885_v17  ;;  %v2993_v17 = vpop.permute.xlu1 %2992  ;;  %4563 = vpow2.f32 %v1862_v25  ;;  %v2404_v25 = vpop.permute.xlu0 %2403 }
 0x4dd   :  { %v2408_v35 = vpop.permute.xlu0 %2407 }
 0x4e2   :  { %1171 = vadd.xlane.f32.xlu1 %v1170_v12  ;;  %v5752_v12 = vpop.permute.xlu1 %2409 }
 0x4e3   :  { %v5764_v5 = vpop.eup %4563 }
 0x4e4   :  { %7044 = vst [vmem:[#allocation40_spill] sm:$0xff] %v5764_v5 }
 0x4e6   :  { %v2995_v32 = vpop.permute.xlu1 %2994 }
 0x4ef   :  { %4404 = vrot.lane.b32.xlu0 %v7039_v45, %s4685_s0  ;;  %v1837_v45 = vsub.f32 %v5191_v42, %v7042_v56  ;;  %v5766_v42 = vpop.permute.xlu1 %2411  ;;  %v7045_v56 = vld [vmem:[#allocation37_spill] sm:$0xff] }
 0x4f1   :  { %v1850_v18 = vmul.f32 1.442695, %v1837_v45  ;;  %v2454_v45 = vsel %vm1796_vm11, %v2408_v35, 0.0  ;;  %v3021_v35 = vsel %vm1796_vm11, %v2981_v33, 0.0  ;;  %v7050_v33 = vld [vmem:[#allocation44_spill] sm:$0xff] }
 0x4f3   :  { %2415 = vrot.lane.b32.xlu1 %v5742_v22, %s4688_s17  ;;  %v7043_v22 = vld [vmem:[#allocation47_spill] sm:$0xff]  ;;  %4565 = vpow2.f32 %v1850_v18 }
 0x4f4   :  { %v1844_v13 = vsub.f32 %v5232_v29, %v7043_v22  ;;  %v1839_v29 = vsub.f32 %v5202_v40, %v7045_v56  ;;  %v1894_v22 = vsel %vm1796_vm11, %v5764_v5, 0.0  ;;  %v3039_v40 = vsel %vm1796_vm11, %v2993_v17, 0.0 }
 0x4f5   :  { %v1148_v18 = vpop.xlane.xlu1 %1147 }
 0x4f6   :  { %v1864_v48 = vmul.f32 1.442695, %v1844_v13  ;;  %v2430_v13 = vsel %vm1796_vm11, %v5697_v62, 0.0  ;;  %v1854_v23 = vmul.f32 1.442695, %v1839_v29  ;;  %v7048_v29 = vld [vmem:[#allocation39_spill] sm:$0xff] }
 0x4f8   :  { %4567 = vpow2.f32 %v1864_v48 }
 0x4f9   :  { %4569 = vpow2.f32 %v1854_v23  ;;  %v5781_v56 = vpop.xlane.xlu1 %1150  ;;  %v3042_v23 = vsel %vm1796_vm11, %v2995_v32, 0.0  ;;  %v3027_v32 = vsel %vm1796_vm11, %v5729_v59, 0.0 }
 0x4fd   :  { %v1154_v17 = vpop.xlane.xlu1 %1153 }
 0x50b   :  { %v5756_v2 = vpop.f32.mrb[24].mxu1 }
 0x50c   :  { %v5760_v44 = vpop.f32.mrb[25].mxu1 }
 0x50e   :  { %3031 = vadd.xlane.f32.xlu0 %v3030_v14  ;;  %v5776_v14 = vpop.eup %4565 }
 0x50f   :  { %7046 = vst [vmem:[#allocation52_spill] sm:$0xff] %v5776_v14  ;;  %v5779_v48 = vpop.eup %4567  ;;  %v1876_v62 = vsel %vm1796_vm11, %v5776_v14, 0.0 }
 0x510   :  { %7047 = vst [vmem:[#allocation5_spill] sm:$0xff] %v5779_v48 }
 0x512   :  { %2452 = vadd.xlane.f32.xlu0 %v2451_v21  ;;  %v2433_v21 = vsel %vm1796_vm11, %v2394_v53, 0.0  ;;  %v1897_v53 = vsel %vm1796_vm11, %v5779_v48, 0.0 }
 0x516   :  { %1895 = vadd.xlane.f32.xlu0 %v1894_v22  ;;  %v1841_v22 = vsub.f32 %v5214_v10, %v7048_v29  ;;  %v5795_v10 = vpop.xlane.xlu1 %1156 }
 0x517   :  { %2431 = vadd.xlane.f32.xlu1 %v2430_v13 }
 0x518   :  { %v1858_v13 = vmul.f32 1.442695, %v1841_v22  ;;  %v2445_v22 = vsel %vm1796_vm11, %v5732_v24, 0.0 }
 0x51a   :  { %2455 = vadd.xlane.f32.xlu0 %v2454_v45  ;;  %v2439_v45 = vsel %vm1796_vm11, %v5710_v3, 0.0  ;;  %4571 = vpow2.f32 %v1858_v13  ;;  %v1160_v3 = vpop.xlane.xlu1 %1159  ;;  %v2448_v13 = vsel %vm1796_vm11, %v2404_v25, 0.0 }
 0x51b   :  { %2434 = vadd.xlane.f32.xlu1 %v2433_v21  ;;  %v5793_v21 = vpop.eup %4569  ;;  %4573 = vrcp.f32 %v1148_v18 }
 0x51c   :  { %7049 = vst [vmem:[#allocation3_spill] sm:$0xff] %v5793_v21  ;;  %4575 = vrcp.f32 %v1154_v17 }
 0x51e   :  { %3040 = vadd.xlane.f32.xlu0 %v3039_v40  ;;  %v1882_v40 = vsel %vm1796_vm11, %v5793_v21, 0.0 }
 0x51f   :  { %1877 = vadd.xlane.f32.xlu1 %v1876_v62  ;;  %v1842_v62 = vsub.f32 %v5220_v4, %v7050_v33  ;;  %v7054_v33 = vld [vmem:[#allocation33_spill] sm:$0xff] }
 0x521   :  { %v1860_v29 = vmul.f32 1.442695, %v1842_v62 }
 0x522   :  { %1898 = vadd.xlane.f32.xlu0 %v1897_v53 }
 0x523   :  { %3022 = vadd.xlane.f32.xlu1 %v3021_v35  ;;  %4577 = vpow2.f32 %v1860_v29  ;;  %v5807_v35 = vpop.permute.xlu1 %2996 }
 0x524   :  { %v5805_v53 = vpop.eup %4571  ;;  %4579 = vrcp.f32 %v1160_v3 }
 0x525   :  { %7051 = vst [vmem:[#allocation42_spill] sm:$0xff] %v5805_v53  ;;  %v1888_v4 = vsel %vm1796_vm11, %v5805_v53, 0.0  ;;  %v4574_v18 = vpop.eup %4573 }
 0x526   :  { %3043 = vadd.xlane.f32.xlu0 %v3042_v23  ;;  %v7052_v23 = vld [vmem:[#allocation31_spill] sm:$0xff] }
 0x527   :  { %2440 = vadd.xlane.f32.xlu1 %v2439_v45  ;;  %v1186_v17 = vmul.f32 %v4574_v18, %v7052_v23  ;;  %v4576_v45 = vpop.eup %4575 }
 0x528   :  { %v1188_v62 = vmul.f32 %v4576_v45, %v7054_v33  ;;  %v7057_v45 = vld [vmem:[#allocation9_spill] sm:$0xff] }
 0x52b   :  { %1883 = vadd.xlane.f32.xlu1 %v1882_v40  ;;  %v3033_v40 = vsel %vm1796_vm11, %v5740_v58, 0.0 }
 0x52d   :  { %v5814_v24 = vpop.eup %4577 }
 0x52e   :  { %7053 = vst [vmem:[#allocation34_spill] sm:$0xff] %v5814_v24  ;;  %v1891_v3 = vsel %vm1796_vm11, %v5814_v24, 0.0  ;;  %v2457_v24 = vsel %vm1796_vm11, %v5752_v12, 0.0 }
 0x52f   :  { %3028 = vadd.xlane.f32.xlu1 %v3027_v32  ;;  %v4580_v32 = vpop.eup %4579 }
 0x533   :  { %2446 = vadd.xlane.f32.xlu1 %v2445_v22  ;;  %v7055_v22 = vld [vmem:[#allocation36_spill] sm:$0xff] }
 0x537   :  { %1889 = vadd.xlane.f32.xlu1 %v1888_v4  ;;  %v1190_v4 = vmul.f32 %v4580_v32, %v7055_v22 }
 0x53a   :  { %v1166_v59 = vpop.xlane.xlu1 %1165 }
 0x53b   :  { %4581 = vrcp.f32 %v1166_v59  ;;  %2449 = vadd.xlane.f32.xlu1 %v2448_v13  ;;  %v7056_v13 = vld [vmem:[#allocation41_spill] sm:$0xff] }
 0x53c   :  { %1206 = vrot.lane.b32.xlu0 %v1186_v17, %s4687_s16  ;;  %v1163_v17 = vpop.xlane.xlu0 %1162 }
 0x53f   :  { %3034 = vadd.xlane.f32.xlu1 %v3033_v40  ;;  %v7058_v40 = vld [vmem:[#allocation7_spill] sm:$0xff] }
 0x540   :  { %v5819_v29 = vpop.f32.mrb[26].mxu1  ;;  %1210 = vrot.lane.b32.xlu0 %v1188_v62, %s4687_s16  ;;  %v7059_v33 = vpack.i.bf16 %v7057_v45, %v7058_v40  ;;  %v5836_v62 = vpop.permute.xlu0 %2998 }
 0x541   :  { %v5822_v25 = vpop.f32.mrb[27].mxu1 }
 0x543   :  { %1892 = vadd.xlane.f32.xlu1 %v1891_v3 }
 0x544   :  { %v5827_v18 = vpop.f32.mrb[28].mxu1  ;;  %1214 = vrot.lane.b32.xlu0 %v1190_v4, %s4687_s16  ;;  %v1169_v32 = vpop.xlane.xlu0 %1168 }
 0x545   :  { %v4582_v58 = vpop.eup %4581  ;;  %v904_v59 = vpop.f32.mrb[29].mxu1 }
 0x546   :  { %v1192_v23 = vmul.f32 %v4582_v58, %v7056_v13  ;;  %v5842_v4 = vpop.permute.xlu1 %2413 }
 0x548   :  { %1218 = vrot.lane.b32.xlu0 %v1192_v23, %s4687_s16  ;;  %v5838_v3 = vpop.permute.xlu0 %3000  ;;  %v3036_v23 = vsel %vm1796_vm11, %v5746_v37, 0.0 }
 0x54c   :  { %v5840_v22 = vpop.xlane.xlu0 %1174 }
 0x550   :  { %v5844_v48 = vpop.xlane.xlu0 %3016 }
 0x554   :  { %4409 = vrot.lane.b32.xlu1 %v7059_v33, %s4685_s0  ;;  %v5846_v13 = vpop.xlane.xlu0 %3019 }
 0x558   :  { %v5850_v33 = vpop.xlane.xlu0 %2437 }
 0x56f   :  { %v1172_v58 = vpop.xlane.xlu1 %1171 }
 0x570   :  { %4583 = vrcp.f32 %v1172_v58  ;;  %v5857_v58 = vpop.xlane.xlu0 %1880 }
 0x571   :  { %4585 = vrcp.f32 %v5781_v56  ;;  %7060 = vst [vmem:[#allocation47_spill] sm:$0xff] %v5857_v58  ;;  %v2460_v56 = vsel %vm1796_vm11, %v5766_v42, 0.0 }
 0x574   :  { %v5859_v21 = vpop.xlane.xlu0 %3025 }
 0x578   :  { %3037 = vadd.xlane.f32.xlu1 %v3036_v23  ;;  %v5861_v37 = vpop.xlane.xlu0 %2443  ;;  %v7061_v23 = vld [vmem:[#allocation32_spill] sm:$0xff] }
 0x57a   :  { %v4584_v5 = vpop.eup %4583 }
 0x57b   :  { %v1194_v53 = vmul.f32 %v4584_v5, %v5523_v36  ;;  %v4586_v14 = vpop.eup %4585  ;;  %v7064_v36 = vld [vmem:[#allocation45_spill] sm:$0xff] }
 0x57c   :  { %2458 = vadd.xlane.f32.xlu1 %v2457_v24  ;;  %v1187_v15 = vmul.f32 %v4586_v14, %v7061_v23  ;;  %v5865_v50 = vpop.xlane.xlu0 %1886  ;;  %v1845_v5 = vsub.f32 %v5238_v26, %v7064_v36  ;;  %v5894_v36 = vpop.permute.xlu1 %2415 }
 0x57d   :  { %1222 = vrot.lane.b32.xlu0 %v1194_v53, %s4687_s16  ;;  %7062 = vst [vmem:[#allocation37_spill] sm:$0xff] %v5865_v50 }
 0x57e   :  { %v1866_v24 = vmul.f32 1.442695, %v1845_v5 }
 0x580   :  { %v5867_v12 = vpop.permute.xlu0 %4404  ;;  %4587 = vpow2.f32 %v1866_v24  ;;  %v7071_v24 = vld [vmem:[#allocation35_spill] sm:$0xff] }
 0x581   :  { %7063 = vst [vmem:[#allocation39_spill] sm:$0xff] %v5867_v12  ;;  %4589 = vrcp.f32 %v5795_v10 }
 0x582   :  { %4591 = vrcp.f32 %v1163_v17 }
 0x583   :  { %4593 = vrcp.f32 %v1169_v32 }
 0x584   :  { %4595 = vrcp.f32 %v5840_v22 }
 0x58a   :  { %v5883_v50 = vpop.eup %4587 }
 0x58b   :  { %7068 = vst [vmem:[#allocation36_spill] sm:$0xff] %v5883_v50  ;;  %v1900_v26 = vsel %vm1796_vm11, %v5883_v50, 0.0 }
 0x58d   :  { %1208 = vrot.lane.b32.xlu1 %v1187_v15, %s4687_s16 }
 0x59b   :  { %v5871_v53 = vpop.xlane.xlu0 %3031 }
 0x59c   :  { %2461 = vadd.xlane.f32.xlu0 %v2460_v56 }
 0x59f   :  { %v5875_v58 = vpop.xlane.xlu0 %2452 }
 0x5a3   :  { %v5877_v14 = vpop.xlane.xlu0 %1895 }
 0x5a4   :  { %7065 = vst [vmem:[#allocation44_spill] sm:$0xff] %v5877_v14  ;;  %v5899_v56 = vpop.xlane.xlu1 %2431 }
 0x5a7   :  { %v5879_v15 = vpop.xlane.xlu0 %2455 }
 0x5a8   :  { %7066 = vst [vmem:[#allocation31_spill] sm:$0xff] %v5879_v15  ;;  %v5905_v10 = vpop.xlane.xlu1 %2434 }
 0x5ab   :  { %v5881_v23 = vpop.xlane.xlu0 %3040 }
 0x5ac   :  { %7067 = vst [vmem:[#allocation33_spill] sm:$0xff] %v5881_v23 }
 0x5af   :  { %v5885_v12 = vpop.xlane.xlu0 %1898 }
 0x5b0   :  { %7069 = vst [vmem:[#allocation41_spill] sm:$0xff] %v5885_v12  ;;  %v5911_v12 = vpop.xlane.xlu1 %1877 }
 0x5b1   :  { %1901 = vadd.xlane.f32.xlu1 %v1900_v26  ;;  %7073 = vst [vmem:[#allocation7_spill] sm:$0xff] %v5911_v12 }
 0x5b2   :  { %923 = vrot.lane.b32.xlu0 %v5687_v0, %s4689_s18  ;;  %v4590_v0 = vpop.eup %4589 }
 0x5b3   :  { %v5892_v42 = vpop.xlane.xlu0 %3043  ;;  %v1189_v26 = vmul.f32 %v4590_v0, %v7071_v24  ;;  %v4592_v50 = vpop.eup %4591 }
 0x5b4   :  { %7070 = vst [vmem:[#allocation9_spill] sm:$0xff] %v5892_v42 }
 0x5b6   :  { %927 = vrot.lane.b32.xlu0 %v5719_v38, %s4689_s18  ;;  %v7072_v38 = vld [vmem:[#allocation43_spill] sm:$0xff] }
 0x5b7   :  { %v1207_v5 = vpop.permute.xlu0 %1206  ;;  %v1191_v17 = vmul.f32 %v4592_v50, %v7072_v38 }
 0x5b8   :  { %4038 = vmatprep.mubr.msk.f32.mxu1 %vm626_vm7, %v1207_v5  ;;  %v4594_v5 = vpop.eup %4593 }
 0x5ba   :  { %931 = vrot.lane.b32.xlu0 %v5760_v44, %s4689_s18  ;;  %v7074_v44 = vld [vmem:[#allocation53_spill] sm:$0xff] }
 0x5bb   :  { %v1193_v32 = vmul.f32 %v4594_v5, %v7074_v44  ;;  %v4596_v5 = vpop.eup %4595 }
 0x5be   :  { %935 = vrot.lane.b32.xlu0 %v5822_v25, %s4689_s18  ;;  %v5916_v25 = vpop.xlane.xlu1 %3022 }
 0x5c2   :  { %1212 = vrot.lane.b32.xlu1 %v1189_v26, %s4687_s16  ;;  %939 = vrot.lane.b32.xlu0 %v904_v59, %s4689_s18  ;;  %v5918_v14 = vpop.xlane.xlu1 %2440  ;;  %v3045_v26 = vsel %vm1796_vm11, %v5807_v35, 0.0 }
 0x5c6   :  { %1216 = vrot.lane.b32.xlu1 %v1191_v17, %s4687_s16  ;;  %v5920_v0 = vpop.xlane.xlu1 %1883 }
 0x5c7   :  { %7075 = vst [vmem:[#allocation32_spill] sm:$0xff] %v5920_v0 }
 0x5ca   :  { %1220 = vrot.lane.b32.xlu1 %v1193_v32, %s4687_s16  ;;  %v5922_v24 = vpop.xlane.xlu1 %3028  ;;  %v7079_v32 = vld [vmem:[#allocation54_spill] sm:$0xff] }
 0x5cb   :  { %v1195_v0 = vmul.f32 %v4596_v5, %v7079_v32 }
 0x5ce   :  { %v5924_v59 = vpop.xlane.xlu1 %2446 }
 0x5cf   :  { %7076 = vst [vmem:[#allocation45_spill] sm:$0xff] %v5924_v59 }
 0x5d2   :  { %v5926_v50 = vpop.xlane.xlu1 %1889 }
 0x5d3   :  { %7077 = vst [vmem:[#allocation35_spill] sm:$0xff] %v5926_v50 }
 0x5d6   :  { %v5930_v38 = vpop.xlane.xlu1 %2449 }
 0x5da   :  { %v5933_v17 = vpop.xlane.xlu1 %3034 }
 0x5de   :  { %v5935_v44 = vpop.xlane.xlu1 %1892 }
 0x5df   :  { %7078 = vst [vmem:[#allocation43_spill] sm:$0xff] %v5935_v44  ;;  %v1211_v44 = vpop.permute.xlu0 %1210 }
 0x5e2   :  { %v5939_v12 = vpop.permute.xlu1 %4409 }
 0x5e3   :  { %7080 = vst [vmem:[#allocation53_spill] sm:$0xff] %v5939_v12 }
 0x5ee   :  { %3046 = vadd.xlane.f32.xlu1 %v3045_v26 }
 0x5ff   :  { %1224 = vrot.lane.b32.xlu1 %v1195_v0, %s4687_s16 }
 0x603   :  { %925 = vrot.lane.b32.xlu1 %v5685_v61, %s4689_s18  ;;  %v1215_v61 = vpop.permute.xlu0 %1214 }
 0x605   :  { %v5943_v35 = vpop.xlane.xlu1 %3037 }
 0x607   :  { %929 = vrot.lane.b32.xlu1 %v5717_v16, %s4689_s18  ;;  %v1219_v0 = vpop.permute.xlu0 %1218 }
 0x609   :  { %v5947_v22 = vpop.xlane.xlu1 %2458 }
 0x60a   :  { %7081 = vst [vmem:[#allocation54_spill] sm:$0xff] %v5947_v22  ;;  %v7084_v22 = vld [vmem:[#allocation23_spill] sm:$0xff] }
 0x60b   :  { %933 = vrot.lane.b32.xlu1 %v5756_v2, %s4689_s18  ;;  %v1223_v16 = vpop.permute.xlu0 %1222 }
 0x60d   :  { %v1209_v26 = vpop.permute.xlu1 %1208 }
 0x60e   :  { %4039 = vmatmul.mubr.msk.f32.vlgmr.msra.gmra.mrb[30].mxu1 %vm626_vm7, %v1209_v26 }
 0x60f   :  { %937 = vrot.lane.b32.xlu1 %v5819_v29, %s4689_s18  ;;  %4041 = vmatprep.mubr.msk.f32.mxu1 %vm626_vm7, %v1211_v44 }
 0x613   :  { %941 = vrot.lane.b32.xlu1 %v5827_v18, %s4689_s18 }
 0x629   :  { %v5957_v5 = vpop.xlane.xlu0 %2461 }
 0x62a   :  { %7082 = vst [vmem:[#allocation67_spill] sm:$0xff] %v5957_v5 }
 0x62d   :  { %v924_v32 = vpop.permute.xlu0 %923 }
 0x62e   :  { %v953_v2 = vsub.f32 %v7038_v57, %v924_v32 }
 0x630   :  { %v963_v50 = vmul.f32 %v953_v2, %v953_v2 }
 0x631   :  { %v928_v12 = vpop.permute.xlu0 %927 }
 0x632   :  { %983 = vrot.lane.b32.xlu1 %v963_v50, %s4685_s0 }
 0x635   :  { %v932_v26 = vpop.permute.xlu0 %931 }
 0x636   :  { %v957_v29 = vsub.f32 %v7083_v1, %v932_v26 }
 0x638   :  { %v967_v28 = vmul.f32 %v957_v29, %v957_v29  ;;  %v955_v29 = vsub.f32 %v7058_v40, %v928_v12 }
 0x639   :  { %v936_v44 = vpop.permute.xlu0 %935 }
 0x63a   :  { %991 = vrot.lane.b32.xlu1 %v967_v28, %s4685_s0 }
 0x63d   :  { %v940_v18 = vpop.permute.xlu0 %939 }
 0x63e   :  { %v961_v8 = vsub.f32 %v7084_v22, %v940_v18  ;;  %v5964_v59 = vpop.xlane.xlu1 %1901 }
 0x63f   :  { %7085 = vst [vmem:[#allocation11_spill] sm:$0xff] %v5964_v59 }
 0x640   :  { %v971_v5 = vmul.f32 %v961_v8, %v961_v8 }
 0x642   :  { %v1213_v11 = vpop.permute.xlu1 %1212  ;;  %999 = vrot.lane.b32.xlu1 %v971_v5, %s4685_s0  ;;  %v7087_v5 = vmov 0.0  }
 0x643   :  { %4042 = vmatmul.mubr.msk.f32.gmra.mrb[32].mxu1 %vm626_vm7, %v1213_v11 }
 0x644   :  { %4044 = vmatprep.mubr.msk.f32.mxu1 %vm626_vm7, %v1215_v61 }
 0x646   :  { %v1217_v50 = vpop.permute.xlu1 %1216 }
 0x647   :  { %4045 = vmatmul.mubr.msk.f32.gmra.mrb[34].mxu1 %vm626_vm7, %v1217_v50  ;;  %v965_v50 = vmul.f32 %v955_v29, %v955_v29 }
 0x648   :  { %4047 = vmatprep.mubr.msk.f32.mxu1 %vm626_vm7, %v1219_v0 }
 0x64a   :  { %v1221_v32 = vpop.permute.xlu1 %1220 }
 0x64b   :  { %4048 = vmatmul.mubr.msk.f32.gmra.mrb[36].mxu1 %vm626_vm7, %v1221_v32  ;;  %v7088_v32 = vld [vmem:[#allocation13_spill] sm:$0xff] }
 0x64c   :  { %4050 = vmatprep.mubr.msk.f32.mxu1 %vm626_vm7, %v1223_v16 }
 0x67b   :  { %v5973_v28 = vpop.xlane.xlu1 %3046 }
 0x67c   :  { %7086 = vst [vmem:[#allocation23_spill] sm:$0xff] %v5973_v28 }
 0x67f   :  { %v1225_v8 = vpop.permute.xlu1 %1224 }
 0x680   :  { %4051 = vmatmul.mubr.msk.f32.gmra.mrb[38].mxu1 %vm626_vm7, %v1225_v8 }
 0x681   :  { %4073 = vmatprep.mubr.msk.f32.mxu1 %vm4684_vm0, %v7087_v5 }
 0x683   :  { %v926_v11 = vpop.permute.xlu1 %925 }
 0x684   :  { %v954_v61 = vsub.f32 %v7037_v6, %v926_v11  ;;  %v7089_v11 = vld [vmem:[#allocation19_spill] sm:$0xff] }
 0x686   :  { %v964_v2 = vmul.f32 %v954_v61, %v954_v61 }
 0x687   :  { %v930_v26 = vpop.permute.xlu1 %929 }
 0x688   :  { %v956_v0 = vsub.f32 %v7057_v45, %v930_v26  ;;  %985 = vrot.lane.b32.xlu0 %v964_v2, %s4685_s0  ;;  %v7090_v26 = vld [vmem:[#allocation17_spill] sm:$0xff] }
 0x689   :  { %v959_v42 = vsub.f32 %v7090_v26, %v936_v44 }
 0x68a   :  { %v966_v16 = vmul.f32 %v956_v0, %v956_v0  ;;  %v7091_v0 = vld [vmem:[#allocation25_spill] sm:$0xff] }
 0x68b   :  { %v934_v18 = vpop.permute.xlu1 %933  ;;  %v969_v12 = vmul.f32 %v959_v42, %v959_v42 }
 0x68c   :  { %989 = vrot.lane.b32.xlu0 %v966_v16, %s4685_s0  ;;  %v958_v8 = vsub.f32 %v7088_v32, %v934_v18 }
 0x68e   :  { %v968_v28 = vmul.f32 %v958_v8, %v958_v8 }
 0x68f   :  { %v938_v59 = vpop.permute.xlu1 %937 }
 0x690   :  { %987 = vrot.lane.b32.xlu0 %v965_v50, %s4685_s0  ;;  %v960_v61 = vsub.f32 %v7089_v11, %v938_v59 }
 0x692   :  { %v970_v2 = vmul.f32 %v960_v61, %v960_v61 }
 0x693   :  { %v942_v39 = vpop.permute.xlu1 %941 }
 0x694   :  { %993 = vrot.lane.b32.xlu0 %v968_v28, %s4685_s0  ;;  %v962_v16 = vsub.f32 %v7091_v0, %v942_v39 }
 0x696   :  { %v972_v29 = vmul.f32 %v962_v16, %v962_v16 }
 0x698   :  { %997 = vrot.lane.b32.xlu0 %v970_v2, %s4685_s0 }
 0x69c   :  { %995 = vrot.lane.b32.xlu0 %v969_v12, %s4685_s0 }
 0x6a0   :  { %1001 = vrot.lane.b32.xlu0 %v972_v29, %s4685_s0 }
 0x6a4   :  { %v984_v28 = vpop.permute.xlu1 %983 }
 0x6a5   :  { %v1013_v42 = vsel %vm516_vm4, %v984_v28, 0.0 }
 0x6e1   :  { %v4040_v18 = vpop.f32.mrb[30].mxu1 }
 0x6e2   :  { %v1354_v50 = vpop.f32.mrb[31].mxu1  ;;  %1415 = vrot.lane.b32.xlu1 %v4040_v18, %s4689_s18 }
 0x6e6   :  { %1413 = vrot.lane.b32.xlu1 %v1354_v50, %s4689_s18 }
 0x6fa   :  { %v986_v59 = vpop.permute.xlu0 %985 }
 0x6fb   :  { %v1016_v44 = vsel %vm516_vm4, %v986_v59, 0.0 }
 0x6fc   :  { %1017 = vadd.xlane.f32.xlu0 %v1016_v44 }
 0x6fe   :  { %v990_v29 = vpop.permute.xlu0 %989 }
 0x6ff   :  { %v1022_v18 = vsel %vm516_vm4, %v990_v29, 0.0 }
 0x702   :  { %v988_v50 = vpop.permute.xlu0 %987 }
 0x703   :  { %v1019_v59 = vsel %vm516_vm4, %v988_v50, 0.0 }
 0x70a   :  { %1014 = vadd.xlane.f32.xlu1 %v1013_v42  ;;  %v994_v42 = vpop.permute.xlu0 %993 }
 0x70e   :  { %v998_v29 = vpop.permute.xlu0 %997 }
 0x716   :  { %v4043_v39 = vpop.f32.mrb[32].mxu1 }
 0x717   :  { %v1364_v8 = vpop.f32.mrb[33].mxu1 }
 0x718   :  { %1417 = vrot.lane.b32.xlu0 %v1364_v8, %s4689_s18  ;;  %v1028_v8 = vsel %vm516_vm4, %v994_v42, 0.0 }
 0x71a   :  { %v4046_v61 = vpop.f32.mrb[34].mxu1 }
 0x71b   :  { %v1374_v2 = vpop.f32.mrb[35].mxu1  ;;  %1419 = vrot.lane.b32.xlu1 %v4043_v39, %s4689_s18  ;;  %v992_v39 = vpop.permute.xlu1 %991 }
 0x71c   :  { %v1025_v23 = vsel %vm516_vm4, %v992_v39, 0.0 }
 0x71e   :  { %v4049_v12 = vpop.f32.mrb[36].mxu1 }
 0x71f   :  { %v1384_v16 = vpop.f32.mrb[37].mxu1  ;;  %v1000_v50 = vpop.permute.xlu1 %999 }
 0x737   :  { %1023 = vadd.xlane.f32.xlu0 %v1022_v18  ;;  %v996_v18 = vpop.permute.xlu0 %995 }
 0x73b   :  { %v1002_v42 = vpop.permute.xlu0 %1001 }
 0x73f   :  { %1020 = vadd.xlane.f32.xlu1 %v1019_v59 }
 0x74d   :  { %1421 = vrot.lane.b32.xlu0 %v1374_v2, %s4689_s18  ;;  %v1031_v2 = vsel %vm516_vm4, %v996_v18, 0.0 }
 0x750   :  { %1423 = vrot.lane.b32.xlu1 %v4046_v61, %s4689_s18  ;;  %v1034_v61 = vsel %vm516_vm4, %v998_v29, 0.0 }
 0x753   :  { %v4052_v44 = vpop.f32.mrb[38].mxu1 }
 0x754   :  { %v1394_v28 = vpop.f32.mrb[39].mxu1  ;;  %v1416_v59 = vpop.permute.xlu1 %1415 }
 0x76c   :  { %1029 = vadd.xlane.f32.xlu0 %v1028_v8  ;;  %v1041_v8 = vsel %vm1040_vm1, %v1002_v42, 0.0 }
 0x774   :  { %1026 = vadd.xlane.f32.xlu1 %v1025_v23  ;;  %v1037_v23 = vsel %vm516_vm4, %v1000_v50, 0.0 }
 0x782   :  { %1425 = vrot.lane.b32.xlu0 %v1384_v16, %s4689_s18  ;;  %v1414_v16 = vpop.permute.xlu1 %1413 }
 0x783   :  { %v1443_v42 = vsub.f32 %v7038_v57, %v1414_v16 }
 0x785   :  { %1427 = vrot.lane.b32.xlu1 %v4049_v12, %s4689_s18 }
 0x789   :  { %v6014_v39 = vpop.xlane.xlu0 %1017 }
 0x78d   :  { %v1418_v18 = vpop.permute.xlu0 %1417 }
 0x797   :  { %v6011_v12 = vpop.xlane.xlu1 %1014 }
 0x79b   :  { %v1420_v29 = vpop.permute.xlu1 %1419 }
 0x7a1   :  { %1032 = vadd.xlane.f32.xlu0 %v1031_v2  ;;  %v1444_v2 = vsub.f32 %v7037_v6, %v1416_v59 }
 0x7a3   :  { %v1454_v52 = vmul.f32 %v1444_v2, %v1444_v2 }
 0x7a9   :  { %1035 = vadd.xlane.f32.xlu1 %v1034_v61  ;;  %v1445_v61 = vsub.f32 %v7058_v40, %v1418_v18 }
 0x7b7   :  { %1429 = vrot.lane.b32.xlu0 %v1394_v28, %s4689_s18  ;;  %v1446_v28 = vsub.f32 %v7057_v45, %v1420_v29  ;;  %v1453_v45 = vmul.f32 %v1443_v42, %v1443_v42 }
 0x7b9   :  { %v1456_v50 = vmul.f32 %v1446_v28, %v1446_v28 }
 0x7ba   :  { %1431 = vrot.lane.b32.xlu1 %v4052_v44, %s4689_s18 }
 0x7cc   :  { %v6017_v44 = vpop.xlane.xlu1 %1020 }
 0x7d0   :  { %v1424_v15 = vpop.permute.xlu1 %1423 }
 0x7d1   :  { %v1448_v29 = vsub.f32 %v7088_v32, %v1424_v15 }
 0x7d3   :  { %v1458_v59 = vmul.f32 %v1448_v29, %v1448_v29 }
 0x7d6   :  { %1038 = vadd.xlane.f32.xlu0 %v1037_v23  ;;  %v6021_v23 = vpop.xlane.xlu0 %1023 }
 0x7da   :  { %v1422_v6 = vpop.permute.xlu0 %1421 }
 0x7db   :  { %v1447_v40 = vsub.f32 %v7083_v1, %v1422_v6 }
 0x7dd   :  { %v1457_v28 = vmul.f32 %v1447_v40, %v1447_v40 }
 0x7de   :  { %1042 = vadd.xlane.f32.xlu1 %v1041_v8  ;;  %v1455_v8 = vmul.f32 %v1445_v61, %v1445_v61  ;;  %v7092_v61 = vld [vmem:[#allocation48_spill] sm:$0xff] }
 0x7ec   :  { %1479 = vrot.lane.b32.xlu0 %v1456_v50, %s4685_s0  ;;  %v1847_v50 = vsub.f32 %v5250_v51, %v7092_v61 }
 0x7ee   :  { %v1870_v42 = vmul.f32 1.442695, %v1847_v50 }
 0x7ef   :  { %1475 = vrot.lane.b32.xlu1 %v1454_v52, %s4685_s0 }
 0x7f0   :  { %1477 = vrot.lane.b32.xlu0 %v1455_v8, %s4685_s0  ;;  %4597 = vpow2.f32 %v1870_v42  ;;  %v7093_v8 = vld [vmem:[#allocation49_spill] sm:$0xff] }
 0x7f3   :  { %1473 = vrot.lane.b32.xlu1 %v1453_v45, %s4685_s0  ;;  %v1846_v45 = vsub.f32 %v5244_v20, %v7093_v8  ;;  %v3048_v20 = vsel %vm1796_vm11, %v5836_v62, 0.0 }
 0x7f5   :  { %v1868_v29 = vmul.f32 1.442695, %v1846_v45  ;;  %v1848_v45 = vsub.f32 %v5258_v7, %v5734_v9 }
 0x7f7   :  { %1483 = vrot.lane.b32.xlu1 %v1458_v59, %s4685_s0  ;;  %4599 = vpow2.f32 %v1868_v29 }
 0x7f9   :  { %v6032_v57 = vpop.xlane.xlu0 %1029 }
 0x7fa   :  { %v6046_v6 = vpop.eup %4597 }
 0x7fb   :  { %1481 = vrot.lane.b32.xlu1 %v1457_v28, %s4685_s0 }
 0x7fd   :  { %v1426_v52 = vpop.permute.xlu0 %1425 }
 0x7fe   :  { %v1449_v15 = vsub.f32 %v7090_v26, %v1426_v52  ;;  %v1906_v26 = vsel %vm1796_vm11, %v6046_v6, 0.0 }
 0x800   :  { %v1459_v1 = vmul.f32 %v1449_v15, %v1449_v15 }
 0x801   :  { %v6034_v16 = vpop.xlane.xlu1 %1026  ;;  %v6050_v51 = vpop.eup %4599 }
 0x802   :  { %v1903_v40 = vsel %vm1796_vm11, %v6050_v51, 0.0 }
 0x805   :  { %v1428_v18 = vpop.permute.xlu1 %1427 }
 0x806   :  { %v1450_v2 = vsub.f32 %v7089_v11, %v1428_v18  ;;  %v2463_v11 = vsel %vm1796_vm11, %v5842_v4, 0.0  ;;  %v2466_v4 = vsel %vm1833_vm15, %v5894_v36, 0.0 }
 0x808   :  { %v1460_v32 = vmul.f32 %v1450_v2, %v1450_v2 }
 0x80a   :  { %1487 = vrot.lane.b32.xlu0 %v1460_v32, %s4685_s0 }
 0x80e   :  { %1485 = vrot.lane.b32.xlu0 %v1459_v1, %s4685_s0 }
 0x81f   :  { %2464 = vadd.xlane.f32.xlu1 %v2463_v11 }
 0x823   :  { %1907 = vadd.xlane.f32.xlu1 %v1906_v26  ;;  %v1872_v26 = vmul.f32 1.442695, %v1848_v45 }
 0x825   :  { %4601 = vpow2.f32 %v1872_v26 }
 0x82d   :  { %1904 = vadd.xlane.f32.xlu0 %v1903_v40 }
 0x82e   :  { %v6056_v59 = vpop.xlane.xlu0 %1032 }
 0x831   :  { %3049 = vadd.xlane.f32.xlu0 %v3048_v20 }
 0x832   :  { %v1430_v52 = vpop.permute.xlu0 %1429 }
 0x833   :  { %v1451_v15 = vsub.f32 %v7084_v22, %v1430_v52 }
 0x835   :  { %2467 = vadd.xlane.f32.xlu0 %v2466_v4  ;;  %v1461_v1 = vmul.f32 %v1451_v15, %v1451_v15  ;;  %v3051_v15 = vsel %vm1833_vm15, %v5838_v3, 0.0 }
 0x836   :  { %v6060_v28 = vpop.xlane.xlu1 %1035 }
 0x83a   :  { %v1432_v18 = vpop.permute.xlu1 %1431 }
 0x83b   :  { %v1452_v2 = vsub.f32 %v7091_v0, %v1432_v18 }
 0x83d   :  { %v1462_v32 = vmul.f32 %v1452_v2, %v1452_v2 }
 0x83f   :  { %1491 = vrot.lane.b32.xlu1 %v1462_v32, %s4685_s0  ;;  %v6943_v32 = vmov 0.0|0.0  }
 0x840   :  { %4308 = vmatprep.subr.bf16.mxu1 %v6943_v32  ;;  %4338 = vmatprep.subr.bf16.mxu0 %v6943_v32 }
 0x843   :  { %1489 = vrot.lane.b32.xlu1 %v1461_v1, %s4685_s0  ;;  %v6084_v1 = vpop.eup %4601 }
 0x863   :  { %v6066_v62 = vpop.xlane.xlu0 %1038 }
 0x867   :  { %v1480_v61 = vpop.permute.xlu0 %1479 }
 0x868   :  { %v1512_v40 = vsel %vm516_vm4, %v1480_v61, 0.0  ;;  %v1909_v61 = vsel %vm1796_vm11, %v6084_v1, 0.0 }
 0x86b   :  { %v6068_v50 = vpop.xlane.xlu1 %1042  ;;  %v1478_v36 = vpop.permute.xlu0 %1477 }
 0x86c   :  { %v1509_v42 = vsel %vm516_vm4, %v1478_v36, 0.0  ;;  %v1849_v36 = vsub.f32 %v5266_v19, %v5750_v55  ;;  %v359_v19 = vlaneseq  ;;  %v7094_v55 = vld [vmem:[#allocation15_spill] sm:$0xff] }
 0x86d   :  { %1510 = vadd.xlane.f32.xlu1 %v1509_v42 }
 0x86e   :  { %v1874_v42 = vmul.f32 1.442695, %v1849_v36 }
 0x86f   :  { %v1476_v8 = vpop.permute.xlu1 %1475 }
 0x870   :  { %v1506_v0 = vsel %vm516_vm4, %v1476_v8, 0.0  ;;  %4603 = vpow2.f32 %v1874_v42  ;;  %v7101_v42 = vld [vmem:[#allocation27_spill] sm:$0xff] }
 0x871   :  { %1507 = vadd.xlane.f32.xlu0 %v1506_v0  ;;  %4605 = vrcp.f32 %v5899_v56 }
 0x872   :  { %4607 = vrcp.f32 %v5844_v48 }
 0x873   :  { %v1474_v22 = vpop.permute.xlu1 %1473  ;;  %4609 = vrcp.f32 %v5905_v10 }
 0x874   :  { %v1503_v29 = vsel %vm516_vm4, %v1474_v22, 0.0  ;;  %4611 = vrcp.f32 %v5846_v13 }
 0x875   :  { %1504 = vadd.xlane.f32.xlu0 %v1503_v29  ;;  %4613 = vrcp.f32 %v5850_v33 }
 0x876   :  { %4615 = vrcp.f32 %v5916_v25 }
 0x877   :  { %v1484_v11 = vpop.permute.xlu1 %1483  ;;  %4617 = vrcp.f32 %v5918_v14 }
 0x878   :  { %v1518_v52 = vsel %vm516_vm4, %v1484_v11, 0.0  ;;  %4619 = vrcp.f32 %v5859_v21 }
 0x879   :  { %1513 = vadd.xlane.f32.xlu0 %v1512_v40  ;;  %v7095_v40 = vld [vmem:[#allocation14_spill] sm:$0xff]  ;;  %4621 = vrcp.f32 %v5861_v37 }
 0x87a   :  { %v6096_v11 = vpop.eup %4603  ;;  %4623 = vrcp.f32 %v5922_v24 }
 0x87b   :  { %v1482_v20 = vpop.permute.xlu1 %1481  ;;  %v1912_v26 = vsel %vm1833_vm15, %v6096_v11, 0.0  ;;  %v4606_v36 = vpop.eup %4605  ;;  %4625 = vrcp.f32 %v5871_v53 }
 0x87c   :  { %v1488_v4 = vpop.permute.xlu0 %1487  ;;  %v1515_v18 = vsel %vm516_vm4, %v1482_v20, 0.0  ;;  %v7096_v20 = vpack.i.bf16 %v7094_v55, %v7095_v40  ;;  %4627 = vrcp.f32 %v5930_v38 }
 0x87d   :  { %1519 = vadd.xlane.f32.xlu0 %v1518_v52  ;;  %1516 = vadd.xlane.f32.xlu1 %v1515_v18  ;;  %v1524_v7 = vsel %vm516_vm4, %v1488_v4, 0.0  ;;  %v6104_v4 = vand.u32 127, %v359_v19  ;;  %v7097_v52 = vld [vmem:[#allocation26_spill] sm:$0xff]  ;;  %v7098_v18 = vld [vmem:[#allocation20_spill] sm:$0xff]  ;;  %4629 = vrcp.f32 %v5933_v17 }
 0x87e   :  { %4631 = vrcp.f32 %v5875_v58 }
 0x87f   :  { %4633 = vrcp.f32 %v5943_v35 }
 0x880   :  { %v1486_v2 = vpop.permute.xlu0 %1485 }
 0x881   :  { %1525 = vadd.xlane.f32.xlu1 %v1524_v7  ;;  %v1521_v9 = vsel %vm516_vm4, %v1486_v2, 0.0  ;;  %v7099_v2 = vpack.i.bf16 %v7097_v52, %v7098_v18  ;;  %v6112_v7 = vadd.s32 1, %v6104_v4 }
 0x882   :  { %1522 = vadd.xlane.f32.xlu0 %v1521_v9  ;;  %v7100_v9 = vld [vmem:[#allocation21_spill] sm:$0xff] }
 0x883   :  { %v6123_v56 = vmul.u32 25, %v6112_v7 }
 0x886   :  { %3052 = vadd.xlane.f32.xlu0 %v3051_v15  ;;  %v6117_v15 = vshrl.u32 %v359_v19, 7 }
 0x888   :  { %vm385_vm3 = vcmp.lt.s32.totalorder %v6117_v15, %v6123_v56  ;;  %v6133_v48 = vadd.s32 8, %v6117_v15  ;;  %v6143_v10 = vadd.s32 16, %v6117_v15  ;;  %v6165_v19 = vadd.s32 32, %v6117_v15 }
 0x88a   :  { %1910 = vadd.xlane.f32.xlu0 %v1909_v61  ;;  %v6120_v61 = vmul.u32 25, %v6104_v4  ;;  %vm386_vm7 = vcmp.lt.s32.totalorder %v6133_v48, %v6123_v56  ;;  %vm387_vm10 = vcmp.lt.s32.totalorder %v6143_v10, %v6123_v56 }
 0x88c   :  { %vm373_vm2 = vcmp.ge.s32.totalorder %v6117_v15, %v6120_v61  ;;  %vm374_vm6 = vcmp.ge.s32.totalorder %v6133_v48, %v6120_v61  ;;  %vm375_vm9 = vcmp.ge.s32.totalorder %v6143_v10, %v6120_v61 }
 0x88d   :  { %vm395_vm5 = vmand %vm373_vm2, %vm385_vm3  ;;  %vm389_vm2 = vcmp.lt.s32.totalorder %v6165_v19, %v6123_v56 }
 0x88e   :  { %v3640_v13 = vsel %vm395_vm5, 1.0, %v7087_v5  ;;  %vm396_vm8 = vmand %vm374_vm6, %vm386_vm7 }
 0x88f   :  { %v3641_v33 = vsel %vm396_vm8, 1.0, %v7087_v5  ;;  %vm397_vm12 = vmand %vm375_vm9, %vm387_vm10 }
 0x890   :  { %v3642_v55 = vsel %vm397_vm12, 1.0, %v7087_v5 }
 0x8ac   :  { %v6090_v8 = vpop.xlane.xlu1 %2464 }
 0x8b0   :  { %v6092_v3 = vpop.xlane.xlu1 %1907 }
 0x8b4   :  { %v1492_v0 = vpop.permute.xlu1 %1491 }
 0x8b5   :  { %v1530_v22 = vsel %vm1040_vm1, %v1492_v0, 0.0  ;;  %v2482_v0 = vmul.f32 %v4606_v36, %v5525_v49  ;;  %vm377_vm1 = vcmp.ge.s32.totalorder %v6165_v19, %v6120_v61  ;;  %v6202_v36 = vadd.s32 56, %v6117_v15 }
 0x8b6   :  { %1531 = vadd.xlane.f32.xlu1 %v1530_v22  ;;  %v4608_v22 = vpop.eup %4607  ;;  %vm399_vm3 = vmand %vm377_vm1, %vm389_vm2  ;;  %vm6946_vm2 = vcmask 7168  }
 0x8b7   :  { %v4610_v49 = vpop.eup %4609  ;;  %v3644_v21 = vsel %vm399_vm3, 1.0, %v7087_v5  ;;  %vm380_vm12 = vcmp.ge.s32.totalorder %v6202_v36, %v6120_v61 }
 0x8b8   :  { %v1490_v45 = vpop.permute.xlu1 %1489 }
 0x8b9   :  { %v1527_v29 = vsel %vm516_vm4, %v1490_v45, 0.0  ;;  %v3067_v45 = vmul.f32 %v4608_v22, %v5535_v27  ;;  %v2483_v27 = vmul.f32 %v4610_v49, %v5545_v47  ;;  %v6215_v22 = vadd.s32 64, %v6117_v15 }
 0x8ba   :  { %1528 = vadd.xlane.f32.xlu0 %v1527_v29  ;;  %v6154_v29 = vadd.s32 24, %v6117_v15  ;;  %v6168_v25 = vpop.xlane.xlu0 %1904  ;;  %v6226_v49 = vadd.s32 72, %v6117_v15 }
 0x8bb   :  { %vm393_vm1 = vcmp.lt.s32.totalorder %v6215_v22, %v6123_v56 }
 0x8bc   :  { %vm376_vm13 = vcmp.ge.s32.totalorder %v6154_v29, %v6120_v61  ;;  %vm388_vm14 = vcmp.lt.s32.totalorder %v6154_v29, %v6123_v56 }
 0x8bd   :  { %vm398_vm15 = vmand %vm376_vm13, %vm388_vm14  ;;  %vm392_vm13 = vcmp.lt.s32.totalorder %v6202_v36, %v6123_v56 }
 0x8be   :  { %1913 = vadd.xlane.f32.xlu0 %v1912_v26  ;;  %v4612_v26 = vpop.eup %4611  ;;  %v3643_v14 = vsel %vm398_vm15, 1.0, %v7087_v5  ;;  %v6183_v18 = vpop.xlane.xlu0 %3049  ;;  %vm402_vm14 = vmand %vm380_vm12, %vm392_vm13  ;;  %vm381_vm15 = vcmp.ge.s32.totalorder %v6215_v22, %v6120_v61  ;;  %vm1995_vm12 = vcmask 1040384  }
 0x8bf   :  { %v3068_v47 = vmul.f32 %v4612_v26, %v5537_v31  ;;  %v4614_v40 = vpop.eup %4613  ;;  %vm403_vm3 = vmand %vm381_vm15, %vm393_vm1  ;;  %vm6945_vm15 = vcmask 10240  }
 0x8c0   :  { %v2484_v31 = vmul.f32 %v4614_v40, %v5547_v30  ;;  %v4616_v52 = vpop.eup %4615 }
 0x8c1   :  { %v3069_v30 = vmul.f32 %v4616_v52, %v5553_v54 }
 0x8c2   :  { %v6205_v37 = vpop.xlane.xlu0 %2467 }
 0x8d4   :  { %4414 = vrot.lane.b32.xlu0 %v7096_v20, %s4685_s0  ;;  %v6178_v20 = vadd.s32 40, %v6117_v15 }
 0x8d6   :  { %vm378_vm5 = vcmp.ge.s32.totalorder %v6178_v20, %v6120_v61  ;;  %vm390_vm6 = vcmp.lt.s32.totalorder %v6178_v20, %v6123_v56 }
 0x8d7   :  { %vm400_vm7 = vmand %vm378_vm5, %vm390_vm6  ;;  %vm382_vm5 = vcmp.ge.s32.totalorder %v6226_v49, %v6120_v61  ;;  %vm394_vm6 = vcmp.lt.s32.totalorder %v6226_v49, %v6123_v56 }
 0x8d8   :  { %4419 = vrot.lane.b32.xlu0 %v7099_v2, %s4685_s0  ;;  %v6191_v2 = vadd.s32 48, %v6117_v15 }
 0x8da   :  { %vm379_vm8 = vcmp.ge.s32.totalorder %v6191_v2, %v6120_v61  ;;  %vm391_vm9 = vcmp.lt.s32.totalorder %v6191_v2, %v6123_v56 }
 0x8db   :  { %vm401_vm10 = vmand %vm379_vm8, %vm391_vm9  ;;  %vm1580_vm8 = vcmask 1042432   ;;  %vm4691_vm9 = vmmov 1  }
 0x8dc   :  { %4424 = vrot.lane.b32.xlu0 %v7100_v9, %s4685_s0  ;;  %v4618_v9 = vpop.eup %4617  ;;  %vm6317_vm13 = vmpackc.low %vm1995_vm12, %vm4691_vm9 }
 0x8dd   :  { %v2485_v54 = vmul.f32 %v4618_v9, %v5555_v34 }
 0x8e0   :  { %4429 = vrot.lane.b32.xlu0 %v7101_v42, %s4685_s0  ;;  %v3645_v42 = vsel %vm400_vm7, 1.0, %v7087_v5  ;;  %vm404_vm7 = vmand %vm382_vm5, %vm394_vm6 }
 0x8e1   :  { %v3649_v52 = vsel %vm404_vm7, 1.0, %v7087_v5 }
 0x8e4   :  { %2508 = vrot.lane.b32.xlu0 %v2482_v0, %s4688_s17  ;;  %v4620_v0 = vpop.eup %4619 }
 0x8e5   :  { %v3070_v34 = vmul.f32 %v4620_v0, %v5561_v41  ;;  %v7103_v0 = vld [vmem:[#allocation58_spill] sm:$0xff] }
 0x8e8   :  { %3093 = vrot.lane.b32.xlu0 %v3067_v45, %s4687_s16  ;;  %v3646_v45 = vsel %vm401_vm10, 1.0, %v7087_v5  ;;  %vm4322_vm10 = vmpackc.low %vm1580_vm8, %vm4691_vm9 }
 0x8e9   :  { %1544 = vxpose.xlu1.b32.start [1/10] (short) (narrow) %v3640_v13, 8  ;;  %v4622_v13 = vpop.eup %4621 }
 0x8ea   :  { %v2486_v53 = vmul.f32 %v4622_v13, %v5571_v46 }
 0x8ec   :  { %2510 = vrot.lane.b32.xlu0 %v2483_v27, %s4688_s17  ;;  %v3647_v27 = vsel %vm402_vm14, 1.0, %v7087_v5  ;;  %vm1576_vm14 = vcmask 613376  }
 0x8ed   :  { %1545 = vxpose.xlu1.b32.cont [2/10] (short) (narrow) %v3641_v33, 8  ;;  %v4624_v33 = vpop.eup %4623 }
 0x8ee   :  { %v3071_v38 = vmul.f32 %v4624_v33, %v5565_v43  ;;  %v7108_v33 = vld [vmem:[#allocation45_spill] sm:$0xff] }
 0x8f0   :  { %3095 = vrot.lane.b32.xlu0 %v3068_v47, %s4687_s16 }
 0x8f1   :  { %1546 = vxpose.xlu1.b32.cont [3/10] (short) (narrow) %v3642_v55, 8 }
 0x8f4   :  { %2512 = vrot.lane.b32.xlu0 %v2484_v31, %s4688_s17 }
 0x8f5   :  { %1547 = vxpose.xlu1.b32.cont [4/10] (short) (narrow) %v3643_v14, 8 }
 0x8f8   :  { %3097 = vrot.lane.b32.xlu0 %v3069_v30, %s4687_s16 }
 0x8f9   :  { %1548 = vxpose.xlu1.b32.cont [5/10] (short) (narrow) %v3644_v21, 8 }
 0x8fa   :  { %v1511_v55 = vpop.xlane.xlu1 %1510 }
 0x8fb   :  { %v1536_v31 = vsel %vm6946_vm2, %v6017_v44, %v1511_v55 }
 0x8fc   :  { %2514 = vrot.lane.b32.xlu0 %v2485_v54, %s4688_s17 }
 0x8fd   :  { %1549 = vxpose.xlu1.b32.cont [6/10] (short) (narrow) %v3645_v42, 8  ;;  %v7102_v42 = vld [vmem:[#allocation31_spill] sm:$0xff] }
 0x8fe   :  { %v1508_v24 = vpop.xlane.xlu0 %1507  ;;  %4635 = vrcp.f32 %v7102_v42 }
 0x8ff   :  { %v1535_v26 = vsel %vm6946_vm2, %v6014_v39, %v1508_v24  ;;  %v4626_v39 = vpop.eup %4625 }
 0x900   :  { %3099 = vrot.lane.b32.xlu0 %v3070_v34, %s4687_s16  ;;  %v3072_v56 = vmul.f32 %v4626_v39, %v5605_v63  ;;  %v4628_v44 = vpop.eup %4627 }
 0x901   :  { %1550 = vxpose.xlu1.b32.cont [7/10] (short) (narrow) %v3646_v45, 8  ;;  %v2488_v63 = vmul.f32 %v4628_v44, %v5615_v60  ;;  %v4630_v9 = vpop.eup %4629  ;;  %v7104_v60 = vld [vmem:[#allocation33_spill] sm:$0xff] }
 0x902   :  { %v1505_v41 = vpop.xlane.xlu0 %1504  ;;  %v3073_v24 = vmul.f32 %v4630_v9, %v7103_v0  ;;  %v4632_v34 = vpop.eup %4631  ;;  %4637 = vrcp.f32 %v7104_v60  ;;  %v7120_v0 = vld [vmem:[#allocation46_spill] sm:$0xff] }
 0x903   :  { %v1534_v47 = vsel %vm6946_vm2, %v6011_v12, %v1505_v41  ;;  %v3648_v12 = vsel %vm403_vm3, 1.0, %v7087_v5  ;;  %v4634_v13 = vpop.eup %4633  ;;  %v7107_v41 = vld [vmem:[#allocation60_spill] sm:$0xff] }
 0x904   :  { %v4309_v40 = vpack.c.bf16 %v1535_v26, %v1534_v47  ;;  %2516 = vrot.lane.b32.xlu0 %v2486_v53, %s4688_s17  ;;  %v3074_v53 = vmul.f32 %v4634_v13, %v7107_v41  ;;  %v7109_v26 = vld [vmem:[#allocation23_spill] sm:$0xff]  ;;  %v7110_v47 = vld [vmem:[#allocation61_spill] sm:$0xff] }
 0x905   :  { %1551 = vxpose.xlu1.b32.cont [8/10] (short) (narrow) %v3647_v27, 8 }
 0x906   :  { %4310 = vmatpush3.bf16.msra.mxu1 %v4309_v40  ;;  %v1514_v46 = vpop.xlane.xlu0 %1513 }
 0x907   :  { %v1537_v14 = vsel %vm6946_vm2, %v6021_v23, %v1514_v46  ;;  %4311 = vmatprep.subr.bf16.mxu1 %v6943_v32  ;;  %v7111_v46 = vld [vmem:[#allocation54_spill] sm:$0xff] }
 0x908   :  { %v4312_v61 = vpack.c.bf16 %v1537_v14, %v1536_v31  ;;  %3101 = vrot.lane.b32.xlu0 %v3071_v38, %s4687_s16  ;;  %v4636_v27 = vpop.eup %4635  ;;  %v7113_v14 = vld [vmem:[#allocation67_spill] sm:$0xff] }
 0x909   :  { %1552 = vxpose.xlu1.b32.cont [9/10] (short) (narrow) %v3648_v12, 8  ;;  %v2490_v55 = vmul.f32 %v4636_v27, %v7110_v47  ;;  %v7112_v12 = vld [vmem:[#allocation62_spill] sm:$0xff] }
 0x90a   :  { %v1517_v17 = vpop.xlane.xlu1 %1516  ;;  %4313 = vmatpush3.bf16.msra.mxu1 %v4312_v61  ;;  %v1520_v43 = vpop.xlane.xlu0 %1519 }
 0x90b   :  { %v1538_v23 = vsel %vm6946_vm2, %v6034_v16, %v1517_v17  ;;  %v1539_v30 = vsel %vm6946_vm2, %v6032_v57, %v1520_v43  ;;  %4314 = vmatprep.subr.bf16.mxu1 %v6943_v32  ;;  %v7114_v17 = vld [vmem:[#allocation64_spill] sm:$0xff] }
 0x90c   :  { %v4315_v21 = vpack.c.bf16 %v1539_v30, %v1538_v23  ;;  %3103 = vrot.lane.b32.xlu0 %v3072_v56, %s4687_s16  ;;  %v4638_v40 = vpop.eup %4637  ;;  %v7116_v23 = vld [vmem:[#allocation56_spill] sm:$0xff] }
 0x90d   :  { %1553 = vxpose.xlu1.b32.end [10/10] (short) (narrow) %v3649_v52, 8  ;;  %v3075_v39 = vmul.f32 %v4638_v40, %v7112_v12  ;;  %v7115_v52 = vld [vmem:[#allocation57_spill] sm:$0xff] }
 0x90e   :  { %v1526_v58 = vpop.xlane.xlu1 %1525  ;;  %4316 = vmatpush3.bf16.msra.mxu1 %v4315_v21 }
 0x90f   :  { %v1541_v54 = vsel %vm6946_vm2, %v6060_v28, %v1526_v58  ;;  %v1523_v16 = vpop.xlane.xlu0 %1522  ;;  %4317 = vmatprep.subr.bf16.mxu1 %v6943_v32  ;;  %v7105_v28 = vld [vmem:[#allocation59_spill] sm:$0xff] }
 0x910   :  { %v1540_v57 = vsel %vm6946_vm2, %v6056_v59, %v1523_v16  ;;  %2520 = vrot.lane.b32.xlu0 %v2488_v63, %s4688_s17  ;;  %v2489_v45 = vmul.f32 %v4632_v34, %v7105_v28  ;;  %v7106_v59 = vld [vmem:[#allocation9_spill] sm:$0xff]  ;;  %v7117_v58 = vld [vmem:[#allocation63_spill] sm:$0xff]  ;;  %v7122_v28 = vld [vmem:[#allocation38_spill] sm:$0xff] }
 0x911   :  { %v4318_v35 = vpack.c.bf16 %v1541_v54, %v1540_v57  ;;  %4639 = vrcp.f32 %v7106_v59  ;;  %v7118_v54 = vld [vmem:[#allocation66_spill] sm:$0xff]  ;;  %v7119_v57 = vld [vmem:[#allocation65_spill] sm:$0xff] }
 0x912   :  { %4641 = vrcp.f32 %v7108_v33 }
 0x913   :  { %4319 = vmatpush3.bf16.msra.mxu1 %v4318_v35  ;;  %4643 = vrcp.f32 %v7109_v26  ;;  %v3053_v38 = vpop.xlane.xlu0 %3052 }
 0x914   :  { %3105 = vrot.lane.b32.xlu0 %v3073_v24, %s4687_s16  ;;  %4320 = vmatprep.subr.bf16.mxu1 %v6943_v32  ;;  %4645 = vrcp.f32 %v7111_v46 }
 0x915   :  { %4647 = vrcp.f32 %v6183_v18 }
 0x916   :  { %4649 = vrcp.f32 %v7113_v14 }
 0x917   :  { %4651 = vrcp.f32 %v3053_v38  ;;  %v6305_v13 = vpop.xlane.xlu0 %1910 }
 0x918   :  { %2522 = vrot.lane.b32.xlu0 %v2489_v45, %s4688_s17  ;;  %4653 = vrcp.f32 %v6090_v8 }
 0x919   :  { %4655 = vrcp.f32 %v6205_v37  ;;  %v7121_v37 = vld [vmem:[#allocation51_spill] sm:$0xff] }
 0x91b   :  { %v4640_v31 = vpop.eup %4639 }
 0x91c   :  { %3107 = vrot.lane.b32.xlu0 %v3074_v53, %s4687_s16  ;;  %v4642_v61 = vpop.eup %4641  ;;  %v3076_v43 = vmul.f32 %v4640_v31, %v7114_v17  ;;  %v7125_v17 = vld [vmem:[#allocation7_spill] sm:$0xff]  ;;  %v7137_v31 = vld [vmem:[#allocation50_spill] sm:$0xff] }
 0x91d   :  { %v4644_v56 = vpop.eup %4643  ;;  %v2487_v44 = vmul.f32 %v4642_v61, %v7115_v52  ;;  %4657 = vrcp.f32 %v7125_v17 }
 0x91e   :  { %v4646_v18 = vpop.eup %4645  ;;  %v3077_v30 = vmul.f32 %v4644_v56, %v7116_v23  ;;  %v7126_v56 = vld [vmem:[#allocation39_spill] sm:$0xff] }
 0x91f   :  { %v4648_v21 = vpop.eup %4647  ;;  %v2491_v63 = vmul.f32 %v4646_v18, %v7117_v58  ;;  %v4407_v52 = vunpack.i.h.bf16 %v7126_v56  ;;  %v7127_v18 = vld [vmem:[#allocation47_spill] sm:$0xff] }
 0x920   :  { %2524 = vrot.lane.b32.xlu0 %v2490_v55, %s4688_s17  ;;  %v4650_v9 = vpop.eup %4649  ;;  %v3078_v16 = vmul.f32 %v4648_v21, %v7118_v54  ;;  %4659 = vrcp.f32 %v7127_v18  ;;  %v7128_v21 = vld [vmem:[#allocation53_spill] sm:$0xff]  ;;  %v7129_v54 = vld [vmem:[#allocation32_spill] sm:$0xff] }
 0x921   :  { %v4652_v8 = vpop.eup %4651  ;;  %v2492_v42 = vmul.f32 %v4650_v9, %v7119_v57  ;;  %v4412_v58 = vunpack.i.h.bf16 %v7128_v21  ;;  %4661 = vrcp.f32 %v7129_v54 }
 0x922   :  { %v4654_v35 = vpop.eup %4653  ;;  %v3079_v24 = vmul.f32 %v4652_v8, %v7120_v0  ;;  %v7130_v0 = vld [vmem:[#allocation37_spill] sm:$0xff] }
 0x923   :  { %v2493_v34 = vmul.f32 %v4654_v35, %v7121_v37  ;;  %v4656_v60 = vpop.eup %4655  ;;  %4663 = vrcp.f32 %v7130_v0  ;;  %v7131_v37 = vld [vmem:[#allocation52_spill] sm:$0xff] }
 0x924   :  { %3109 = vrot.lane.b32.xlu0 %v3075_v39, %s4687_s16  ;;  %v2494_v45 = vmul.f32 %v4656_v60, %v7122_v28 }
 0x927   :  { %v4658_v8 = vpop.eup %4657 }
 0x928   :  { %3111 = vrot.lane.b32.xlu0 %v3076_v43, %s4687_s16 }
 0x92a   :  { %v4660_v60 = vpop.eup %4659 }
 0x92b   :  { %2518 = vrot.lane.b32.xlu1 %v2487_v44, %s4688_s17  ;;  %v4406_v44 = vunpack.i.l.bf16 %v7126_v56 }
 0x92c   :  { %3113 = vrot.lane.b32.xlu0 %v3077_v30, %s4687_s16 }
 0x92d   :  { %v4325_v30 = vpack.c.bf16 %v4407_v52, %v4406_v44  ;;  %v7139_v52 = vld [vmem:[#allocation42_spill] sm:$0xff] }
 0x92f   :  { %2526 = vrot.lane.b32.xlu1 %v2491_v63, %s4688_s17  ;;  %v4411_v63 = vunpack.i.l.bf16 %v7128_v21 }
 0x930   :  { %3115 = vrot.lane.b32.xlu0 %v3078_v16, %s4687_s16 }
 0x931   :  { %v4328_v57 = vpack.c.bf16 %v4412_v58, %v4411_v63  ;;  %v7141_v58 = vld [vmem:[#allocation34_spill] sm:$0xff] }
 0x933   :  { %2528 = vrot.lane.b32.xlu1 %v2492_v42, %s4688_s17 }
 0x934   :  { %3117 = vrot.lane.b32.xlu0 %v3079_v24, %s4687_s16 }
 0x937   :  { %2530 = vrot.lane.b32.xlu1 %v2493_v34, %s4688_s17  ;;  %v1928_v34 = vmul.f32 %v4658_v8, %v7131_v37 }
 0x93b   :  { %2532 = vrot.lane.b32.xlu1 %v2494_v45, %s4688_s17 }
 0x943   :  { %v1532_v59 = vpop.xlane.xlu1 %1531 }
 0x944   :  { %v1543_v53 = vsel %vm6946_vm2, %v6068_v50, %v1532_v59 }
 0x947   :  { %v1529_v41 = vpop.xlane.xlu0 %1528 }
 0x948   :  { %v1542_v27 = vsel %vm6946_vm2, %v6066_v62, %v1529_v41  ;;  %v7132_v41 = vld [vmem:[#allocation35_spill] sm:$0xff] }
 0x949   :  { %v4321_v33 = vpack.c.bf16 %v1543_v53, %v1542_v27  ;;  %4665 = vrcp.f32 %v7132_v41  ;;  %v7133_v27 = vld [vmem:[#allocation55_spill] sm:$0xff] }
 0x94b   :  { %4323 = vmatpush3.bf16.msk.msra.mxu1 %vm4322_vm10, %v4321_v33  ;;  %v6312_v26 = vpop.xlane.xlu0 %1913  ;;  %v1929_v33 = vmul.f32 %v4660_v60, %v7133_v27 }
 0x94c   :  { %4324 = vmatprep.subr.bf16.mxu1 %v6943_v32 }
 0x94f   :  { %v4415_v47 = vpop.permute.xlu0 %4414 }
 0x950   :  { %v4417_v42 = vunpack.i.h.bf16 %v4415_v47  ;;  %v4416_v35 = vunpack.i.l.bf16 %v4415_v47  ;;  %v4662_v47 = vpop.eup %4661 }
 0x952   :  { %v4332_v28 = vpack.c.bf16 %v4417_v42, %v4416_v35 }
 0x953   :  { %v4420_v55 = vpop.permute.xlu0 %4419 }
 0x954   :  { %v4422_v40 = vunpack.i.h.bf16 %v4420_v55  ;;  %v4421_v46 = vunpack.i.l.bf16 %v4420_v55 }
 0x956   :  { %v4339_v38 = vpack.c.bf16 %v4422_v40, %v4421_v46  ;;  %v7134_v40 = vld [vmem:[#allocation43_spill] sm:$0xff] }
 0x957   :  { %v4425_v12 = vpop.permute.xlu0 %4424  ;;  %4667 = vrcp.f32 %v7134_v40 }
 0x958   :  { %4340 = vmatpush3.bf16.msra.mxu0 %v4339_v38  ;;  %v4427_v45 = vunpack.i.h.bf16 %v4425_v12  ;;  %v4426_v59 = vunpack.i.l.bf16 %v4425_v12  ;;  %v7135_v38 = vld [vmem:[#allocation3_spill] sm:$0xff] }
 0x959   :  { %4341 = vmatprep.subr.bf16.mxu0 %v6943_v32  ;;  %v1930_v12 = vmul.f32 %v4662_v47, %v7135_v38 }
 0x95a   :  { %v4335_v55 = vpack.c.bf16 %v4427_v45, %v4426_v59 }
 0x95b   :  { %v4430_v62 = vpop.permute.xlu0 %4429 }
 0x95c   :  { %v4432_v50 = vunpack.i.h.bf16 %v4430_v62  ;;  %v4431_v39 = vunpack.i.l.bf16 %v4430_v62  ;;  %v4664_v62 = vpop.eup %4663 }
 0x95d   :  { %v4666_v17 = vpop.eup %4665 }
 0x95e   :  { %v4342_v14 = vpack.c.bf16 %v4432_v50, %v4431_v39  ;;  %v7136_v50 = vld [vmem:[#allocation44_spill] sm:$0xff]  ;;  %v1932_v44 = vmul.f32 %v4666_v17, %v7139_v52 }
 0x95f   :  { %v6321_v61 = vpop.permute.xlu0 %2508  ;;  %4669 = vrcp.f32 %v7136_v50 }
 0x960   :  { %4344 = vmatpush3.bf16.msk.msra.mxu0 %vm6317_vm13, %v4342_v14  ;;  %v1931_v14 = vmul.f32 %v4664_v62, %v7137_v31 }
 0x961   :  { %v4668_v18 = vpop.eup %4667 }
 0x962   :  { %v1933_v63 = vmul.f32 %v4668_v18, %v7141_v58 }
 0x963   :  { %v3094_v43 = vpop.permute.xlu0 %3093 }
 0x964   :  { %4217 = vmatmul.mubr.msk.f32.vlgmr.msra.gmra.mrb[76].mxu0 %vm1796_vm11, %v3094_v43  ;;  %v7138_v43 = vld [vmem:[#allocation41_spill] sm:$0xff] }
 0x965   :  { %4219 = vmatprep.mubr.msk.f32.mxu0 %vm4684_vm0, %v7087_v5  ;;  %4671 = vrcp.f32 %v7138_v43 }
 0x967   :  { %v6332_v23 = vpop.permute.xlu0 %2510 }
 0x969   :  { %v1560_v9 = vpop.trf.xlu1 }
 0x96a   :  { %4074 = vmatmul.mubr.msk.f32.vlgmr.msra.gmra.mrb[40].mxu1 %vm1576_vm14, %v1560_v9  ;;  %v4670_v9 = vpop.eup %4669 }
 0x96b   :  { %4326 = vmatpush3.bf16.msra.mxu1 %v4325_v30  ;;  %v3096_v16 = vpop.permute.xlu0 %3095  ;;  %4122 = vmatprep.mubr.msk.f32.mxu1 %vm4684_vm0, %v7087_v5  ;;  %v7140_v30 = vld [vmem:[#allocation11_spill] sm:$0xff] }
 0x96c   :  { %4220 = vmatmul.mubr.msk.f32.gmra.mrb[78].mxu0 %vm1796_vm11, %v3096_v16  ;;  %4327 = vmatprep.subr.bf16.mxu1 %v6943_v32  ;;  %4673 = vrcp.f32 %v7140_v30  ;;  %v7142_v16 = vld [vmem:[#allocation40_spill] sm:$0xff] }
 0x96d   :  { %4222 = vmatprep.mubr.msk.f32.mxu0 %vm4684_vm0, %v7087_v5  ;;  %4675 = vrcp.f32 %v6168_v25  ;;  %v1934_v8 = vmul.f32 %v4670_v9, %v7142_v16  ;;  %v7143_v25 = vld [vmem:[#allocation5_spill] sm:$0xff] }
 0x96e   :  { %4677 = vrcp.f32 %v6092_v3 }
 0x96f   :  { %4330 = vmatpush3.bf16.msk.msra.mxu1 %vm6317_vm13, %v4328_v57  ;;  %v6346_v24 = vpop.permute.xlu0 %2512  ;;  %v4672_v57 = vpop.eup %4671  ;;  %4679 = vrcp.f32 %v6305_v13 }
 0x970   :  { %4331 = vmatprep.subr.bf16.mxu1 %v6943_v32  ;;  %v1935_v35 = vmul.f32 %v4672_v57, %v7143_v25  ;;  %4681 = vrcp.f32 %v6312_v26 }
 0x972   :  { %4123 = vmatmul.mubr.msk.f32.vlgmr.msra.gmra.mrb[42].mxu1 %vm1796_vm11, %v1928_v34  ;;  %v7144_v34 = vld [vmem:[#allocation36_spill] sm:$0xff] }
 0x973   :  { %4333 = vmatpush3.bf16.msra.mxu1 %v4332_v28  ;;  %v3098_v53 = vpop.permute.xlu0 %3097  ;;  %4125 = vmatprep.mubr.msk.f32.mxu1 %vm4684_vm0, %v7087_v5 }
 0x974   :  { %4223 = vmatmul.mubr.msk.f32.gmra.mrb[80].mxu0 %vm1796_vm11, %v3098_v53  ;;  %4334 = vmatprep.subr.bf16.mxu1 %v6943_v32 }
 0x975   :  { %4225 = vmatprep.mubr.msk.f32.mxu0 %vm4684_vm0, %v7087_v5 }
 0x976   :  { %4126 = vmatmul.mubr.msk.f32.gmra.mrb[44].mxu1 %vm1796_vm11, %v1929_v33  ;;  %v4674_v0 = vpop.eup %4673 }
 0x977   :  { %4337 = vmatpush3.bf16.msk.msra.mxu1 %vm6317_vm13, %v4335_v55  ;;  %v6363_v46 = vpop.permute.xlu0 %2514  ;;  %4128 = vmatprep.mubr.msk.f32.mxu1 %vm4684_vm0, %v7087_v5  ;;  %v1936_v60 = vmul.f32 %v4674_v0, %v7144_v34  ;;  %v4676_v3 = vpop.eup %4675 }
 0x978   :  { %4345 = vmatprep.subr.bf16.mxu1 %v6943_v32  ;;  %v1937_v13 = vmul.f32 %v4676_v3, %v6050_v51  ;;  %v4678_v45 = vpop.eup %4677 }
 0x979   :  { %v1938_v41 = vmul.f32 %v4678_v45, %v6046_v6  ;;  %v4680_v53 = vpop.eup %4679 }
 0x97a   :  { %4129 = vmatmul.mubr.msk.f32.gmra.mrb[46].mxu1 %vm1796_vm11, %v1930_v12  ;;  %v1939_v51 = vmul.f32 %v4680_v53, %v6084_v1  ;;  %v4682_v27 = vpop.eup %4681 }
 0x97b   :  { %v3100_v39 = vpop.permute.xlu0 %3099  ;;  %4131 = vmatprep.mubr.msk.f32.mxu1 %vm4684_vm0, %v7087_v5  ;;  %v1940_v6 = vmul.f32 %v4682_v27, %v6096_v11 }
 0x97c   :  { %4226 = vmatmul.mubr.msk.f32.gmra.mrb[82].mxu0 %vm1796_vm11, %v3100_v39 }
 0x97d   :  { %4228 = vmatprep.mubr.msk.f32.mxu0 %vm4684_vm0, %v7087_v5 }
 0x97e   :  { %4132 = vmatmul.mubr.msk.f32.gmra.mrb[48].mxu1 %vm1796_vm11, %v1931_v14 }
 0x97f   :  { %v6379_v56 = vpop.permute.xlu0 %2516  ;;  %4134 = vmatprep.mubr.msk.f32.mxu1 %vm4684_vm0, %v7087_v5 }
 0x982   :  { %4135 = vmatmul.mubr.msk.f32.gmra.mrb[50].mxu1 %vm1796_vm11, %v1932_v44 }
 0x983   :  { %v3102_v21 = vpop.permute.xlu0 %3101  ;;  %4137 = vmatprep.mubr.msk.f32.mxu1 %vm4684_vm0, %v7087_v5 }
 0x984   :  { %4229 = vmatmul.mubr.msk.f32.gmra.mrb[84].mxu0 %vm1796_vm11, %v3102_v21 }
 0x985   :  { %4231 = vmatprep.mubr.msk.f32.mxu0 %vm4684_vm0, %v7087_v5 }
 0x986   :  { %4138 = vmatmul.mubr.msk.f32.gmra.mrb[52].mxu1 %vm1796_vm11, %v1933_v63 }
 0x987   :  { %v3104_v54 = vpop.permute.xlu0 %3103  ;;  %4140 = vmatprep.mubr.msk.f32.mxu1 %vm4684_vm0, %v7087_v5 }
 0x988   :  { %4232 = vmatmul.mubr.msk.f32.gmra.mrb[86].mxu0 %vm1796_vm11, %v3104_v54 }
 0x989   :  { %4234 = vmatprep.mubr.msk.f32.mxu0 %vm4684_vm0, %v7087_v5 }
 0x98a   :  { %4141 = vmatmul.mubr.msk.f32.gmra.mrb[54].mxu1 %vm1796_vm11, %v1934_v8 }
 0x98b   :  { %v2521_v42 = vpop.permute.xlu0 %2520  ;;  %4143 = vmatprep.mubr.msk.f32.mxu1 %vm4684_vm0, %v7087_v5 }
 0x98e   :  { %4144 = vmatmul.mubr.msk.f32.gmra.mrb[56].mxu1 %vm1796_vm11, %v1935_v35 }
 0x98f   :  { %v3106_v37 = vpop.permute.xlu0 %3105  ;;  %4146 = vmatprep.mubr.msk.f32.mxu1 %vm4684_vm0, %v7087_v5 }
 0x990   :  { %4235 = vmatmul.mubr.msk.f32.gmra.mrb[88].mxu0 %vm1796_vm11, %v3106_v37 }
 0x991   :  { %4237 = vmatprep.mubr.msk.f32.mxu0 %vm4684_vm0, %v7087_v5 }
 0x992   :  { %4147 = vmatmul.mubr.msk.f32.gmra.mrb[58].mxu1 %vm1796_vm11, %v1936_v60 }
 0x993   :  { %v2523_v28 = vpop.permute.xlu0 %2522  ;;  %4149 = vmatprep.mubr.msk.f32.mxu1 %vm4684_vm0, %v7087_v5 }
 0x996   :  { %4150 = vmatmul.mubr.msk.f32.gmra.mrb[60].mxu1 %vm1796_vm11, %v1937_v13 }
 0x997   :  { %v3108_v59 = vpop.permute.xlu0 %3107  ;;  %4152 = vmatprep.mubr.msk.f32.mxu1 %vm4684_vm0, %v7087_v5 }
 0x998   :  { %4238 = vmatmul.mubr.msk.f32.gmra.mrb[90].mxu0 %vm1796_vm11, %v3108_v59 }
 0x999   :  { %4240 = vmatprep.mubr.msk.f32.mxu0 %vm4684_vm0, %v7087_v5 }
 0x99a   :  { %4153 = vmatmul.mubr.msk.f32.gmra.mrb[62].mxu1 %vm1796_vm11, %v1938_v41 }
 0x99b   :  { %v2525_v26 = vpop.permute.xlu0 %2524  ;;  %4155 = vmatprep.mubr.msk.f32.mxu1 %vm4684_vm0, %v7087_v5 }
 0x99e   :  { %4156 = vmatmul.mubr.msk.f32.gmra.mrb[64].mxu1 %vm1796_vm11, %v1939_v51 }
 0x99f   :  { %v3110_v33 = vpop.permute.xlu0 %3109  ;;  %4158 = vmatprep.mubr.msk.f32.mxu1 %vm4684_vm0, %v7087_v5 }
 0x9a0   :  { %4241 = vmatmul.mubr.msk.f32.gmra.mrb[92].mxu0 %vm1796_vm11, %v3110_v33 }
 0x9a1   :  { %4243 = vmatprep.mubr.msk.f32.mxu0 %vm4684_vm0, %v7087_v5 }
 0x9a2   :  { %4159 = vmatmul.mubr.msk.f32.gmra.mrb[66].mxu1 %vm1796_vm11, %v1940_v6 }
 0x9a3   :  { %v3112_v47 = vpop.permute.xlu0 %3111  ;;  %4169 = vmatprep.mubr.msk.f32.mxu1 %vm4684_vm0, %v7087_v5 }
 0x9a4   :  { %4244 = vmatmul.mubr.msk.f32.gmra.mrb[94].mxu0 %vm1796_vm11, %v3112_v47 }
 0x9a5   :  { %4246 = vmatprep.mubr.msk.f32.mxu0 %vm4684_vm0, %v7087_v5 }
 0x9a6   :  { %4170 = vmatmul.mubr.msk.f32.vlgmr.msra.gmra.mrb[68].mxu1 %vm1796_vm11, %v6321_v61 }
 0x9a7   :  { %v3114_v1 = vpop.permute.xlu0 %3113  ;;  %4172 = vmatprep.mubr.msk.f32.mxu1 %vm4684_vm0, %v7087_v5 }
 0x9a8   :  { %4247 = vmatmul.mubr.msk.f32.gmra.mrb[96].mxu0 %vm1796_vm11, %v3114_v1 }
 0x9a9   :  { %4249 = vmatprep.mubr.msk.f32.mxu0 %vm4684_vm0, %v7087_v5 }
 0x9aa   :  { %4173 = vmatmul.mubr.msk.f32.gmra.mrb[70].mxu1 %vm1796_vm11, %v6332_v23  ;;  %v2519_v23 = vpop.permute.xlu1 %2518 }
 0x9ab   :  { %v3116_v11 = vpop.permute.xlu0 %3115  ;;  %4175 = vmatprep.mubr.msk.f32.mxu1 %vm4684_vm0, %v7087_v5 }
 0x9ac   :  { %4250 = vmatmul.mubr.msk.f32.gmra.mrb[98].mxu0 %vm1796_vm11, %v3116_v11 }
 0x9ad   :  { %4252 = vmatprep.mubr.msk.f32.mxu0 %vm4684_vm0, %v7087_v5 }
 0x9ae   :  { %4176 = vmatmul.mubr.msk.f32.gmra.mrb[72].mxu1 %vm1796_vm11, %v6346_v24  ;;  %v2527_v24 = vpop.permute.xlu1 %2526 }
 0x9af   :  { %v3118_v61 = vpop.permute.xlu0 %3117  ;;  %4178 = vmatprep.mubr.msk.f32.mxu1 %vm4684_vm0, %v7087_v5 }
 0x9b0   :  { %4253 = vmatmul.mubr.msk.f32.gmra.mrb[100].mxu0 %vm1796_vm11, %v3118_v61 }
 0x9b2   :  { %4179 = vmatmul.mubr.msk.f32.gmra.mrb[74].mxu1 %vm1796_vm11, %v6363_v46  ;;  %v2529_v55 = vpop.permute.xlu1 %2528 }
 0x9b3   :  { %4181 = vmatprep.mubr.msk.f32.mxu1 %vm4684_vm0, %v7087_v5 }
 0x9b6   :  { %4182 = vmatmul.mubr.msk.f32.gmra.mrb[76].mxu1 %vm1796_vm11, %v6379_v56  ;;  %v2531_v40 = vpop.permute.xlu1 %2530 }
 0x9b7   :  { %4184 = vmatprep.mubr.msk.f32.mxu1 %vm4684_vm0, %v7087_v5 }
 0x9ba   :  { %4185 = vmatmul.mubr.msk.f32.gmra.mrb[78].mxu1 %vm1796_vm11, %v2519_v23  ;;  %v2533_v46 = vpop.permute.xlu1 %2532 }
 0x9bb   :  { %4187 = vmatprep.mubr.msk.f32.mxu1 %vm4684_vm0, %v7087_v5 }
 0x9be   :  { %4188 = vmatmul.mubr.msk.f32.gmra.mrb[80].mxu1 %vm1796_vm11, %v2521_v42 }
 0x9bf   :  { %4190 = vmatprep.mubr.msk.f32.mxu1 %vm4684_vm0, %v7087_v5 }
 0x9c2   :  { %4191 = vmatmul.mubr.msk.f32.gmra.mrb[82].mxu1 %vm1796_vm11, %v2523_v28 }
 0x9c3   :  { %4193 = vmatprep.mubr.msk.f32.mxu1 %vm4684_vm0, %v7087_v5 }
 0x9c6   :  { %4194 = vmatmul.mubr.msk.f32.gmra.mrb[84].mxu1 %vm1796_vm11, %v2525_v26 }
 0x9c7   :  { %4196 = vmatprep.mubr.msk.f32.mxu1 %vm4684_vm0, %v7087_v5 }
 0x9ca   :  { %4197 = vmatmul.mubr.msk.f32.gmra.mrb[86].mxu1 %vm1796_vm11, %v2527_v24 }
 0x9cb   :  { %4199 = vmatprep.mubr.msk.f32.mxu1 %vm4684_vm0, %v7087_v5 }
 0x9ce   :  { %4200 = vmatmul.mubr.msk.f32.gmra.mrb[88].mxu1 %vm1796_vm11, %v2529_v55 }
 0x9cf   :  { %4202 = vmatprep.mubr.msk.f32.mxu1 %vm4684_vm0, %v7087_v5 }
 0x9d2   :  { %4203 = vmatmul.mubr.msk.f32.gmra.mrb[90].mxu1 %vm1796_vm11, %v2531_v40 }
 0x9d3   :  { %4205 = vmatprep.mubr.msk.f32.mxu1 %vm4684_vm0, %v7087_v5 }
 0x9d6   :  { %4206 = vmatmul.mubr.msk.f32.gmra.mrb[92].mxu1 %vm1796_vm11, %v2533_v46 }
 0x9d7   :  { %4281 = vmatprep.mubr.msk.f32.mxu1 %vm4684_vm0, %v7087_v5  ;;  %vm2294_vm0 = vcmask 27648  }
 0xa37   :  { %v3234_v38 = vpop.f32.mrb[76].mxu0 }
 0xa38   :  { %3311 = vrot.lane.b32.xlu1 %v3234_v38, %s4689_s18  ;;  %v4218_v12 = vpop.f32.mrb[77].mxu0 }
 0xa3d   :  { %v1650_v62 = vpop.f32.mrb[40].mxu1 }
 0xa3e   :  { %v1654_v50 = vsub.f32 0.0, %v1650_v62  ;;  %v4075_v39 = vpop.f32.mrb[41].mxu1 }
 0xa3f   :  { %v3239_v31 = vpop.f32.mrb[78].mxu0 }
 0xa40   :  { %3313 = vrot.lane.b32.xlu0 %v3239_v31, %s4689_s18  ;;  %v4221_v14 = vpop.f32.mrb[79].mxu0  ;;  %1656 = vst.msk [vmem:[%s6853_s4] sm:$0x7] %vm6945_vm15, %v1654_v50 }
 0xa45   :  { %v6499_v17 = vpop.f32.mrb[42].mxu1 }
 0xa46   :  { %v4124_v43 = vpop.f32.mrb[43].mxu1 }
 0xa47   :  { %v3244_v56 = vpop.f32.mrb[80].mxu0 }
 0xa48   :  { %3315 = vrot.lane.b32.xlu1 %v3244_v56, %s4689_s18  ;;  %v4224_v52 = vpop.f32.mrb[81].mxu0 }
 0xa49   :  { %v6502_v44 = vpop.f32.mrb[44].mxu1 }
 0xa4a   :  { %v4127_v18 = vpop.f32.mrb[45].mxu1 }
 0xa4d   :  { %v6504_v30 = vpop.f32.mrb[46].mxu1 }
 0xa4e   :  { %v4130_v21 = vpop.f32.mrb[47].mxu1 }
 0xa4f   :  { %v3249_v58 = vpop.f32.mrb[82].mxu0 }
 0xa50   :  { %3317 = vrot.lane.b32.xlu0 %v3249_v58, %s4689_s18  ;;  %v4227_v63 = vpop.f32.mrb[83].mxu0 }
 0xa51   :  { %v6507_v9 = vpop.f32.mrb[48].mxu1 }
 0xa52   :  { %v4133_v54 = vpop.f32.mrb[49].mxu1 }
 0xa55   :  { %v6509_v16 = vpop.f32.mrb[50].mxu1 }
 0xa56   :  { %v4136_v8 = vpop.f32.mrb[51].mxu1 }
 0xa57   :  { %v3254_v57 = vpop.f32.mrb[84].mxu0 }
 0xa58   :  { %3319 = vrot.lane.b32.xlu1 %v3254_v57, %s4689_s18  ;;  %v4230_v42 = vpop.f32.mrb[85].mxu0 }
 0xa59   :  { %v6512_v25 = vpop.f32.mrb[52].mxu1 }
 0xa5a   :  { %v4139_v35 = vpop.f32.mrb[53].mxu1 }
 0xa5b   :  { %v3259_v0 = vpop.f32.mrb[86].mxu0 }
 0xa5c   :  { %3321 = vrot.lane.b32.xlu0 %v3259_v0, %s4689_s18  ;;  %v4233_v37 = vpop.f32.mrb[87].mxu0 }
 0xa5d   :  { %v6515_v34 = vpop.f32.mrb[54].mxu1 }
 0xa5e   :  { %v4142_v60 = vpop.f32.mrb[55].mxu1 }
 0xa61   :  { %v6517_v3 = vpop.f32.mrb[56].mxu1 }
 0xa62   :  { %v4145_v28 = vpop.f32.mrb[57].mxu1 }
 0xa63   :  { %v3264_v13 = vpop.f32.mrb[88].mxu0 }
 0xa64   :  { %3323 = vrot.lane.b32.xlu1 %v3264_v13, %s4689_s18  ;;  %v4236_v45 = vpop.f32.mrb[89].mxu0 }
 0xa65   :  { %v6520_v59 = vpop.f32.mrb[58].mxu1 }
 0xa66   :  { %v4148_v41 = vpop.f32.mrb[59].mxu1 }
 0xa69   :  { %v6522_v53 = vpop.f32.mrb[60].mxu1 }
 0xa6a   :  { %v4151_v26 = vpop.f32.mrb[61].mxu1 }
 0xa6b   :  { %v3269_v51 = vpop.f32.mrb[90].mxu0 }
 0xa6c   :  { %3325 = vrot.lane.b32.xlu0 %v3269_v51, %s4689_s18  ;;  %v4239_v27 = vpop.f32.mrb[91].mxu0 }
 0xa6d   :  { %v6525_v33 = vpop.f32.mrb[62].mxu1 }
 0xa6e   :  { %v4154_v6 = vpop.f32.mrb[63].mxu1 }
 0xa71   :  { %v6527_v47 = vpop.f32.mrb[64].mxu1 }
 0xa72   :  { %v4157_v1 = vpop.f32.mrb[65].mxu1 }
 0xa73   :  { %v3274_v11 = vpop.f32.mrb[92].mxu0 }
 0xa74   :  { %3327 = vrot.lane.b32.xlu1 %v3274_v11, %s4689_s18  ;;  %v4242_v61 = vpop.f32.mrb[93].mxu0 }
 0xa75   :  { %v6530_v23 = vpop.f32.mrb[66].mxu1  ;;  %v7145_v61 = vld [vmem:[#allocation2_spill] sm:$0xff] }
 0xa76   :  { %v4160_v24 = vpop.f32.mrb[67].mxu1 }
 0xa77   :  { %v3279_v55 = vpop.f32.mrb[94].mxu0 }
 0xa78   :  { %3329 = vrot.lane.b32.xlu0 %v3279_v55, %s4689_s18  ;;  %v4245_v40 = vpop.f32.mrb[95].mxu0 }
 0xa79   :  { %v6533_v46 = vpop.f32.mrb[68].mxu1 }
 0xa7a   :  { %v4171_v38 = vpop.f32.mrb[69].mxu1 }
 0xa7b   :  { %v3284_v12 = vpop.f32.mrb[96].mxu0  ;;  %v7146_v38 = vld [vmem:[#allocation4_spill] sm:$0xff] }
 0xa7c   :  { %3331 = vrot.lane.b32.xlu1 %v3284_v12, %s4689_s18  ;;  %v4248_v62 = vpop.f32.mrb[97].mxu0 }
 0xa7d   :  { %v6536_v50 = vpop.f32.mrb[70].mxu1 }
 0xa7e   :  { %v4174_v39 = vpop.f32.mrb[71].mxu1 }
 0xa7f   :  { %v3289_v31 = vpop.f32.mrb[98].mxu0 }
 0xa80   :  { %3333 = vrot.lane.b32.xlu0 %v3289_v31, %s4689_s18  ;;  %v4251_v14 = vpop.f32.mrb[99].mxu0  ;;  %v7147_v31 = vld [vmem:[#allocation6_spill] sm:$0xff] }
 0xa81   :  { %v6539_v43 = vpop.f32.mrb[72].mxu1 }
 0xa82   :  { %v4177_v56 = vpop.f32.mrb[73].mxu1 }
 0xa83   :  { %v3294_v52 = vpop.f32.mrb[100].mxu0 }
 0xa84   :  { %3335 = vrot.lane.b32.xlu1 %v3294_v52, %s4689_s18  ;;  %v4254_v18 = vpop.f32.mrb[101].mxu0 }
 0xa85   :  { %v6542_v21 = vpop.f32.mrb[74].mxu1  ;;  %v7148_v18 = vld [vmem:[#allocation8_spill] sm:$0xff] }
 0xa86   :  { %v4180_v58 = vpop.f32.mrb[75].mxu1 }
 0xa89   :  { %v6544_v63 = vpop.f32.mrb[76].mxu1 }
 0xa8a   :  { %v4183_v54 = vpop.f32.mrb[77].mxu1 }
 0xa8d   :  { %v6546_v8 = vpop.f32.mrb[78].mxu1 }
 0xa8e   :  { %v4186_v57 = vpop.f32.mrb[79].mxu1 }
 0xa91   :  { %v6548_v42 = vpop.f32.mrb[80].mxu1 }
 0xa92   :  { %v4189_v35 = vpop.f32.mrb[81].mxu1 }
 0xa93   :  { %v7149_v35 = vld [vmem:[#allocation10_spill] sm:$0xff] }
 0xa95   :  { %v6550_v0 = vpop.f32.mrb[82].mxu1 }
 0xa96   :  { %v4192_v37 = vpop.f32.mrb[83].mxu1 }
 0xa99   :  { %v6552_v60 = vpop.f32.mrb[84].mxu1 }
 0xa9a   :  { %v4195_v28 = vpop.f32.mrb[85].mxu1 }
 0xa9d   :  { %v6554_v13 = vpop.f32.mrb[86].mxu1 }
 0xa9e   :  { %v4198_v45 = vpop.f32.mrb[87].mxu1 }
 0xaa1   :  { %v6556_v41 = vpop.f32.mrb[88].mxu1 }
 0xaa2   :  { %v4201_v26 = vpop.f32.mrb[89].mxu1 }
 0xaa3   :  { %v7150_v26 = vld [vmem:[#allocation12_spill] sm:$0xff] }
 0xaa5   :  { %v6558_v51 = vpop.f32.mrb[90].mxu1 }
 0xaa6   :  { %v4204_v27 = vpop.f32.mrb[91].mxu1 }
 0xaa9   :  { %v6560_v6 = vpop.f32.mrb[92].mxu1 }
 0xaaa   :  { %v4207_v1 = vpop.f32.mrb[93].mxu1  ;;  %v3312_v11 = vpop.permute.xlu1 %3311 }
 0xaab   :  { %v3350_v24 = vsub.f32 %v7145_v61, %v3312_v11 }
 0xaad   :  { %v3363_v55 = vmul.f32 %v3350_v24, %v3350_v24  ;;  %v7151_v24 = vld [vmem:[#allocation16_spill] sm:$0xff] }
 0xaaf   :  { %3389 = vrot.lane.b32.xlu0 %v3363_v55, %s4685_s0 }
 0xab2   :  { %v3314_v40 = vpop.permute.xlu0 %3313 }
 0xab3   :  { %v3351_v12 = vsub.f32 %v7146_v38, %v3314_v40 }
 0xab5   :  { %v3364_v62 = vmul.f32 %v3351_v12, %v3351_v12 }
 0xab7   :  { %3391 = vrot.lane.b32.xlu1 %v3364_v62, %s4685_s0  ;;  %v7152_v62 = vld [vmem:[#allocation18_spill] sm:$0xff] }
 0xaba   :  { %v3316_v39 = vpop.permute.xlu1 %3315 }
 0xabb   :  { %v3352_v14 = vsub.f32 %v7147_v31, %v3316_v39 }
 0xabd   :  { %v3365_v56 = vmul.f32 %v3352_v14, %v3352_v14 }
 0xabf   :  { %3393 = vrot.lane.b32.xlu0 %v3365_v56, %s4685_s0 }
 0xac2   :  { %v3318_v52 = vpop.permute.xlu0 %3317 }
 0xac3   :  { %v3353_v58 = vsub.f32 %v7148_v18, %v3318_v52  ;;  %v7153_v52 = vld [vmem:[#allocation22_spill] sm:$0xff] }
 0xac5   :  { %v3366_v54 = vmul.f32 %v3353_v58, %v3353_v58 }
 0xac7   :  { %3395 = vrot.lane.b32.xlu1 %v3366_v54, %s4685_s0 }
 0xaca   :  { %v3320_v57 = vpop.permute.xlu1 %3319 }
 0xacb   :  { %v3354_v37 = vsub.f32 %v7149_v35, %v3320_v57 }
 0xacd   :  { %v3367_v28 = vmul.f32 %v3354_v37, %v3354_v37  ;;  %v7154_v37 = vld [vmem:[#allocation24_spill] sm:$0xff] }
 0xace   :  { %v3322_v45 = vpop.permute.xlu0 %3321 }
 0xacf   :  { %v3355_v27 = vsub.f32 %v7150_v26, %v3322_v45  ;;  %3397 = vrot.lane.b32.xlu0 %v3367_v28, %s4685_s0 }
 0xad1   :  { %v3368_v1 = vmul.f32 %v3355_v27, %v3355_v27 }
 0xad3   :  { %3399 = vrot.lane.b32.xlu1 %v3368_v1, %s4685_s0  ;;  %v7155_v1 = vld [vmem:[#allocation28_spill] sm:$0xff] }
 0xad6   :  { %v3324_v11 = vpop.permute.xlu1 %3323 }
 0xad7   :  { %v3356_v55 = vsub.f32 %v7151_v24, %v3324_v11 }
 0xad9   :  { %v3369_v40 = vmul.f32 %v3356_v55, %v3356_v55 }
 0xadb   :  { %3401 = vrot.lane.b32.xlu0 %v3369_v40, %s4685_s0 }
 0xade   :  { %v3326_v12 = vpop.permute.xlu0 %3325 }
 0xadf   :  { %v3357_v39 = vsub.f32 %v7152_v62, %v3326_v12  ;;  %v7156_v12 = vld [vmem:[#allocation29_spill] sm:$0xff] }
 0xae1   :  { %v3370_v14 = vmul.f32 %v3357_v39, %v3357_v39 }
 0xae3   :  { %3403 = vrot.lane.b32.xlu1 %v3370_v14, %s4685_s0 }
 0xae6   :  { %v3328_v56 = vpop.permute.xlu1 %3327 }
 0xae7   :  { %v3358_v58 = vsub.f32 %v7153_v52, %v3328_v56 }
 0xae9   :  { %v3371_v54 = vmul.f32 %v3358_v58, %v3358_v58  ;;  %v7157_v58 = vld [vmem:[#allocation30_spill] sm:$0xff] }
 0xaea   :  { %v3330_v57 = vpop.permute.xlu0 %3329 }
 0xaeb   :  { %v3359_v28 = vsub.f32 %v7154_v37, %v3330_v57  ;;  %3405 = vrot.lane.b32.xlu0 %v3371_v54, %s4685_s0 }
 0xaed   :  { %v3372_v45 = vmul.f32 %v3359_v28, %v3359_v28 }
 0xaee   :  { %v3332_v27 = vpop.permute.xlu1 %3331 }
 0xaef   :  { %v3360_v11 = vsub.f32 %v7155_v1, %v3332_v27  ;;  %3407 = vrot.lane.b32.xlu1 %v3372_v45, %s4685_s0 }
 0xaf1   :  { %v3373_v55 = vmul.f32 %v3360_v11, %v3360_v11 }
 0xaf2   :  { %v3334_v40 = vpop.permute.xlu0 %3333 }
 0xaf3   :  { %v3361_v39 = vsub.f32 %v7156_v12, %v3334_v40  ;;  %3409 = vrot.lane.b32.xlu0 %v3373_v55, %s4685_s0 }
 0xaf5   :  { %v3374_v14 = vmul.f32 %v3361_v39, %v3361_v39 }
 0xaf6   :  { %v3336_v56 = vpop.permute.xlu1 %3335 }
 0xaf7   :  { %v3362_v32 = vsub.f32 %v7157_v58, %v3336_v56  ;;  %3411 = vrot.lane.b32.xlu1 %v3374_v14, %s4685_s0 }
 0xaf9   :  { %v3375_v57 = vmul.f32 %v3362_v32, %v3362_v32 }
 0xafb   :  { %3413 = vrot.lane.b32.xlu0 %v3375_v57, %s4685_s0 }
 0xb21   :  { %v3390_v54 = vpop.permute.xlu0 %3389 }
 0xb22   :  { %v3428_v28 = vsel %vm516_vm4, %v3390_v54, 0.0 }
 0xb23   :  { %3429 = vadd.xlane.f32.xlu0 %v3428_v28 }
 0xb29   :  { %v3392_v45 = vpop.permute.xlu1 %3391 }
 0xb2a   :  { %v3431_v27 = vsel %vm516_vm4, %v3392_v45, 0.0 }
 0xb2b   :  { %3432 = vadd.xlane.f32.xlu0 %v3431_v27 }
 0xb31   :  { %v3394_v11 = vpop.permute.xlu0 %3393 }
 0xb32   :  { %v3434_v55 = vsel %vm516_vm4, %v3394_v11, 0.0 }
 0xb33   :  { %3435 = vadd.xlane.f32.xlu1 %v3434_v55 }
 0xb39   :  { %v3396_v40 = vpop.permute.xlu1 %3395 }
 0xb3a   :  { %v3437_v39 = vsel %vm516_vm4, %v3396_v40, 0.0 }
 0xb3b   :  { %3438 = vadd.xlane.f32.xlu0 %v3437_v39 }
 0xb41   :  { %v3398_v14 = vpop.permute.xlu0 %3397 }
 0xb42   :  { %v3440_v32 = vsel %vm516_vm4, %v3398_v14, 0.0 }
 0xb43   :  { %3441 = vadd.xlane.f32.xlu1 %v3440_v32 }
 0xb45   :  { %v3400_v56 = vpop.permute.xlu1 %3399 }
 0xb46   :  { %v3443_v57 = vsel %vm516_vm4, %v3400_v56, 0.0 }
 0xb47   :  { %3444 = vadd.xlane.f32.xlu0 %v3443_v57 }
 0xb4d   :  { %v3402_v54 = vpop.permute.xlu0 %3401 }
 0xb4e   :  { %v3446_v28 = vsel %vm516_vm4, %v3402_v54, 0.0 }
 0xb4f   :  { %3447 = vadd.xlane.f32.xlu1 %v3446_v28 }
 0xb55   :  { %v3404_v45 = vpop.permute.xlu1 %3403 }
 0xb56   :  { %v3449_v27 = vsel %vm516_vm4, %v3404_v45, 0.0 }
 0xb57   :  { %3450 = vadd.xlane.f32.xlu0 %v3449_v27 }
 0xb5d   :  { %v3406_v11 = vpop.permute.xlu0 %3405 }
 0xb5e   :  { %v3452_v55 = vsel %vm516_vm4, %v3406_v11, 0.0 }
 0xb5f   :  { %3453 = vadd.xlane.f32.xlu1 %v3452_v55 }
 0xb61   :  { %v3408_v40 = vpop.permute.xlu1 %3407 }
 0xb62   :  { %v3455_v39 = vsel %vm516_vm4, %v3408_v40, 0.0 }
 0xb63   :  { %3456 = vadd.xlane.f32.xlu0 %v3455_v39 }
 0xb70   :  { %2141 = vrot.lane.b32.xlu1 %v6499_v17, %s4689_s18  ;;  %v3410_v17 = vpop.permute.xlu0 %3409 }
 0xb74   :  { %2145 = vrot.lane.b32.xlu1 %v6504_v30, %s4689_s18  ;;  %v3458_v30 = vsel %vm516_vm4, %v3410_v17, 0.0 }
 0xb78   :  { %2149 = vrot.lane.b32.xlu1 %v6509_v16, %s4689_s18  ;;  %v6650_v16 = vpop.permute.xlu0 %3413 }
 0xb79   :  { %2143 = vrot.lane.b32.xlu0 %v6502_v44, %s4689_s18  ;;  %v3412_v44 = vpop.permute.xlu1 %3411 }
 0xb7c   :  { %2153 = vrot.lane.b32.xlu1 %v6515_v34, %s4689_s18 }
 0xb7d   :  { %2147 = vrot.lane.b32.xlu0 %v6507_v9, %s4689_s18  ;;  %v3461_v9 = vsel %vm516_vm4, %v3412_v44, 0.0 }
 0xb80   :  { %2157 = vrot.lane.b32.xlu1 %v6520_v59, %s4689_s18 }
 0xb81   :  { %2151 = vrot.lane.b32.xlu0 %v6512_v25, %s4689_s18 }
 0xb84   :  { %2161 = vrot.lane.b32.xlu1 %v6525_v33, %s4689_s18 }
 0xb85   :  { %2155 = vrot.lane.b32.xlu0 %v6517_v3, %s4689_s18 }
 0xb88   :  { %2165 = vrot.lane.b32.xlu1 %v6530_v23, %s4689_s18 }
 0xb89   :  { %2159 = vrot.lane.b32.xlu0 %v6522_v53, %s4689_s18 }
 0xb8c   :  { %2729 = vrot.lane.b32.xlu1 %v6536_v50, %s4689_s18 }
 0xb8d   :  { %2163 = vrot.lane.b32.xlu0 %v6527_v47, %s4689_s18 }
 0xb90   :  { %2733 = vrot.lane.b32.xlu1 %v6542_v21, %s4689_s18 }
 0xb91   :  { %2727 = vrot.lane.b32.xlu0 %v6533_v46, %s4689_s18 }
 0xb94   :  { %2737 = vrot.lane.b32.xlu1 %v6546_v8, %s4689_s18 }
 0xb95   :  { %2731 = vrot.lane.b32.xlu0 %v6539_v43, %s4689_s18 }
 0xb98   :  { %2741 = vrot.lane.b32.xlu1 %v6550_v0, %s4689_s18 }
 0xb99   :  { %2735 = vrot.lane.b32.xlu0 %v6544_v63, %s4689_s18 }
 0xb9c   :  { %2745 = vrot.lane.b32.xlu1 %v6554_v13, %s4689_s18 }
 0xb9d   :  { %2739 = vrot.lane.b32.xlu0 %v6548_v42, %s4689_s18 }
 0xba0   :  { %2749 = vrot.lane.b32.xlu1 %v6558_v51, %s4689_s18 }
 0xba1   :  { %2743 = vrot.lane.b32.xlu0 %v6552_v60, %s4689_s18 }
 0xba5   :  { %2747 = vrot.lane.b32.xlu0 %v6556_v41, %s4689_s18 }
 0xbb0   :  { %v6654_v25 = vpop.xlane.xlu0 %3429 }
 0xbb8   :  { %v6656_v34 = vpop.xlane.xlu0 %3432 }
 0xbc0   :  { %v6658_v3 = vpop.xlane.xlu1 %3435 }
 0xbc4   :  { %3459 = vadd.xlane.f32.xlu1 %v3458_v30  ;;  %3462 = vadd.xlane.f32.xlu0 %v3461_v9 }
 0xbc8   :  { %v6660_v59 = vpop.xlane.xlu0 %3438 }
 0xbd0   :  { %v6662_v53 = vpop.xlane.xlu1 %3441 }
 0xbd4   :  { %v6664_v33 = vpop.xlane.xlu0 %3444 }
 0xbda   :  { %2751 = vrot.lane.b32.xlu0 %v6560_v6, %s4689_s18 }
 0xbdc   :  { %v6666_v47 = vpop.xlane.xlu1 %3447 }
 0xbe4   :  { %v6668_v23 = vpop.xlane.xlu0 %3450 }
 0xbec   :  { %v6670_v46 = vpop.xlane.xlu1 %3453 }
 0xbf0   :  { %v6672_v50 = vpop.xlane.xlu0 %3456  ;;  %v2142_v43 = vpop.permute.xlu1 %2141 }
 0xbf1   :  { %v2180_v21 = vsub.f32 %v7145_v61, %v2142_v43 }
 0xbf3   :  { %v2193_v63 = vmul.f32 %v2180_v21, %v2180_v21 }
 0xbf4   :  { %v2144_v8 = vpop.permute.xlu0 %2143  ;;  %v2146_v42 = vpop.permute.xlu1 %2145 }
 0xbf5   :  { %v2181_v0 = vsub.f32 %v7146_v38, %v2144_v8  ;;  %v2182_v60 = vsub.f32 %v7147_v31, %v2146_v42  ;;  %2219 = vrot.lane.b32.xlu0 %v2193_v63, %s4685_s0 }
 0xbf7   :  { %v2194_v13 = vmul.f32 %v2181_v0, %v2181_v0  ;;  %v2195_v41 = vmul.f32 %v2182_v60, %v2182_v60 }
 0xbf8   :  { %v2148_v51 = vpop.permute.xlu0 %2147  ;;  %v2150_v6 = vpop.permute.xlu1 %2149 }
 0xbf9   :  { %v2183_v14 = vsub.f32 %v7148_v18, %v2148_v51  ;;  %v2184_v32 = vsub.f32 %v7149_v35, %v2150_v6  ;;  %2221 = vrot.lane.b32.xlu1 %v2194_v13, %s4685_s0  ;;  %2223 = vrot.lane.b32.xlu0 %v2195_v41, %s4685_s0 }
 0xbfb   :  { %v2196_v56 = vmul.f32 %v2183_v14, %v2183_v14  ;;  %v2197_v57 = vmul.f32 %v2184_v32, %v2184_v32 }
 0xbfc   :  { %v2152_v54 = vpop.permute.xlu0 %2151  ;;  %v2154_v28 = vpop.permute.xlu1 %2153 }
 0xbfd   :  { %v2185_v45 = vsub.f32 %v7150_v26, %v2152_v54  ;;  %v2186_v27 = vsub.f32 %v7151_v24, %v2154_v28  ;;  %2225 = vrot.lane.b32.xlu1 %v2196_v56, %s4685_s0  ;;  %2227 = vrot.lane.b32.xlu0 %v2197_v57, %s4685_s0 }
 0xbff   :  { %v2198_v11 = vmul.f32 %v2185_v45, %v2185_v45  ;;  %v2199_v55 = vmul.f32 %v2186_v27, %v2186_v27 }
 0xc00   :  { %v2156_v40 = vpop.permute.xlu0 %2155  ;;  %v2158_v39 = vpop.permute.xlu1 %2157 }
 0xc01   :  { %v2187_v17 = vsub.f32 %v7152_v62, %v2156_v40  ;;  %v2188_v44 = vsub.f32 %v7153_v52, %v2158_v39  ;;  %2229 = vrot.lane.b32.xlu1 %v2198_v11, %s4685_s0  ;;  %2231 = vrot.lane.b32.xlu0 %v2199_v55, %s4685_s0 }
 0xc03   :  { %v2200_v30 = vmul.f32 %v2187_v17, %v2187_v17  ;;  %v2201_v9 = vmul.f32 %v2188_v44, %v2188_v44 }
 0xc04   :  { %v2160_v43 = vpop.permute.xlu0 %2159  ;;  %v2162_v21 = vpop.permute.xlu1 %2161 }
 0xc05   :  { %v2189_v63 = vsub.f32 %v7154_v37, %v2160_v43  ;;  %v2190_v8 = vsub.f32 %v7155_v1, %v2162_v21  ;;  %2233 = vrot.lane.b32.xlu1 %v2200_v30, %s4685_s0  ;;  %2235 = vrot.lane.b32.xlu0 %v2201_v9, %s4685_s0 }
 0xc07   :  { %v2202_v42 = vmul.f32 %v2189_v63, %v2189_v63  ;;  %v2203_v0 = vmul.f32 %v2190_v8, %v2190_v8 }
 0xc08   :  { %v2164_v60 = vpop.permute.xlu0 %2163  ;;  %v2166_v13 = vpop.permute.xlu1 %2165 }
 0xc09   :  { %v2191_v41 = vsub.f32 %v7156_v12, %v2164_v60  ;;  %v2192_v51 = vsub.f32 %v7157_v58, %v2166_v13  ;;  %2237 = vrot.lane.b32.xlu1 %v2202_v42, %s4685_s0  ;;  %2239 = vrot.lane.b32.xlu0 %v2203_v0, %s4685_s0 }
 0xc0b   :  { %v2204_v6 = vmul.f32 %v2191_v41, %v2191_v41  ;;  %v2205_v14 = vmul.f32 %v2192_v51, %v2192_v51 }
 0xc0c   :  { %v2728_v32 = vpop.permute.xlu0 %2727  ;;  %v2730_v56 = vpop.permute.xlu1 %2729 }
 0xc0d   :  { %v2766_v57 = vsub.f32 %v7145_v61, %v2728_v32  ;;  %v2767_v54 = vsub.f32 %v7146_v38, %v2730_v56  ;;  %2241 = vrot.lane.b32.xlu1 %v2204_v6, %s4685_s0  ;;  %2243 = vrot.lane.b32.xlu0 %v2205_v14, %s4685_s0 }
 0xc0f   :  { %v2779_v28 = vmul.f32 %v2766_v57, %v2766_v57  ;;  %v2780_v45 = vmul.f32 %v2767_v54, %v2767_v54 }
 0xc10   :  { %v2732_v27 = vpop.permute.xlu0 %2731  ;;  %v2734_v11 = vpop.permute.xlu1 %2733 }
 0xc11   :  { %v2768_v55 = vsub.f32 %v7147_v31, %v2732_v27  ;;  %v2769_v40 = vsub.f32 %v7148_v18, %v2734_v11  ;;  %2805 = vrot.lane.b32.xlu1 %v2779_v28, %s4685_s0  ;;  %2807 = vrot.lane.b32.xlu0 %v2780_v45, %s4685_s0 }
 0xc13   :  { %v2781_v39 = vmul.f32 %v2768_v55, %v2768_v55  ;;  %v2782_v61 = vmul.f32 %v2769_v40, %v2769_v40 }
 0xc14   :  { %v2736_v17 = vpop.permute.xlu0 %2735  ;;  %v2738_v38 = vpop.permute.xlu1 %2737 }
 0xc15   :  { %v2770_v44 = vsub.f32 %v7149_v35, %v2736_v17  ;;  %v2771_v30 = vsub.f32 %v7150_v26, %v2738_v38  ;;  %2809 = vrot.lane.b32.xlu1 %v2781_v39, %s4685_s0  ;;  %2811 = vrot.lane.b32.xlu0 %v2782_v61, %s4685_s0 }
 0xc17   :  { %v2783_v9 = vmul.f32 %v2770_v44, %v2770_v44  ;;  %v2784_v31 = vmul.f32 %v2771_v30, %v2771_v30 }
 0xc18   :  { %v2740_v43 = vpop.permute.xlu0 %2739  ;;  %v2742_v18 = vpop.permute.xlu1 %2741 }
 0xc19   :  { %v2772_v21 = vsub.f32 %v7151_v24, %v2740_v43  ;;  %v2773_v63 = vsub.f32 %v7152_v62, %v2742_v18  ;;  %2813 = vrot.lane.b32.xlu1 %v2783_v9, %s4685_s0  ;;  %2815 = vrot.lane.b32.xlu0 %v2784_v31, %s4685_s0 }
 0xc1b   :  { %v2785_v8 = vmul.f32 %v2772_v21, %v2772_v21  ;;  %v2786_v35 = vmul.f32 %v2773_v63, %v2773_v63 }
 0xc1c   :  { %v2744_v42 = vpop.permute.xlu0 %2743  ;;  %v2746_v26 = vpop.permute.xlu1 %2745 }
 0xc1d   :  { %v2774_v0 = vsub.f32 %v7153_v52, %v2744_v42  ;;  %v2775_v60 = vsub.f32 %v7154_v37, %v2746_v26  ;;  %2817 = vrot.lane.b32.xlu1 %v2785_v8, %s4685_s0  ;;  %2819 = vrot.lane.b32.xlu0 %v2786_v35, %s4685_s0 }
 0xc1f   :  { %v2787_v13 = vmul.f32 %v2774_v0, %v2774_v0  ;;  %v2788_v24 = vmul.f32 %v2775_v60, %v2775_v60 }
 0xc20   :  { %v2748_v41 = vpop.permute.xlu0 %2747  ;;  %v2750_v62 = vpop.permute.xlu1 %2749 }
 0xc21   :  { %v2776_v51 = vsub.f32 %v7155_v1, %v2748_v41  ;;  %v2777_v6 = vsub.f32 %v7156_v12, %v2750_v62  ;;  %2821 = vrot.lane.b32.xlu1 %v2787_v13, %s4685_s0  ;;  %2823 = vrot.lane.b32.xlu0 %v2788_v24, %s4685_s0 }
 0xc23   :  { %v2789_v14 = vmul.f32 %v2776_v51, %v2776_v51  ;;  %v2790_v52 = vmul.f32 %v2777_v6, %v2777_v6 }
 0xc25   :  { %2825 = vrot.lane.b32.xlu1 %v2789_v14, %s4685_s0  ;;  %2827 = vrot.lane.b32.xlu0 %v2790_v52, %s4685_s0 }
 0xc51   :  { %v6724_v37 = vpop.xlane.xlu0 %3462  ;;  %v6728_v1 = vpop.xlane.xlu1 %3459 }
 0xc55   :  { %v2752_v32 = vpop.permute.xlu0 %2751 }
 0xc56   :  { %v2778_v56 = vsub.f32 %v7157_v58, %v2752_v32 }
 0xc58   :  { %v2791_v57 = vmul.f32 %v2778_v56, %v2778_v56 }
 0xc5a   :  { %2829 = vrot.lane.b32.xlu1 %v2791_v57, %s4685_s0 }
 0xc67   :  { %v2220_v12 = vpop.permute.xlu0 %2219 }
 0xc68   :  { %v2258_v9 = vsel %vm516_vm4, %v2220_v12, 0.0 }
 0xc6b   :  { %v2224_v54 = vpop.permute.xlu0 %2223  ;;  %v2222_v28 = vpop.permute.xlu1 %2221 }
 0xc6c   :  { %v2261_v45 = vsel %vm516_vm4, %v2222_v28, 0.0  ;;  %v2264_v21 = vsel %vm516_vm4, %v2224_v54, 0.0 }
 0xc6d   :  { %2262 = vadd.xlane.f32.xlu0 %v2261_v45 }
 0xc6f   :  { %v2228_v27 = vpop.permute.xlu0 %2227  ;;  %v2226_v11 = vpop.permute.xlu1 %2225 }
 0xc70   :  { %v2267_v55 = vsel %vm516_vm4, %v2226_v11, 0.0  ;;  %v2270_v35 = vsel %vm516_vm4, %v2228_v27, 0.0 }
 0xc71   :  { %2268 = vadd.xlane.f32.xlu0 %v2267_v55 }
 0xc73   :  { %v2230_v40 = vpop.permute.xlu1 %2229  ;;  %v2232_v39 = vpop.permute.xlu0 %2231 }
 0xc74   :  { %v2273_v58 = vsel %vm516_vm4, %v2230_v40, 0.0  ;;  %v2276_v60 = vsel %vm516_vm4, %v2232_v39, 0.0 }
 0xc75   :  { %2274 = vadd.xlane.f32.xlu0 %v2273_v58 }
 0xc77   :  { %v2234_v61 = vpop.permute.xlu1 %2233  ;;  %v2236_v38 = vpop.permute.xlu0 %2235 }
 0xc78   :  { %v2279_v17 = vsel %vm516_vm4, %v2234_v61, 0.0  ;;  %v2282_v62 = vsel %vm516_vm4, %v2236_v38, 0.0  ;;  %v3464_v38 = vsel %vm2294_vm0, %v6650_v16, 0.0 }
 0xc79   :  { %2280 = vadd.xlane.f32.xlu0 %v2279_v17 }
 0xc7b   :  { %v2238_v44 = vpop.permute.xlu1 %2237  ;;  %v2240_v43 = vpop.permute.xlu0 %2239 }
 0xc7c   :  { %v2285_v30 = vsel %vm516_vm4, %v2238_v44, 0.0  ;;  %v2288_v14 = vsel %vm516_vm4, %v2240_v43, 0.0 }
 0xc7d   :  { %2286 = vadd.xlane.f32.xlu0 %v2285_v30 }
 0xc7e   :  { %2259 = vadd.xlane.f32.xlu1 %v2258_v9  ;;  %v428_v9 = vmul.u32 50, %v6104_v4  ;;  %v4692_v4 = vmov 1.0|1.0  }
 0xc7f   :  { %v2242_v31 = vpop.permute.xlu1 %2241  ;;  %v2244_v42 = vpop.permute.xlu0 %2243 }
 0xc80   :  { %v2291_v18 = vsel %vm516_vm4, %v2242_v31, 0.0  ;;  %v2295_v57 = vsel %vm2294_vm0, %v2244_v42, 0.0  ;;  %v442_v31 = vmul.u32 50, %v6112_v7  ;;  %vm429_vm11 = vcmp.ge.s32.totalorder %v6117_v15, %v428_v9 }
 0xc81   :  { %2292 = vadd.xlane.f32.xlu0 %v2291_v18  ;;  %vm430_vm1 = vcmp.ge.s32.totalorder %v6133_v48, %v428_v9  ;;  %vm431_vm6 = vcmp.ge.s32.totalorder %v6143_v10, %v428_v9  ;;  %vm432_vm9 = vcmp.ge.s32.totalorder %v6154_v29, %v428_v9  ;;  %vm433_vm14 = vcmp.ge.s32.totalorder %v6165_v19, %v428_v9 }
 0xc82   :  { %2265 = vadd.xlane.f32.xlu1 %v2264_v21  ;;  %vm443_vm3 = vcmp.lt.s32.totalorder %v6117_v15, %v442_v31  ;;  %vm445_vm7 = vcmp.lt.s32.totalorder %v6143_v10, %v442_v31  ;;  %vm446_vm10 = vcmp.lt.s32.totalorder %v6154_v29, %v442_v31  ;;  %v7158_v7 = vmov 0.0|0.0  }
 0xc83   :  { %v2806_v63 = vpop.permute.xlu1 %2805  ;;  %v2808_v24 = vpop.permute.xlu0 %2807  ;;  %vm456_vm5 = vmand %vm429_vm11, %vm443_vm3  ;;  %vm434_vm3 = vcmp.ge.s32.totalorder %v6178_v20, %v428_v9  ;;  %vm448_vm15 = vcmp.lt.s32.totalorder %v6178_v20, %v442_v31  ;;  %v425_v10 = vadd.s32 80, %v6117_v15  ;;  %v427_v20 = vadd.s32 96, %v6117_v15 }
 0xc84   :  { %v2844_v8 = vsel %vm516_vm4, %v2806_v63, 0.0  ;;  %v2847_v45 = vsel %vm516_vm4, %v2808_v24, 0.0  ;;  %vm458_vm13 = vmand %vm431_vm6, %vm445_vm7  ;;  %vm449_vm6 = vcmp.lt.s32.totalorder %v6191_v2, %v442_v31 }
 0xc85   :  { %2845 = vadd.xlane.f32.xlu0 %v2844_v8  ;;  %vm459_vm11 = vmand %vm432_vm9, %vm446_vm10  ;;  %vm441_vm2 = vcmp.ge.s32.totalorder %v427_v20, %v428_v9 }
 0xc86   :  { %2271 = vadd.xlane.f32.xlu1 %v2270_v35  ;;  %vm461_vm7 = vmand %vm434_vm3, %vm448_vm15 }
 0xc87   :  { %v2810_v26 = vpop.permute.xlu1 %2809  ;;  %v2812_v52 = vpop.permute.xlu0 %2811 }
 0xc88   :  { %v2850_v0 = vsel %vm516_vm4, %v2810_v26, 0.0  ;;  %v2853_v27 = vsel %vm516_vm4, %v2812_v52, 0.0 }
 0xc89   :  { %2851 = vadd.xlane.f32.xlu0 %v2850_v0 }
 0xc8a   :  { %2277 = vadd.xlane.f32.xlu1 %v2276_v60 }
 0xc8b   :  { %v2814_v13 = vpop.permute.xlu1 %2813  ;;  %v2816_v54 = vpop.permute.xlu0 %2815 }
 0xc8c   :  { %v2856_v41 = vsel %vm516_vm4, %v2814_v13, 0.0  ;;  %v2859_v55 = vsel %vm516_vm4, %v2816_v54, 0.0 }
 0xc8d   :  { %2857 = vadd.xlane.f32.xlu0 %v2856_v41 }
 0xc8e   :  { %2283 = vadd.xlane.f32.xlu1 %v2282_v62 }
 0xc8f   :  { %v2818_v51 = vpop.permute.xlu1 %2817  ;;  %v2820_v11 = vpop.permute.xlu0 %2819 }
 0xc90   :  { %v2862_v6 = vsel %vm516_vm4, %v2818_v51, 0.0  ;;  %v2865_v39 = vsel %vm516_vm4, %v2820_v11, 0.0 }
 0xc91   :  { %2863 = vadd.xlane.f32.xlu0 %v2862_v6 }
 0xc92   :  { %2289 = vadd.xlane.f32.xlu1 %v2288_v14 }
 0xc93   :  { %v2822_v32 = vpop.permute.xlu1 %2821  ;;  %v2824_v40 = vpop.permute.xlu0 %2823 }
 0xc94   :  { %v2868_v56 = vsel %vm516_vm4, %v2822_v32, 0.0  ;;  %v2871_v58 = vsel %vm516_vm4, %v2824_v40, 0.0 }
 0xc95   :  { %2869 = vadd.xlane.f32.xlu0 %v2868_v56 }
 0xc96   :  { %2296 = vadd.xlane.f32.xlu1 %v2295_v57 }
 0xc97   :  { %v2826_v12 = vpop.permute.xlu1 %2825  ;;  %v2828_v61 = vpop.permute.xlu0 %2827 }
 0xc98   :  { %v2874_v28 = vsel %vm516_vm4, %v2826_v12, 0.0  ;;  %v2877_v17 = vsel %vm516_vm4, %v2828_v61, 0.0  ;;  %vm444_vm4 = vcmp.lt.s32.totalorder %v6133_v48, %v442_v31 }
 0xc99   :  { %2875 = vadd.xlane.f32.xlu0 %v2874_v28  ;;  %vm457_vm8 = vmand %vm430_vm1, %vm444_vm4 }
 0xc9a   :  { %2848 = vadd.xlane.f32.xlu1 %v2847_v45  ;;  %vm4346_vm12 = vmpackc.low %vm457_vm8, %vm456_vm5  ;;  %vm435_vm5 = vcmp.ge.s32.totalorder %v6191_v2, %v428_v9  ;;  %vm436_vm8 = vcmp.ge.s32.totalorder %v6202_v36, %v428_v9 }
 0xc9b   :  { %4347 = vmatpush3.bf16.msk.msra.mxu1 %vm4346_vm12, %v4692_v4  ;;  %vm4349_vm1 = vmpackc.low %vm459_vm11, %vm458_vm13  ;;  %vm450_vm12 = vcmp.lt.s32.totalorder %v6202_v36, %v442_v31  ;;  %vm437_vm13 = vcmp.ge.s32.totalorder %v6215_v22, %v428_v9  ;;  %vm452_vm11 = vcmp.lt.s32.totalorder %v6226_v49, %v442_v31 }
 0xc9c   :  { %4348 = vmatprep.subr.bf16.mxu1 %v7158_v7  ;;  %vm6785_vm10 = vmand %vm435_vm5, %vm449_vm6  ;;  %vm453_vm5 = vcmp.lt.s32.totalorder %v425_v10, %v442_v31 }
 0xc9d   :  { %vm463_vm15 = vmand %vm436_vm8, %vm450_vm12 }
 0xc9e   :  { %2854 = vadd.xlane.f32.xlu1 %v2853_v27  ;;  %vm4355_vm3 = vmpackc.low %vm463_vm15, %vm6785_vm10  ;;  %vm455_vm10 = vcmp.lt.s32.totalorder %v427_v20, %v442_v31 }
 0xc9f   :  { %4350 = vmatpush3.bf16.msk.msra.mxu1 %vm4349_vm1, %v4692_v4 }
 0xca0   :  { %4351 = vmatprep.subr.bf16.mxu1 %v7158_v7 }
 0xca2   :  { %2860 = vadd.xlane.f32.xlu1 %v2859_v55 }
 0xca6   :  { %2866 = vadd.xlane.f32.xlu1 %v2865_v39 }
 0xcaa   :  { %2872 = vadd.xlane.f32.xlu1 %v2871_v58 }
 0xcae   :  { %2878 = vadd.xlane.f32.xlu1 %v2877_v17 }
 0xcb2   :  { %3465 = vadd.xlane.f32.xlu1 %v3464_v38 }
 0xccc   :  { %v2830_v44 = vpop.permute.xlu1 %2829 }
 0xccd   :  { %v2880_v30 = vsel %vm2294_vm0, %v2830_v44, 0.0  ;;  %vm447_vm0 = vcmp.lt.s32.totalorder %v6165_v19, %v442_v31  ;;  %v426_v19 = vadd.s32 88, %v6117_v15 }
 0xcce   :  { %2881 = vadd.xlane.f32.xlu0 %v2880_v30  ;;  %vm6773_vm4 = vmand %vm433_vm14, %vm447_vm0  ;;  %vm451_vm14 = vcmp.lt.s32.totalorder %v6215_v22, %v442_v31  ;;  %vm438_vm0 = vcmp.ge.s32.totalorder %v6226_v49, %v428_v9 }
 0xccf   :  { %vm4352_vm9 = vmpackc.low %vm461_vm7, %vm6773_vm4  ;;  %vm439_vm4 = vcmp.ge.s32.totalorder %v425_v10, %v428_v9  ;;  %vm440_vm7 = vcmp.ge.s32.totalorder %v426_v19, %v428_v9  ;;  %vm454_vm8 = vcmp.lt.s32.totalorder %v426_v19, %v442_v31 }
 0xcd0   :  { %4353 = vmatpush3.bf16.msk.msra.mxu1 %vm4352_vm9, %v4692_v4  ;;  %vm6798_vm1 = vmand %vm437_vm13, %vm451_vm14 }
 0xcd1   :  { %4354 = vmatprep.subr.bf16.mxu1 %v7158_v7  ;;  %vm465_vm6 = vmand %vm438_vm0, %vm452_vm11  ;;  %vm3530_vm0 = vcmask 1043456   ;;  %vm3480_vm11 = vcmask 15360  }
 0xcd2   :  { %vm4358_vm12 = vmpackc.low %vm465_vm6, %vm6798_vm1 }
 0xcd3   :  { %vm466_vm9 = vmand %vm439_vm4, %vm453_vm5 }
 0xcd4   :  { %4356 = vmatpush3.bf16.msk.msra.mxu1 %vm4355_vm3, %v4692_v4  ;;  %vm467_vm15 = vmand %vm440_vm7, %vm454_vm8 }
 0xcd5   :  { %4357 = vmatprep.subr.bf16.mxu1 %v7158_v7  ;;  %vm4361_vm13 = vmpackc.low %vm467_vm15, %vm466_vm9 }
 0xcd6   :  { %vm468_vm14 = vmand %vm441_vm2, %vm455_vm10  ;;  %vm7165_vm2 = vcmask 7168  }
 0xcd7   :  { %v3662_v15 = vsel %vm468_vm14, 1.0, %v7087_v5  ;;  %vm7166_vm3 = vmmov %vm7165_vm2  ;;  %vm3526_vm14 = vcmask 818176  }
 0xcd8   :  { %4359 = vmatpush3.bf16.msk.msra.mxu1 %vm4358_vm12, %v4692_v4  ;;  %vm7167_vm1 = vmmov %vm7165_vm2 }
 0xcd9   :  { %4360 = vmatprep.subr.bf16.mxu1 %v7158_v7  ;;  %vm7168_vm4 = vmmov %vm7167_vm1 }
 0xcda   :  { %vm7169_vm5 = vmmov %vm7167_vm1 }
 0xcdb   :  { %vm7170_vm6 = vmmov %vm7167_vm1 }
 0xcdc   :  { %4362 = vmatpush3.bf16.msk.msra.mxu1 %vm4361_vm13, %v4692_v4  ;;  %vm7171_vm7 = vmmov %vm7167_vm1 }
 0xcdd   :  { %4279 = vmatprep.subr.mxu1 %v7087_v5  ;;  %vm7172_vm8 = vmmov %vm7167_vm1 }
 0xcde   :  { %vm7173_vm12 = vmmov %vm7167_vm1 }
 0xcdf   :  { %vm7174_vm9 = vmmov %vm7167_vm1 }
 0xce0   :  { %4280 = vmatpush3.msk.msra.mxu1 %vm3530_vm0, %v3662_v15  ;;  %vm7175_vm10 = vmmov %vm7167_vm1  ;;  %vm7178_vm0 = vcmask 10240  }
 0xce1   :  { %vm7176_vm15 = vmmov %vm7167_vm1 }
 0xce2   :  { %vm7177_vm13 = vmmov %vm7167_vm1 }
 0xcfa   :  { %v2263_v36 = vpop.xlane.xlu0 %2262 }
 0xcfe   :  { %v2269_v22 = vpop.xlane.xlu0 %2268 }
 0xd02   :  { %v2275_v49 = vpop.xlane.xlu0 %2274 }
 0xd06   :  { %v2281_v16 = vpop.xlane.xlu0 %2280 }
 0xd0a   :  { %v2287_v43 = vpop.xlane.xlu0 %2286 }
 0xd0b   :  { %v2260_v18 = vpop.xlane.xlu1 %2259 }
 0xd0e   :  { %v2293_v21 = vpop.xlane.xlu0 %2292 }
 0xd0f   :  { %v2266_v63 = vpop.xlane.xlu1 %2265 }
 0xd12   :  { %v2846_v8 = vpop.xlane.xlu0 %2845 }
 0xd13   :  { %v3467_v35 = vsel %vm7165_vm2, %v2260_v18, %v2846_v8  ;;  %v2272_v42 = vpop.xlane.xlu1 %2271 }
 0xd14   :  { %v3481_v26 = vsel %vm3480_vm11, %v3467_v35, %v6654_v25 }
 0xd15   :  { %3494 = vxpose.xlu0.b32.start [1/13] (short) (narrow) %v3481_v26, 8 }
 0xd16   :  { %v2852_v24 = vpop.xlane.xlu0 %2851 }
 0xd17   :  { %v2278_v5 = vpop.xlane.xlu1 %2277  ;;  %v3469_v6 = vsel %vm7167_vm1, %v2266_v63, %v2852_v24 }
 0xd18   :  { %v3483_v52 = vsel %vm3480_vm11, %v3469_v6, %v6658_v3 }
 0xd1a   :  { %v2858_v32 = vpop.xlane.xlu0 %2857 }
 0xd1b   :  { %v2284_v0 = vpop.xlane.xlu1 %2283  ;;  %v3471_v57 = vsel %vm7169_vm5, %v2272_v42, %v2858_v32 }
 0xd1e   :  { %v2864_v28 = vpop.xlane.xlu0 %2863 }
 0xd1f   :  { %v2290_v60 = vpop.xlane.xlu1 %2289  ;;  %v3473_v45 = vsel %vm7171_vm7, %v2278_v5, %v2864_v28 }
 0xd22   :  { %v2870_v55 = vpop.xlane.xlu0 %2869 }
 0xd23   :  { %v2297_v13 = vpop.xlane.xlu1 %2296  ;;  %v3475_v40 = vsel %vm7173_vm12, %v2284_v0, %v2870_v55 }
 0xd26   :  { %v2876_v61 = vpop.xlane.xlu0 %2875 }
 0xd27   :  { %v2849_v41 = vpop.xlane.xlu1 %2848  ;;  %v3477_v17 = vsel %vm7175_vm10, %v2290_v60, %v2876_v61 }
 0xd28   :  { %v3468_v62 = vsel %vm7166_vm3, %v2263_v36, %v2849_v41 }
 0xd29   :  { %v3482_v51 = vsel %vm3480_vm11, %v3468_v62, %v6656_v34  ;;  %v3485_v34 = vsel %vm3480_vm11, %v3471_v57, %v6662_v53 }
 0xd2a   :  { %3495 = vxpose.xlu0.b32.cont [2/13] (short) (narrow) %v3482_v51, 8 }
 0xd2b   :  { %v2855_v14 = vpop.xlane.xlu1 %2854 }
 0xd2c   :  { %v3470_v25 = vsel %vm7168_vm4, %v2269_v22, %v2855_v14 }
 0xd2d   :  { %v3484_v56 = vsel %vm3480_vm11, %v3470_v25, %v6660_v59  ;;  %v3487_v59 = vsel %vm3480_vm11, %v3473_v45, %v6666_v47 }
 0xd2e   :  { %3496 = vxpose.xlu0.b32.cont [3/13] (short) (narrow) %v3483_v52, 8 }
 0xd2f   :  { %v2861_v12 = vpop.xlane.xlu1 %2860 }
 0xd30   :  { %v3472_v54 = vsel %vm7170_vm6, %v2275_v49, %v2861_v12 }
 0xd31   :  { %v3486_v3 = vsel %vm3480_vm11, %v3472_v54, %v6664_v33  ;;  %v3489_v33 = vsel %vm3480_vm11, %v3475_v40, %v6670_v46 }
 0xd32   :  { %3497 = vxpose.xlu0.b32.cont [4/13] (short) (narrow) %v3484_v56, 8 }
 0xd33   :  { %v2867_v27 = vpop.xlane.xlu1 %2866 }
 0xd34   :  { %v3474_v11 = vsel %vm7172_vm8, %v2281_v16, %v2867_v27 }
 0xd35   :  { %v3488_v53 = vsel %vm3480_vm11, %v3474_v11, %v6668_v23  ;;  %v3491_v23 = vsel %vm3480_vm11, %v3477_v17, %v6728_v1 }
 0xd36   :  { %3498 = vxpose.xlu0.b32.cont [5/13] (short) (narrow) %v3485_v34, 8 }
 0xd37   :  { %v2873_v39 = vpop.xlane.xlu1 %2872 }
 0xd38   :  { %v3476_v58 = vsel %vm7174_vm9, %v2287_v43, %v2873_v39 }
 0xd39   :  { %v3490_v47 = vsel %vm3480_vm11, %v3476_v58, %v6672_v50 }
 0xd3a   :  { %3499 = vxpose.xlu0.b32.cont [6/13] (short) (narrow) %v3486_v3, 8 }
 0xd3b   :  { %v2879_v38 = vpop.xlane.xlu1 %2878 }
 0xd3c   :  { %v3478_v44 = vsel %vm7176_vm15, %v2293_v21, %v2879_v38 }
 0xd3d   :  { %v3492_v46 = vsel %vm3480_vm11, %v3478_v44, %v6724_v37 }
 0xd3e   :  { %3500 = vxpose.xlu0.b32.cont [7/13] (short) (narrow) %v3487_v59, 8 }
 0xd3f   :  { %v3466_v9 = vpop.xlane.xlu1 %3465 }
 0xd42   :  { %3501 = vxpose.xlu0.b32.cont [8/13] (short) (narrow) %v3488_v53, 8 }
 0xd46   :  { %3502 = vxpose.xlu0.b32.cont [9/13] (short) (narrow) %v3489_v33, 8 }
 0xd4a   :  { %3503 = vxpose.xlu0.b32.cont [10/13] (short) (narrow) %v3490_v47, 8 }
 0xd4e   :  { %3504 = vxpose.xlu0.b32.cont [11/13] (short) (narrow) %v3491_v23, 8 }
 0xd52   :  { %3505 = vxpose.xlu0.b32.cont [12/13] (short) (narrow) %v3492_v46, 8 }
 0xd5b   :  { %v2882_v30 = vpop.xlane.xlu0 %2881 }
 0xd5c   :  { %v3479_v31 = vsel %vm7177_vm13, %v2297_v13, %v2882_v30 }
 0xd5d   :  { %v3493_v50 = vsel %vm3480_vm11, %v3479_v31, %v3466_v9 }
 0xd5e   :  { %3506 = vxpose.xlu0.b32.end [13/13] (short) (narrow) %v3493_v50, 8 }
 0xdae   :  { %v3510_v4 = vpop.trf.xlu0 }
 0xdaf   :  { %4282 = vmatmul.mubr.msk.f32.vlgmr.msra.gmra.mrb[94].mxu1 %vm3526_vm14, %v3510_v4 }
 0xe82   :  { %v3600_v7 = vpop.f32.mrb[94].mxu1 }
 0xe83   :  { %v3604_v48 = vsub.f32 0.0, %v3600_v7  ;;  %v4283_v1 = vpop.f32.mrb[95].mxu1 }
 0xe85   :  { %3605 = vst.msk [vmem:[%s6854_s3] sm:$0x7] %vm7178_vm0, %v3604_v48 }

</bundles_post_ra>
